<compile_context>
chip_gen: v6e
topology: v6e:2x2x1
jax: 0.10.0
libtpu: 0.0.40
codegen_flags: <defaults>
</compile_context>

<pallas_src>
import math
import functools

import jax
import jax.numpy as jnp
from jax import lax
from jax.experimental import pallas as pl
from jax.experimental.pallas import tpu as pltpu


# ------------------------------------------------------------------
# Generic single-block pallas_call helper (everything here is small enough
# to live in VMEM as one full block -> no pads, no [:M] slices, 1 launch).
# ------------------------------------------------------------------

def _full_spec(shape):
    n = len(shape)
    return pl.BlockSpec(shape, lambda i: (0,) * n)


def _single_block_call(kernel, inputs, out_shape, scratch_shapes=()):
    return pl.pallas_call(
        kernel,
        grid=(1,),
        in_specs=[_full_spec(a.shape) for a in inputs],
        out_specs=_full_spec(out_shape.shape),
        out_shape=out_shape,
        scratch_shapes=list(scratch_shapes),
        compiler_params=pltpu.CompilerParams(
            dimension_semantics=("parallel",)),
    )(*inputs)


# ------------------------------------------------------------------
# Pallas kernels
# ------------------------------------------------------------------

def _matmul_bias_act_kernel(x_ref, w_ref, b_ref, o_ref, *, relu):
    """y = act(x @ w + b); x cast to bf16, w already bf16, f32 accumulate."""
    acc = jnp.dot(x_ref[...].astype(jnp.bfloat16), w_ref[...],
                  preferred_element_type=jnp.float32)
    acc = acc + b_ref[...]                      # (1, N) broadcast over rows
    if relu:
        acc = jnp.maximum(acc, 0.0)
    o_ref[...] = acc.astype(o_ref.dtype)


def _embed_kernel(flat_ref, w1_ref, b1_ref, w2_ref, b2_ref, pe_ref, o_ref):
    """relu(flat @ cnn_fc) @ state_proj + positional encoding, fused."""
    h = jnp.dot(flat_ref[...].astype(jnp.bfloat16), w1_ref[...],
                preferred_element_type=jnp.float32) + b1_ref[...]
    h = jnp.maximum(h, 0.0)
    e = jnp.dot(h.astype(jnp.bfloat16), w2_ref[...],
                preferred_element_type=jnp.float32) + b2_ref[...]
    o_ref[...] = (e + pe_ref[...]).astype(o_ref.dtype)


def _head_kernel(x_ref, w1_ref, b1_ref, w2_ref, b2_ref, w3_ref, b3_ref, o_ref):
    """hidden_fc (two Linear+ReLU) + fused [move|jump] output matmul."""
    h = jnp.dot(x_ref[...].astype(jnp.bfloat16), w1_ref[...],
                preferred_element_type=jnp.float32) + b1_ref[...]
    h = jnp.maximum(h, 0.0)
    h = jnp.dot(h.astype(jnp.bfloat16), w2_ref[...],
                preferred_element_type=jnp.float32) + b2_ref[...]
    h = jnp.maximum(h, 0.0)
    o = jnp.dot(h.astype(jnp.bfloat16), w3_ref[...],
                preferred_element_type=jnp.float32) + b3_ref[...]
    o_ref[...] = o.astype(o_ref.dtype)


def _gtrxl_layer_kernel(x_ref, ln1g_ref, ln1b_ref, wqkv_ref, bqkv_ref,
                        wo_ref, bo_ref, ln2g_ref, ln2b_ref,
                        w1_ref, b1_ref, w2_ref, b2_ref, gate_ref,
                        o_ref, attn_scr, *, B, N, nhead, eps):
    """One full GTrXL layer (memory=None path), everything VMEM-resident."""
    D = x_ref.shape[1]
    dh = D // nhead
    scale = 1.0 / math.sqrt(dh)

    x = x_ref[...]                                            # (B*N, D) f32

    def layer_norm(v, g_ref, b_ref):
        mu = jnp.mean(v, axis=-1, keepdims=True)
        var = jnp.mean((v - mu) * (v - mu), axis=-1, keepdims=True)
        return (v - mu) * lax.rsqrt(var + eps) * g_ref[...] + b_ref[...]

    # ---- attention block ----
    src_norm = layer_norm(x, ln1g_ref, ln1b_ref)              # (B*N, D)
    qkv = jnp.dot(src_norm.astype(jnp.bfloat16), wqkv_ref[...],
                  preferred_element_type=jnp.float32) + bqkv_ref[...]  # (B*N, 3D)
    q = qkv[:, 0 * D:1 * D] * scale          # fold 1/sqrt(dh) into q once
    k = qkv[:, 1 * D:2 * D]
    v = qkv[:, 2 * D:3 * D]

    # per-(batch, head) scaled-dot-product attention, statically unrolled;
    # head outputs written directly into a VMEM scratch (no HBM traffic).
    for b in range(B):
        qb = q[b * N:(b + 1) * N, :]
        kb = k[b * N:(b + 1) * N, :]
        vb = v[b * N:(b + 1) * N, :]
        for h in range(nhead):
            qh = qb[:, h * dh:(h + 1) * dh]                   # (N, dh)
            kh = kb[:, h * dh:(h + 1) * dh]
            vh = vb[:, h * dh:(h + 1) * dh]
            s = jnp.dot(qh, kh.T, preferred_element_type=jnp.float32)  # (N, N)
            m = jnp.max(s, axis=-1, keepdims=True)
            p = jnp.exp(s - m)
            l = jnp.sum(p, axis=-1, keepdims=True)
            o = jnp.dot(p, vh, preferred_element_type=jnp.float32)
            o = o * pl.reciprocal(l, approx=True)
            attn_scr[b * N:(b + 1) * N, h * dh:(h + 1) * dh] = o

    attn = attn_scr[...]                                      # (B*N, D)
    proj = jnp.dot(attn.astype(jnp.bfloat16), wo_ref[...],
                   preferred_element_type=jnp.float32) + bo_ref[...]

    gates = 1.0 / (1.0 + jnp.exp(-gate_ref[...]))             # (2, D) sigmoid
    x = x + gates[0:1, :] * proj

    # ---- feed-forward block ----
    hn = layer_norm(x, ln2g_ref, ln2b_ref)
    ff = jnp.dot(hn.astype(jnp.bfloat16), w1_ref[...],
                 preferred_element_type=jnp.float32) + b1_ref[...]
    ff = jnp.maximum(ff, 0.0)
    ff = jnp.dot(ff.astype(jnp.bfloat16), w2_ref[...],
                 preferred_element_type=jnp.float32) + b2_ref[...]
    x = x + gates[1:2, :] * ff

    o_ref[...] = x.astype(o_ref.dtype)


# ------------------------------------------------------------------
# Wrappers
# ------------------------------------------------------------------

def matmul_bias_act(x, w, b, relu=False):
    M, K = x.shape
    N = w.shape[1]
    return _single_block_call(
        functools.partial(_matmul_bias_act_kernel, relu=relu),
        [x, w, b.reshape(1, N)],
        jax.ShapeDtypeStruct((M, N), jnp.float32))


def im2col_nhwc(x, K, stride, pad):
    """x: [B, H, W, C] -> patches [B*Ho*Wo, K*K*C] (tap order kh, kw, c)."""
    B, H, W, C = x.shape
    xp = jnp.pad(x, ((0, 0), (pad, pad), (pad, pad), (0, 0)))
    Ho = (H + 2 * pad - K) // stride + 1
    Wo = (W + 2 * pad - K) // stride + 1
    cols = []
    for kh in range(K):
        for kw in range(K):
            cols.append(xp[:, kh:kh + stride * Ho:stride,
                              kw:kw + stride * Wo:stride, :])   # (B,Ho,Wo,C)
    col = jnp.concatenate(cols, axis=-1)          # (B, Ho, Wo, K*K*C)
    return col.reshape(B * Ho * Wo, K * K * C), Ho, Wo


def conv2d_nhwc(x, w, b, K, stride, pad, relu=True):
    """NHWC conv via im2col + fused Pallas matmul/bias/ReLU (stays NHWC)."""
    # TODO(synk): for scaled-up images, gather the KxK taps in-kernel from a
    # VMEM-resident image tile instead of materializing the im2col matrix.
    BN = x.shape[0]
    col, Ho, Wo = im2col_nhwc(x, K, stride, pad)
    y = matmul_bias_act(col, w, b, relu=relu)
    return y.reshape(BN, Ho, Wo, -1)


def gtrxl_layer_pallas(x, p, B, N, nhead, eps=1e-5):
    """x: [B*N, D] -> [B*N, D]; one fused pallas_call for the whole layer."""
    BN, D = x.shape
    Hd = p["w1"].shape[1]
    gate_rows = jnp.concatenate(
        [jnp.broadcast_to(p["attn_gate"].reshape(1, 1), (1, D)),
         jnp.broadcast_to(p["ff_gate"].reshape(1, 1), (1, D))], axis=0)  # (2,D)
    inputs = [x,
              p["ln1_g"].reshape(1, D), p["ln1_b"].reshape(1, D),
              p["wqkv"], p["bqkv"].reshape(1, 3 * D),
              p["wo"], p["bo"].reshape(1, D),
              p["ln2_g"].reshape(1, D), p["ln2_b"].reshape(1, D),
              p["w1"], p["b1"].reshape(1, Hd),
              p["w2"], p["b2"].reshape(1, D),
              gate_rows]
    return _single_block_call(
        functools.partial(_gtrxl_layer_kernel, B=B, N=N, nhead=nhead, eps=eps),
        inputs,
        jax.ShapeDtypeStruct((BN, D), jnp.float32),
        scratch_shapes=[pltpu.VMEM((BN, D), jnp.float32)])


def positional_encoding(d_model, max_len):
    pos = jnp.arange(max_len, dtype=jnp.float32)[:, None]
    div = jnp.exp(jnp.arange(0, d_model, 2, dtype=jnp.float32)
                  * (-math.log(10000.0) / d_model))
    pe = jnp.zeros((max_len, d_model), dtype=jnp.float32)
    pe = pe.at[:, 0::2].set(jnp.sin(pos * div))
    pe = pe.at[:, 1::2].set(jnp.cos(pos * div))
    return pe


# ------------------------------------------------------------------
# Full forward pass
# ------------------------------------------------------------------

def gtrxl_policy_forward(images, params, cfg):
    """images: [B, N, 1, H, W] (PyTorch NCHW per frame)."""
    B, N, C, H, W = images.shape
    D = cfg["transformer_dim"]

    # single NCHW->NHWC layout change at the boundary (C=1, essentially free);
    # everything downstream stays channels-last (channels on the lane axis).
    x = images.reshape(B * N, C, H, W).transpose(0, 2, 3, 1).astype(jnp.float32)

    # --- CNN feature extractor ---
    x = conv2d_nhwc(x, params["conv1_w"], params["conv1_b"], 8, 4, 2)
    x = conv2d_nhwc(x, params["conv2_w"], params["conv2_b"], 4, 2, 1)
    x = conv2d_nhwc(x, params["conv3_w"], params["conv3_b"], 3, 1, 1)
    # NHWC flatten order (cnn_fc weights are initialized in the same order,
    # so semantics match the PyTorch view(B,-1) up to a weight permutation).
    flat = x.reshape(B * N, -1)

    # --- fused cnn_fc + state_proj + positional encoding ---
    pe_rows = jnp.tile(params["pe"][:N], (B, 1))              # (B*N, D)
    emb = _single_block_call(
        _embed_kernel,
        [flat,
         params["cnn_fc_w"], params["cnn_fc_b"].reshape(1, -1),
         params["proj_w"], params["proj_b"].reshape(1, -1),
         pe_rows],
        jax.ShapeDtypeStruct((B * N, D), jnp.float32))

    # --- GTrXL transformer layers ---
    # Fresh module: memory_queue == [None]*num_layers -> src_cat == src.
    # TODO(synk): persistent memory_queue state (Nk > Nq attention over cached
    # layer outputs) is not exercised here.
    xx = emb
    for layer_p in params["layers"]:
        xx = gtrxl_layer_pallas(xx, layer_p, B, N, cfg["nhead"])

    t_out = xx.reshape(B, N, D)[:, -1, :]                     # last token

    # --- fused policy heads (move | jump concatenated into one matmul) ---
    logits = _single_block_call(
        _head_kernel,
        [t_out,
         params["h1_w"], params["h1_b"].reshape(1, -1),
         params["h2_w"], params["h2_b"].reshape(1, -1),
         params["head_w"], params["head_b"].reshape(1, -1)],
        jax.ShapeDtypeStruct((B, 4), jnp.float32))
    return logits[:, :2], logits[:, 2:]


# ------------------------------------------------------------------
# Deterministic parameter init (shapes follow the PyTorch __init__, scaled
# down: img_feature_dim = transformer_dim = hidden_dim = 32).  Weights for
# matmuls are stored in bf16 (MXU-native), biases / LN params in f32.
# ------------------------------------------------------------------

def init_params(key, cfg):
    D = cfg["transformer_dim"]
    Hd = cfg["hidden_dim"]
    F = cfg["img_feature_dim"]
    flat = cfg["cnn_flat_dim"]

    def nrm(k, shape, scale=0.05, dtype=jnp.bfloat16):
        return (scale * jax.random.normal(k, shape, dtype=jnp.float32)).astype(dtype)

    keys = iter(jax.random.split(key, 64))
    p = {
        # conv weights as [K*K*Cin, Cout], tap order (kh, kw, cin) = NHWC im2col
        "conv1_w": nrm(next(keys), (8 * 8 * 1, 32)),
        "conv1_b": nrm(next(keys), (32,), dtype=jnp.float32),
        "conv2_w": nrm(next(keys), (4 * 4 * 32, 64)),
        "conv2_b": nrm(next(keys), (64,), dtype=jnp.float32),
        "conv3_w": nrm(next(keys), (3 * 3 * 64, 64)),
        "conv3_b": nrm(next(keys), (64,), dtype=jnp.float32),
        "cnn_fc_w": nrm(next(keys), (flat, F)),
        "cnn_fc_b": nrm(next(keys), (F,), dtype=jnp.float32),
        "proj_w": nrm(next(keys), (F, D)),
        "proj_b": nrm(next(keys), (D,), dtype=jnp.float32),
        "pe": positional_encoding(D, cfg["memory_length"] + 1),
        "h1_w": nrm(next(keys), (D, Hd)),
        "h1_b": nrm(next(keys), (Hd,), dtype=jnp.float32),
        "h2_w": nrm(next(keys), (Hd, Hd)),
        "h2_b": nrm(next(keys), (Hd,), dtype=jnp.float32),
        # move/jump heads fused: columns 0:2 = move, 2:4 = jump
        "head_w": nrm(next(keys), (Hd, 4)),
        "head_b": nrm(next(keys), (4,), dtype=jnp.float32),
        "layers": [],
    }
    for _ in range(cfg["num_layers"]):
        lk = iter(jax.random.split(next(keys), 16))
        p["layers"].append({
            "ln1_g": jnp.ones((D,), jnp.float32),
            "ln1_b": jnp.zeros((D,), jnp.float32),
            "ln2_g": jnp.ones((D,), jnp.float32),
            "ln2_b": jnp.zeros((D,), jnp.float32),
            # fused QKV projection: [D, 3D] = (wq | wk | wv)
            "wqkv": nrm(next(lk), (D, 3 * D)),
            "bqkv": nrm(next(lk), (3 * D,), dtype=jnp.float32),
            "wo": nrm(next(lk), (D, D)),
            "bo": nrm(next(lk), (D,), dtype=jnp.float32),
            "w1": nrm(next(lk), (D, Hd)),
            "b1": nrm(next(lk), (Hd,), dtype=jnp.float32),
            "w2": nrm(next(lk), (Hd, D)),
            "b2": nrm(next(lk), (D,), dtype=jnp.float32),
            "attn_gate": jnp.zeros((1,), jnp.float32),   # sigmoid(0) = 0.5
            "ff_gate": jnp.zeros((1,), jnp.float32),
        })
    return p


# ------------------------------------------------------------------
if __name__ == "__main__":
    # Small but architecture-consistent config:
    #   36x36 single-channel frames -> conv stack -> 64*4*4 = 1024 flat feats
    cfg = {
        "img_feature_dim": 32,
        "transformer_dim": 32,
        "hidden_dim": 32,
        "nhead": 4,
        "num_layers": 2,
        "memory_length": 4,
        "cnn_flat_dim": 64 * 4 * 4,
    }
    B, N, C, H, W = 2, 2, 1, 36, 36

    key = jax.random.PRNGKey(0)
    k_img, k_par = jax.random.split(key)
    images = jax.random.normal(k_img, (B, N, C, H, W), dtype=jnp.float32)
    params = init_params(k_par, cfg)

    fwd = jax.jit(functools.partial(gtrxl_policy_forward, cfg=cfg))
    move_logits, jump_logits = fwd(images, params)
    jax.block_until_ready((move_logits, jump_logits))

    assert move_logits.shape == (B, 2) and jump_logits.shape == (B, 2)
    print("KERNEL_OK")
</pallas_src>

<mosaic_0001>
module attributes {stable_mosaic.version = 11 : i64} {
  func.func @_matmul_bias_act_kernel(%arg0: i32, %arg1: memref<324x64xf32, #tpu.memory_space<vmem>>, %arg2: memref<64x32xbf16, #tpu.memory_space<vmem>>, %arg3: memref<1x32xf32, #tpu.memory_space<vmem>>, %arg4: memref<324x32xf32, #tpu.memory_space<vmem>>) attributes {dimension_semantics = [#tpu.dimension_semantics<parallel>], iteration_bounds = array<i64: 1>, scalar_prefetch = 0 : i64, scratch_operands = 0 : i64, tpu.core_type = #tpu.core_type<tc>, window_params = [{pipeline_mode = #tpu.pipeline_mode<synchronous>, transform_indices = @transform_0, window_bounds = array<i64: 324, 64>}, {pipeline_mode = #tpu.pipeline_mode<synchronous>, transform_indices = @transform_1, window_bounds = array<i64: 64, 32>}, {pipeline_mode = #tpu.pipeline_mode<synchronous>, transform_indices = @transform_2, window_bounds = array<i64: 1, 32>}, {pipeline_mode = #tpu.pipeline_mode<synchronous>, transform_indices = @transform_3, window_bounds = array<i64: 324, 32>}]} {
    %c0 = arith.constant 0 : index
    %c0_0 = arith.constant 0 : index
    %0 = vector.load %arg1[%c0, %c0_0] : memref<324x64xf32, #tpu.memory_space<vmem>>, vector<324x64xf32>
    %1 = arith.truncf %0 : vector<324x64xf32> to vector<324x64xbf16>
    %c0_1 = arith.constant 0 : index
    %c0_2 = arith.constant 0 : index
    %2 = vector.load %arg2[%c0_1, %c0_2] : memref<64x32xbf16, #tpu.memory_space<vmem>>, vector<64x32xbf16>
    %cst = arith.constant dense<0.000000e+00> : vector<324x32xf32>
    %3 = tpu.matmul %1, %2, %cst {dimension_numbers = #tpu.dot_dimension_numbers<[1], [0], [0], [1], [0, 0, 1, 1], [], []>} : vector<324x64xbf16>, vector<64x32xbf16>, vector<324x32xf32> -> vector<324x32xf32>
    %c0_3 = arith.constant 0 : index
    %c0_4 = arith.constant 0 : index
    %4 = vector.load %arg3[%c0_3, %c0_4] : memref<1x32xf32, #tpu.memory_space<vmem>>, vector<1x32xf32>
    %5 = vector.broadcast %4 : vector<1x32xf32> to vector<324x32xf32>
    %6 = arith.addf %3, %5 : vector<324x32xf32>
    %cst_5 = arith.constant 0.000000e+00 : f32
    %7 = vector.broadcast %cst_5 : f32 to vector<324x32xf32>
    %8 = arith.maximumf %6, %7 : vector<324x32xf32>
    %c0_6 = arith.constant 0 : index
    %c0_7 = arith.constant 0 : index
    %9 = vector.load %arg4[%c0_6, %c0_7] : memref<324x32xf32, #tpu.memory_space<vmem>>, vector<324x32xf32>
    tpu.vector_store %arg4[%c0_6, %c0_7], %8 {strides = array<i32>} : memref<324x32xf32, #tpu.memory_space<vmem>>, vector<324x32xf32>,
    return
  }
  func.func @transform_0(%arg0: i32) -> (i32, i32) {
    %c0_i32 = arith.constant 0 : i32
    %c0_i32_0 = arith.constant 0 : i32
    %c0_i32_1 = arith.constant 0 : i32
    return %c0_i32, %c0_i32_0 : i32, i32
  }
  func.func @transform_1(%arg0: i32) -> (i32, i32) {
    %c0_i32 = arith.constant 0 : i32
    %c0_i32_0 = arith.constant 0 : i32
    %c0_i32_1 = arith.constant 0 : i32
    return %c0_i32, %c0_i32_0 : i32, i32
  }
  func.func @transform_2(%arg0: i32) -> (i32, i32) {
    %c0_i32 = arith.constant 0 : i32
    %c0_i32_0 = arith.constant 0 : i32
    %c0_i32_1 = arith.constant 0 : i32
    return %c0_i32, %c0_i32_0 : i32, i32
  }
  func.func @transform_3(%arg0: i32) -> (i32, i32) {
    %c0_i32 = arith.constant 0 : i32
    %c0_i32_0 = arith.constant 0 : i32
    %c0_i32_1 = arith.constant 0 : i32
    return %c0_i32, %c0_i32_0 : i32, i32
  }
}

module attributes {stable_mosaic.version = 11 : i64} {
  func.func @_matmul_bias_act_kernel(%arg0: i32, %arg1: memref<64x512xf32, #tpu.memory_space<vmem>>, %arg2: memref<512x64xbf16, #tpu.memory_space<vmem>>, %arg3: memref<1x64xf32, #tpu.memory_space<vmem>>, %arg4: memref<64x64xf32, #tpu.memory_space<vmem>>) attributes {dimension_semantics = [#tpu.dimension_semantics<parallel>], iteration_bounds = array<i64: 1>, scalar_prefetch = 0 : i64, scratch_operands = 0 : i64, tpu.core_type = #tpu.core_type<tc>, window_params = [{pipeline_mode = #tpu.pipeline_mode<synchronous>, transform_indices = @transform_0, window_bounds = array<i64: 64, 512>}, {pipeline_mode = #tpu.pipeline_mode<synchronous>, transform_indices = @transform_1, window_bounds = array<i64: 512, 64>}, {pipeline_mode = #tpu.pipeline_mode<synchronous>, transform_indices = @transform_2, window_bounds = array<i64: 1, 64>}, {pipeline_mode = #tpu.pipeline_mode<synchronous>, transform_indices = @transform_3, window_bounds = array<i64: 64, 64>}]} {
    %c0 = arith.constant 0 : index
    %c0_0 = arith.constant 0 : index
    %0 = vector.load %arg1[%c0, %c0_0] : memref<64x512xf32, #tpu.memory_space<vmem>>, vector<64x512xf32>
    %1 = arith.truncf %0 : vector<64x512xf32> to vector<64x512xbf16>
    %c0_1 = arith.constant 0 : index
    %c0_2 = arith.constant 0 : index
    %2 = vector.load %arg2[%c0_1, %c0_2] : memref<512x64xbf16, #tpu.memory_space<vmem>>, vector<512x64xbf16>
    %cst = arith.constant dense<0.000000e+00> : vector<64x64xf32>
    %3 = tpu.matmul %1, %2, %cst {dimension_numbers = #tpu.dot_dimension_numbers<[1], [0], [0], [1], [0, 0, 1, 1], [], []>} : vector<64x512xbf16>, vector<512x64xbf16>, vector<64x64xf32> -> vector<64x64xf32>
    %c0_3 = arith.constant 0 : index
    %c0_4 = arith.constant 0 : index
    %4 = vector.load %arg3[%c0_3, %c0_4] : memref<1x64xf32, #tpu.memory_space<vmem>>, vector<1x64xf32>
    %5 = vector.broadcast %4 : vector<1x64xf32> to vector<64x64xf32>
    %6 = arith.addf %3, %5 : vector<64x64xf32>
    %cst_5 = arith.constant 0.000000e+00 : f32
    %7 = vector.broadcast %cst_5 : f32 to vector<64x64xf32>
    %8 = arith.maximumf %6, %7 : vector<64x64xf32>
    %c0_6 = arith.constant 0 : index
    %c0_7 = arith.constant 0 : index
    %9 = vector.load %arg4[%c0_6, %c0_7] : memref<64x64xf32, #tpu.memory_space<vmem>>, vector<64x64xf32>
    tpu.vector_store %arg4[%c0_6, %c0_7], %8 {strides = array<i32>} : memref<64x64xf32, #tpu.memory_space<vmem>>, vector<64x64xf32>,
    return
  }
  func.func @transform_0(%arg0: i32) -> (i32, i32) {
    %c0_i32 = arith.constant 0 : i32
    %c0_i32_0 = arith.constant 0 : i32
    %c0_i32_1 = arith.constant 0 : i32
    return %c0_i32, %c0_i32_0 : i32, i32
  }
  func.func @transform_1(%arg0: i32) -> (i32, i32) {
    %c0_i32 = arith.constant 0 : i32
    %c0_i32_0 = arith.constant 0 : i32
    %c0_i32_1 = arith.constant 0 : i32
    return %c0_i32, %c0_i32_0 : i32, i32
  }
  func.func @transform_2(%arg0: i32) -> (i32, i32) {
    %c0_i32 = arith.constant 0 : i32
    %c0_i32_0 = arith.constant 0 : i32
    %c0_i32_1 = arith.constant 0 : i32
    return %c0_i32, %c0_i32_0 : i32, i32
  }
  func.func @transform_3(%arg0: i32) -> (i32, i32) {
    %c0_i32 = arith.constant 0 : i32
    %c0_i32_0 = arith.constant 0 : i32
    %c0_i32_1 = arith.constant 0 : i32
    return %c0_i32, %c0_i32_0 : i32, i32
  }
}

module attributes {stable_mosaic.version = 11 : i64} {
  func.func @_matmul_bias_act_kernel(%arg0: i32, %arg1: memref<64x576xf32, #tpu.memory_space<vmem>>, %arg2: memref<576x64xbf16, #tpu.memory_space<vmem>>, %arg3: memref<1x64xf32, #tpu.memory_space<vmem>>, %arg4: memref<64x64xf32, #tpu.memory_space<vmem>>) attributes {dimension_semantics = [#tpu.dimension_semantics<parallel>], iteration_bounds = array<i64: 1>, scalar_prefetch = 0 : i64, scratch_operands = 0 : i64, tpu.core_type = #tpu.core_type<tc>, window_params = [{pipeline_mode = #tpu.pipeline_mode<synchronous>, transform_indices = @transform_0, window_bounds = array<i64: 64, 576>}, {pipeline_mode = #tpu.pipeline_mode<synchronous>, transform_indices = @transform_1, window_bounds = array<i64: 576, 64>}, {pipeline_mode = #tpu.pipeline_mode<synchronous>, transform_indices = @transform_2, window_bounds = array<i64: 1, 64>}, {pipeline_mode = #tpu.pipeline_mode<synchronous>, transform_indices = @transform_3, window_bounds = array<i64: 64, 64>}]} {
    %c0 = arith.constant 0 : index
    %c0_0 = arith.constant 0 : index
    %0 = vector.load %arg1[%c0, %c0_0] : memref<64x576xf32, #tpu.memory_space<vmem>>, vector<64x576xf32>
    %1 = arith.truncf %0 : vector<64x576xf32> to vector<64x576xbf16>
    %c0_1 = arith.constant 0 : index
    %c0_2 = arith.constant 0 : index
    %2 = vector.load %arg2[%c0_1, %c0_2] : memref<576x64xbf16, #tpu.memory_space<vmem>>, vector<576x64xbf16>
    %cst = arith.constant dense<0.000000e+00> : vector<64x64xf32>
    %3 = tpu.matmul %1, %2, %cst {dimension_numbers = #tpu.dot_dimension_numbers<[1], [0], [0], [1], [0, 0, 1, 1], [], []>} : vector<64x576xbf16>, vector<576x64xbf16>, vector<64x64xf32> -> vector<64x64xf32>
    %c0_3 = arith.constant 0 : index
    %c0_4 = arith.constant 0 : index
    %4 = vector.load %arg3[%c0_3, %c0_4] : memref<1x64xf32, #tpu.memory_space<vmem>>, vector<1x64xf32>
    %5 = vector.broadcast %4 : vector<1x64xf32> to vector<64x64xf32>
    %6 = arith.addf %3, %5 : vector<64x64xf32>
    %cst_5 = arith.constant 0.000000e+00 : f32
    %7 = vector.broadcast %cst_5 : f32 to vector<64x64xf32>
    %8 = arith.maximumf %6, %7 : vector<64x64xf32>
    %c0_6 = arith.constant 0 : index
    %c0_7 = arith.constant 0 : index
    %9 = vector.load %arg4[%c0_6, %c0_7] : memref<64x64xf32, #tpu.memory_space<vmem>>, vector<64x64xf32>
    tpu.vector_store %arg4[%c0_6, %c0_7], %8 {strides = array<i32>} : memref<64x64xf32, #tpu.memory_space<vmem>>, vector<64x64xf32>,
    return
  }
  func.func @transform_0(%arg0: i32) -> (i32, i32) {
    %c0_i32 = arith.constant 0 : i32
    %c0_i32_0 = arith.constant 0 : i32
    %c0_i32_1 = arith.constant 0 : i32
    return %c0_i32, %c0_i32_0 : i32, i32
  }
  func.func @transform_1(%arg0: i32) -> (i32, i32) {
    %c0_i32 = arith.constant 0 : i32
    %c0_i32_0 = arith.constant 0 : i32
    %c0_i32_1 = arith.constant 0 : i32
    return %c0_i32, %c0_i32_0 : i32, i32
  }
  func.func @transform_2(%arg0: i32) -> (i32, i32) {
    %c0_i32 = arith.constant 0 : i32
    %c0_i32_0 = arith.constant 0 : i32
    %c0_i32_1 = arith.constant 0 : i32
    return %c0_i32, %c0_i32_0 : i32, i32
  }
  func.func @transform_3(%arg0: i32) -> (i32, i32) {
    %c0_i32 = arith.constant 0 : i32
    %c0_i32_0 = arith.constant 0 : i32
    %c0_i32_1 = arith.constant 0 : i32
    return %c0_i32, %c0_i32_0 : i32, i32
  }
}

module attributes {stable_mosaic.version = 11 : i64} {
  func.func @_embed_kernel(%arg0: i32, %arg1: memref<4x1024xf32, #tpu.memory_space<vmem>>, %arg2: memref<1024x32xbf16, #tpu.memory_space<vmem>>, %arg3: memref<1x32xf32, #tpu.memory_space<vmem>>, %arg4: memref<32x32xbf16, #tpu.memory_space<vmem>>, %arg5: memref<1x32xf32, #tpu.memory_space<vmem>>, %arg6: memref<4x32xf32, #tpu.memory_space<vmem>>, %arg7: memref<4x32xf32, #tpu.memory_space<vmem>>) attributes {dimension_semantics = [#tpu.dimension_semantics<parallel>], iteration_bounds = array<i64: 1>, scalar_prefetch = 0 : i64, scratch_operands = 0 : i64, tpu.core_type = #tpu.core_type<tc>, window_params = [{pipeline_mode = #tpu.pipeline_mode<synchronous>, transform_indices = @transform_0, window_bounds = array<i64: 4, 1024>}, {pipeline_mode = #tpu.pipeline_mode<synchronous>, transform_indices = @transform_1, window_bounds = array<i64: 1024, 32>}, {pipeline_mode = #tpu.pipeline_mode<synchronous>, transform_indices = @transform_2, window_bounds = array<i64: 1, 32>}, {pipeline_mode = #tpu.pipeline_mode<synchronous>, transform_indices = @transform_3, window_bounds = array<i64: 32, 32>}, {pipeline_mode = #tpu.pipeline_mode<synchronous>, transform_indices = @transform_4, window_bounds = array<i64: 1, 32>}, {pipeline_mode = #tpu.pipeline_mode<synchronous>, transform_indices = @transform_5, window_bounds = array<i64: 4, 32>}, {pipeline_mode = #tpu.pipeline_mode<synchronous>, transform_indices = @transform_6, window_bounds = array<i64: 4, 32>}]} {
    %c0 = arith.constant 0 : index
    %c0_0 = arith.constant 0 : index
    %0 = vector.load %arg1[%c0, %c0_0] : memref<4x1024xf32, #tpu.memory_space<vmem>>, vector<4x1024xf32>
    %1 = arith.truncf %0 : vector<4x1024xf32> to vector<4x1024xbf16>
    %c0_1 = arith.constant 0 : index
    %c0_2 = arith.constant 0 : index
    %2 = vector.load %arg2[%c0_1, %c0_2] : memref<1024x32xbf16, #tpu.memory_space<vmem>>, vector<1024x32xbf16>
    %cst = arith.constant dense<0.000000e+00> : vector<4x32xf32>
    %3 = tpu.matmul %1, %2, %cst {dimension_numbers = #tpu.dot_dimension_numbers<[1], [0], [0], [1], [0, 0, 1, 1], [], []>} : vector<4x1024xbf16>, vector<1024x32xbf16>, vector<4x32xf32> -> vector<4x32xf32>
    %c0_3 = arith.constant 0 : index
    %c0_4 = arith.constant 0 : index
    %4 = vector.load %arg3[%c0_3, %c0_4] : memref<1x32xf32, #tpu.memory_space<vmem>>, vector<1x32xf32>
    %5 = vector.broadcast %4 : vector<1x32xf32> to vector<4x32xf32>
    %6 = arith.addf %3, %5 : vector<4x32xf32>
    %cst_5 = arith.constant 0.000000e+00 : f32
    %7 = vector.broadcast %cst_5 : f32 to vector<4x32xf32>
    %8 = arith.maximumf %6, %7 : vector<4x32xf32>
    %9 = arith.truncf %8 : vector<4x32xf32> to vector<4x32xbf16>
    %c0_6 = arith.constant 0 : index
    %c0_7 = arith.constant 0 : index
    %10 = vector.load %arg4[%c0_6, %c0_7] : memref<32x32xbf16, #tpu.memory_space<vmem>>, vector<32x32xbf16>
    %cst_8 = arith.constant dense<0.000000e+00> : vector<4x32xf32>
    %11 = tpu.matmul %9, %10, %cst_8 {dimension_numbers = #tpu.dot_dimension_numbers<[1], [0], [0], [1], [0, 0, 1, 1], [], []>} : vector<4x32xbf16>, vector<32x32xbf16>, vector<4x32xf32> -> vector<4x32xf32>
    %c0_9 = arith.constant 0 : index
    %c0_10 = arith.constant 0 : index
    %12 = vector.load %arg5[%c0_9, %c0_10] : memref<1x32xf32, #tpu.memory_space<vmem>>, vector<1x32xf32>
    %13 = vector.broadcast %12 : vector<1x32xf32> to vector<4x32xf32>
    %14 = arith.addf %11, %13 : vector<4x32xf32>
    %c0_11 = arith.constant 0 : index
    %c0_12 = arith.constant 0 : index
    %15 = vector.load %arg6[%c0_11, %c0_12] : memref<4x32xf32, #tpu.memory_space<vmem>>, vector<4x32xf32>
    %16 = arith.addf %14, %15 : vector<4x32xf32>
    %c0_13 = arith.constant 0 : index
    %c0_14 = arith.constant 0 : index
    %17 = vector.load %arg7[%c0_13, %c0_14] : memref<4x32xf32, #tpu.memory_space<vmem>>, vector<4x32xf32>
    tpu.vector_store %arg7[%c0_13, %c0_14], %16 {strides = array<i32>} : memref<4x32xf32, #tpu.memory_space<vmem>>, vector<4x32xf32>,
    return
  }
  func.func @transform_0(%arg0: i32) -> (i32, i32) {
    %c0_i32 = arith.constant 0 : i32
    %c0_i32_0 = arith.constant 0 : i32
    %c0_i32_1 = arith.constant 0 : i32
    return %c0_i32, %c0_i32_0 : i32, i32
  }
  func.func @transform_1(%arg0: i32) -> (i32, i32) {
    %c0_i32 = arith.constant 0 : i32
    %c0_i32_0 = arith.constant 0 : i32
    %c0_i32_1 = arith.constant 0 : i32
    return %c0_i32, %c0_i32_0 : i32, i32
  }
  func.func @transform_2(%arg0: i32) -> (i32, i32) {
    %c0_i32 = arith.constant 0 : i32
    %c0_i32_0 = arith.constant 0 : i32
    %c0_i32_1 = arith.constant 0 : i32
    return %c0_i32, %c0_i32_0 : i32, i32
  }
  func.func @transform_3(%arg0: i32) -> (i32, i32) {
    %c0_i32 = arith.constant 0 : i32
    %c0_i32_0 = arith.constant 0 : i32
    %c0_i32_1 = arith.constant 0 : i32
    return %c0_i32, %c0_i32_0 : i32, i32
  }
  func.func @transform_4(%arg0: i32) -> (i32, i32) {
    %c0_i32 = arith.constant 0 : i32
    %c0_i32_0 = arith.constant 0 : i32
    %c0_i32_1 = arith.constant 0 : i32
    return %c0_i32, %c0_i32_0 : i32, i32
  }
  func.func @transform_5(%arg0: i32) -> (i32, i32) {
    %c0_i32 = arith.constant 0 : i32
    %c0_i32_0 = arith.constant 0 : i32
    %c0_i32_1 = arith.constant 0 : i32
    return %c0_i32, %c0_i32_0 : i32, i32
  }
  func.func @transform_6(%arg0: i32) -> (i32, i32) {
    %c0_i32 = arith.constant 0 : i32
    %c0_i32_0 = arith.constant 0 : i32
    %c0_i32_1 = arith.constant 0 : i32
    return %c0_i32, %c0_i32_0 : i32, i32
  }
}

module attributes {stable_mosaic.version = 11 : i64} {
  func.func @_head_kernel(%arg0: i32, %arg1: memref<2x32xf32, #tpu.memory_space<vmem>>, %arg2: memref<32x32xbf16, #tpu.memory_space<vmem>>, %arg3: memref<1x32xf32, #tpu.memory_space<vmem>>, %arg4: memref<32x32xbf16, #tpu.memory_space<vmem>>, %arg5: memref<1x32xf32, #tpu.memory_space<vmem>>, %arg6: memref<32x4xbf16, #tpu.memory_space<vmem>>, %arg7: memref<1x4xf32, #tpu.memory_space<vmem>>, %arg8: memref<2x4xf32, #tpu.memory_space<vmem>>) attributes {dimension_semantics = [#tpu.dimension_semantics<parallel>], iteration_bounds = array<i64: 1>, scalar_prefetch = 0 : i64, scratch_operands = 0 : i64, tpu.core_type = #tpu.core_type<tc>, window_params = [{pipeline_mode = #tpu.pipeline_mode<synchronous>, transform_indices = @transform_0, window_bounds = array<i64: 2, 32>}, {pipeline_mode = #tpu.pipeline_mode<synchronous>, transform_indices = @transform_1, window_bounds = array<i64: 32, 32>}, {pipeline_mode = #tpu.pipeline_mode<synchronous>, transform_indices = @transform_2, window_bounds = array<i64: 1, 32>}, {pipeline_mode = #tpu.pipeline_mode<synchronous>, transform_indices = @transform_3, window_bounds = array<i64: 32, 32>}, {pipeline_mode = #tpu.pipeline_mode<synchronous>, transform_indices = @transform_4, window_bounds = array<i64: 1, 32>}, {pipeline_mode = #tpu.pipeline_mode<synchronous>, transform_indices = @transform_5, window_bounds = array<i64: 32, 4>}, {pipeline_mode = #tpu.pipeline_mode<synchronous>, transform_indices = @transform_6, window_bounds = array<i64: 1, 4>}, {pipeline_mode = #tpu.pipeline_mode<synchronous>, transform_indices = @transform_7, window_bounds = array<i64: 2, 4>}]} {
    %c0 = arith.constant 0 : index
    %c0_0 = arith.constant 0 : index
    %0 = vector.load %arg1[%c0, %c0_0] : memref<2x32xf32, #tpu.memory_space<vmem>>, vector<2x32xf32>
    %1 = arith.truncf %0 : vector<2x32xf32> to vector<2x32xbf16>
    %c0_1 = arith.constant 0 : index
    %c0_2 = arith.constant 0 : index
    %2 = vector.load %arg2[%c0_1, %c0_2] : memref<32x32xbf16, #tpu.memory_space<vmem>>, vector<32x32xbf16>
    %cst = arith.constant dense<0.000000e+00> : vector<2x32xf32>
    %3 = tpu.matmul %1, %2, %cst {dimension_numbers = #tpu.dot_dimension_numbers<[1], [0], [0], [1], [0, 0, 1, 1], [], []>} : vector<2x32xbf16>, vector<32x32xbf16>, vector<2x32xf32> -> vector<2x32xf32>
    %c0_3 = arith.constant 0 : index
    %c0_4 = arith.constant 0 : index
    %4 = vector.load %arg3[%c0_3, %c0_4] : memref<1x32xf32, #tpu.memory_space<vmem>>, vector<1x32xf32>
    %5 = vector.broadcast %4 : vector<1x32xf32> to vector<2x32xf32>
    %6 = arith.addf %3, %5 : vector<2x32xf32>
    %cst_5 = arith.constant 0.000000e+00 : f32
    %7 = vector.broadcast %cst_5 : f32 to vector<2x32xf32>
    %8 = arith.maximumf %6, %7 : vector<2x32xf32>
    %9 = arith.truncf %8 : vector<2x32xf32> to vector<2x32xbf16>
    %c0_6 = arith.constant 0 : index
    %c0_7 = arith.constant 0 : index
    %10 = vector.load %arg4[%c0_6, %c0_7] : memref<32x32xbf16, #tpu.memory_space<vmem>>, vector<32x32xbf16>
    %cst_8 = arith.constant dense<0.000000e+00> : vector<2x32xf32>
    %11 = tpu.matmul %9, %10, %cst_8 {dimension_numbers = #tpu.dot_dimension_numbers<[1], [0], [0], [1], [0, 0, 1, 1], [], []>} : vector<2x32xbf16>, vector<32x32xbf16>, vector<2x32xf32> -> vector<2x32xf32>
    %c0_9 = arith.constant 0 : index
    %c0_10 = arith.constant 0 : index
    %12 = vector.load %arg5[%c0_9, %c0_10] : memref<1x32xf32, #tpu.memory_space<vmem>>, vector<1x32xf32>
    %13 = vector.broadcast %12 : vector<1x32xf32> to vector<2x32xf32>
    %14 = arith.addf %11, %13 : vector<2x32xf32>
    %cst_11 = arith.constant 0.000000e+00 : f32
    %15 = vector.broadcast %cst_11 : f32 to vector<2x32xf32>
    %16 = arith.maximumf %14, %15 : vector<2x32xf32>
    %17 = arith.truncf %16 : vector<2x32xf32> to vector<2x32xbf16>
    %c0_12 = arith.constant 0 : index
    %c0_13 = arith.constant 0 : index
    %18 = vector.load %arg6[%c0_12, %c0_13] : memref<32x4xbf16, #tpu.memory_space<vmem>>, vector<32x4xbf16>
    %cst_14 = arith.constant dense<0.000000e+00> : vector<2x4xf32>
    %19 = tpu.matmul %17, %18, %cst_14 {dimension_numbers = #tpu.dot_dimension_numbers<[1], [0], [0], [1], [0, 0, 1, 1], [], []>} : vector<2x32xbf16>, vector<32x4xbf16>, vector<2x4xf32> -> vector<2x4xf32>
    %c0_15 = arith.constant 0 : index
    %c0_16 = arith.constant 0 : index
    %20 = vector.load %arg7[%c0_15, %c0_16] : memref<1x4xf32, #tpu.memory_space<vmem>>, vector<1x4xf32>
    %21 = vector.broadcast %20 : vector<1x4xf32> to vector<2x4xf32>
    %22 = arith.addf %19, %21 : vector<2x4xf32>
    %c0_17 = arith.constant 0 : index
    %c0_18 = arith.constant 0 : index
    %23 = vector.load %arg8[%c0_17, %c0_18] : memref<2x4xf32, #tpu.memory_space<vmem>>, vector<2x4xf32>
    tpu.vector_store %arg8[%c0_17, %c0_18], %22 {strides = array<i32>} : memref<2x4xf32, #tpu.memory_space<vmem>>, vector<2x4xf32>,
    return
  }
  func.func @transform_0(%arg0: i32) -> (i32, i32) {
    %c0_i32 = arith.constant 0 : i32
    %c0_i32_0 = arith.constant 0 : i32
    %c0_i32_1 = arith.constant 0 : i32
    return %c0_i32, %c0_i32_0 : i32, i32
  }
  func.func @transform_1(%arg0: i32) -> (i32, i32) {
    %c0_i32 = arith.constant 0 : i32
    %c0_i32_0 = arith.constant 0 : i32
    %c0_i32_1 = arith.constant 0 : i32
    return %c0_i32, %c0_i32_0 : i32, i32
  }
  func.func @transform_2(%arg0: i32) -> (i32, i32) {
    %c0_i32 = arith.constant 0 : i32
    %c0_i32_0 = arith.constant 0 : i32
    %c0_i32_1 = arith.constant 0 : i32
    return %c0_i32, %c0_i32_0 : i32, i32
  }
  func.func @transform_3(%arg0: i32) -> (i32, i32) {
    %c0_i32 = arith.constant 0 : i32
    %c0_i32_0 = arith.constant 0 : i32
    %c0_i32_1 = arith.constant 0 : i32
    return %c0_i32, %c0_i32_0 : i32, i32
  }
  func.func @transform_4(%arg0: i32) -> (i32, i32) {
    %c0_i32 = arith.constant 0 : i32
    %c0_i32_0 = arith.constant 0 : i32
    %c0_i32_1 = arith.constant 0 : i32
    return %c0_i32, %c0_i32_0 : i32, i32
  }
  func.func @transform_5(%arg0: i32) -> (i32, i32) {
    %c0_i32 = arith.constant 0 : i32
    %c0_i32_0 = arith.constant 0 : i32
    %c0_i32_1 = arith.constant 0 : i32
    return %c0_i32, %c0_i32_0 : i32, i32
  }
  func.func @transform_6(%arg0: i32) -> (i32, i32) {
    %c0_i32 = arith.constant 0 : i32
    %c0_i32_0 = arith.constant 0 : i32
    %c0_i32_1 = arith.constant 0 : i32
    return %c0_i32, %c0_i32_0 : i32, i32
  }
  func.func @transform_7(%arg0: i32) -> (i32, i32) {
    %c0_i32 = arith.constant 0 : i32
    %c0_i32_0 = arith.constant 0 : i32
    %c0_i32_1 = arith.constant 0 : i32
    return %c0_i32, %c0_i32_0 : i32, i32
  }
}

module attributes {stable_mosaic.version = 11 : i64} {
  func.func @_gtrxl_layer_kernel(%arg0: i32, %arg1: memref<4x32xf32, #tpu.memory_space<vmem>>, %arg2: memref<1x32xf32, #tpu.memory_space<vmem>>, %arg3: memref<1x32xf32, #tpu.memory_space<vmem>>, %arg4: memref<32x96xbf16, #tpu.memory_space<vmem>>, %arg5: memref<1x96xf32, #tpu.memory_space<vmem>>, %arg6: memref<32x32xbf16, #tpu.memory_space<vmem>>, %arg7: memref<1x32xf32, #tpu.memory_space<vmem>>, %arg8: memref<1x32xf32, #tpu.memory_space<vmem>>, %arg9: memref<1x32xf32, #tpu.memory_space<vmem>>, %arg10: memref<32x32xbf16, #tpu.memory_space<vmem>>, %arg11: memref<1x32xf32, #tpu.memory_space<vmem>>, %arg12: memref<32x32xbf16, #tpu.memory_space<vmem>>, %arg13: memref<1x32xf32, #tpu.memory_space<vmem>>, %arg14: memref<2x32xf32, #tpu.memory_space<vmem>>, %arg15: memref<4x32xf32, #tpu.memory_space<vmem>>, %arg16: memref<4x32xf32, #tpu.memory_space<vmem>>) attributes {dimension_semantics = [#tpu.dimension_semantics<parallel>], iteration_bounds = array<i64: 1>, scalar_prefetch = 0 : i64, scratch_operands = 1 : i64, tpu.core_type = #tpu.core_type<tc>, window_params = [{pipeline_mode = #tpu.pipeline_mode<synchronous>, transform_indices = @transform_0, window_bounds = array<i64: 4, 32>}, {pipeline_mode = #tpu.pipeline_mode<synchronous>, transform_indices = @transform_1, window_bounds = array<i64: 1, 32>}, {pipeline_mode = #tpu.pipeline_mode<synchronous>, transform_indices = @transform_2, window_bounds = array<i64: 1, 32>}, {pipeline_mode = #tpu.pipeline_mode<synchronous>, transform_indices = @transform_3, window_bounds = array<i64: 32, 96>}, {pipeline_mode = #tpu.pipeline_mode<synchronous>, transform_indices = @transform_4, window_bounds = array<i64: 1, 96>}, {pipeline_mode = #tpu.pipeline_mode<synchronous>, transform_indices = @transform_5, window_bounds = array<i64: 32, 32>}, {pipeline_mode = #tpu.pipeline_mode<synchronous>, transform_indices = @transform_6, window_bounds = array<i64: 1, 32>}, {pipeline_mode = #tpu.pipeline_mode<synchronous>, transform_indices = @transform_7, window_bounds = array<i64: 1, 32>}, {pipeline_mode = #tpu.pipeline_mode<synchronous>, transform_indices = @transform_8, window_bounds = array<i64: 1, 32>}, {pipeline_mode = #tpu.pipeline_mode<synchronous>, transform_indices = @transform_9, window_bounds = array<i64: 32, 32>}, {pipeline_mode = #tpu.pipeline_mode<synchronous>, transform_indices = @transform_10, window_bounds = array<i64: 1, 32>}, {pipeline_mode = #tpu.pipeline_mode<synchronous>, transform_indices = @transform_11, window_bounds = array<i64: 32, 32>}, {pipeline_mode = #tpu.pipeline_mode<synchronous>, transform_indices = @transform_12, window_bounds = array<i64: 1, 32>}, {pipeline_mode = #tpu.pipeline_mode<synchronous>, transform_indices = @transform_13, window_bounds = array<i64: 2, 32>}, {pipeline_mode = #tpu.pipeline_mode<synchronous>, transform_indices = @transform_14, window_bounds = array<i64: 4, 32>}]} {
    %c0 = arith.constant 0 : index
    %c0_0 = arith.constant 0 : index
    %0 = vector.load %arg1[%c0, %c0_0] : memref<4x32xf32, #tpu.memory_space<vmem>>, vector<4x32xf32>
    %cst = arith.constant dense<0.000000e+00> : vector<4xf32>
    %1 = vector.multi_reduction <add>, %0, %cst [1] : vector<4x32xf32> to vector<4xf32>
    %2 = vector.shape_cast %1 : vector<4xf32> to vector<4x1xf32>
    %cst_1 = arith.constant 3.200000e+01 : f32
    %3 = vector.broadcast %cst_1 : f32 to vector<4x1xf32>
    %4 = arith.divf %2, %3 : vector<4x1xf32>
    %5 = vector.broadcast %4 : vector<4x1xf32> to vector<4x32xf32>
    %6 = arith.subf %0, %5 : vector<4x32xf32>
    %7 = vector.broadcast %4 : vector<4x1xf32> to vector<4x32xf32>
    %8 = arith.subf %0, %7 : vector<4x32xf32>
    %9 = arith.mulf %6, %8 : vector<4x32xf32>
    %cst_2 = arith.constant dense<0.000000e+00> : vector<4xf32>
    %10 = vector.multi_reduction <add>, %9, %cst_2 [1] : vector<4x32xf32> to vector<4xf32>
    %11 = vector.shape_cast %10 : vector<4xf32> to vector<4x1xf32>
    %cst_3 = arith.constant 3.200000e+01 : f32
    %12 = vector.broadcast %cst_3 : f32 to vector<4x1xf32>
    %13 = arith.divf %11, %12 : vector<4x1xf32>
    %14 = vector.broadcast %4 : vector<4x1xf32> to vector<4x32xf32>
    %15 = arith.subf %0, %14 : vector<4x32xf32>
    %cst_4 = arith.constant 9.99999974E-6 : f32
    %16 = vector.broadcast %cst_4 : f32 to vector<4x1xf32>
    %17 = arith.addf %13, %16 : vector<4x1xf32>
    %18 = math.rsqrt %17 : vector<4x1xf32>
    %19 = vector.broadcast %18 : vector<4x1xf32> to vector<4x32xf32>
    %20 = arith.mulf %15, %19 : vector<4x32xf32>
    %c0_5 = arith.constant 0 : index
    %c0_6 = arith.constant 0 : index
    %21 = vector.load %arg2[%c0_5, %c0_6] : memref<1x32xf32, #tpu.memory_space<vmem>>, vector<1x32xf32>
    %22 = vector.broadcast %21 : vector<1x32xf32> to vector<4x32xf32>
    %23 = arith.mulf %20, %22 : vector<4x32xf32>
    %c0_7 = arith.constant 0 : index
    %c0_8 = arith.constant 0 : index
    %24 = vector.load %arg3[%c0_7, %c0_8] : memref<1x32xf32, #tpu.memory_space<vmem>>, vector<1x32xf32>
    %25 = vector.broadcast %24 : vector<1x32xf32> to vector<4x32xf32>
    %26 = arith.addf %23, %25 : vector<4x32xf32>
    %27 = arith.truncf %26 : vector<4x32xf32> to vector<4x32xbf16>
    %c0_9 = arith.constant 0 : index
    %c0_10 = arith.constant 0 : index
    %28 = vector.load %arg4[%c0_9, %c0_10] : memref<32x96xbf16, #tpu.memory_space<vmem>>, vector<32x96xbf16>
    %cst_11 = arith.constant dense<0.000000e+00> : vector<4x96xf32>
    %29 = tpu.matmul %27, %28, %cst_11 {dimension_numbers = #tpu.dot_dimension_numbers<[1], [0], [0], [1], [0, 0, 1, 1], [], []>} : vector<4x32xbf16>, vector<32x96xbf16>, vector<4x96xf32> -> vector<4x96xf32>
    %c0_12 = arith.constant 0 : index
    %c0_13 = arith.constant 0 : index
    %30 = vector.load %arg5[%c0_12, %c0_13] : memref<1x96xf32, #tpu.memory_space<vmem>>, vector<1x96xf32>
    %31 = vector.broadcast %30 : vector<1x96xf32> to vector<4x96xf32>
    %32 = arith.addf %29, %31 : vector<4x96xf32>
    %33 = vector.extract_strided_slice %32 {offsets = [0, 0], sizes = [4, 32], strides = [1, 1]} : vector<4x96xf32> to vector<4x32xf32>
    %cst_14 = arith.constant 0.353553385 : f32
    %34 = vector.broadcast %cst_14 : f32 to vector<4x32xf32>
    %35 = arith.mulf %33, %34 : vector<4x32xf32>
    %36 = vector.extract_strided_slice %32 {offsets = [0, 32], sizes = [4, 32], strides = [1, 1]} : vector<4x96xf32> to vector<4x32xf32>
    %37 = vector.extract_strided_slice %32 {offsets = [0, 64], sizes = [4, 32], strides = [1, 1]} : vector<4x96xf32> to vector<4x32xf32>
    %38 = vector.extract_strided_slice %35 {offsets = [0, 0], sizes = [2, 32], strides = [1, 1]} : vector<4x32xf32> to vector<2x32xf32>
    %39 = vector.extract_strided_slice %36 {offsets = [0, 0], sizes = [2, 32], strides = [1, 1]} : vector<4x32xf32> to vector<2x32xf32>
    %40 = vector.extract_strided_slice %37 {offsets = [0, 0], sizes = [2, 32], strides = [1, 1]} : vector<4x32xf32> to vector<2x32xf32>
    %41 = vector.extract_strided_slice %38 {offsets = [0, 0], sizes = [2, 8], strides = [1, 1]} : vector<2x32xf32> to vector<2x8xf32>
    %42 = vector.extract_strided_slice %39 {offsets = [0, 0], sizes = [2, 8], strides = [1, 1]} : vector<2x32xf32> to vector<2x8xf32>
    %43 = vector.extract_strided_slice %40 {offsets = [0, 0], sizes = [2, 8], strides = [1, 1]} : vector<2x32xf32> to vector<2x8xf32>
    %44 = tpu.transpose %42, [1, 0] : vector<2x8xf32> -> vector<8x2xf32>
    %cst_15 = arith.constant dense<0.000000e+00> : vector<2x2xf32>
    %45 = tpu.matmul %41, %44, %cst_15 {dimension_numbers = #tpu.dot_dimension_numbers<[1], [0], [0], [1], [0, 0, 1, 1], [], []>} : vector<2x8xf32>, vector<8x2xf32>, vector<2x2xf32> -> vector<2x2xf32>
    %cst_16 = arith.constant dense<0xFF800000> : vector<2xf32>
    %46 = vector.multi_reduction <maximumf>, %45, %cst_16 [1] : vector<2x2xf32> to vector<2xf32>
    %47 = vector.shape_cast %46 : vector<2xf32> to vector<2x1xf32>
    %48 = vector.broadcast %47 : vector<2x1xf32> to vector<2x2xf32>
    %49 = arith.subf %45, %48 : vector<2x2xf32>
    %50 = math.exp %49 : vector<2x2xf32>
    %cst_17 = arith.constant dense<0.000000e+00> : vector<2xf32>
    %51 = vector.multi_reduction <add>, %50, %cst_17 [1] : vector<2x2xf32> to vector<2xf32>
    %52 = vector.shape_cast %51 : vector<2xf32> to vector<2x1xf32>
    %cst_18 = arith.constant dense<0.000000e+00> : vector<2x8xf32>
    %53 = tpu.matmul %50, %43, %cst_18 {dimension_numbers = #tpu.dot_dimension_numbers<[1], [0], [0], [1], [0, 0, 1, 1], [], []>} : vector<2x2xf32>, vector<2x8xf32>, vector<2x8xf32> -> vector<2x8xf32>
    %54 = tpu.reciprocal %52 {approx = true} : vector<2x1xf32> -> vector<2x1xf32>
    %55 = vector.broadcast %54 : vector<2x1xf32> to vector<2x8xf32>
    %56 = arith.mulf %53, %55 : vector<2x8xf32>
    %c0_19 = arith.constant 0 : index
    %c0_20 = arith.constant 0 : index
    %57 = vector.load %arg16[%c0_19, %c0_20] : memref<4x32xf32, #tpu.memory_space<vmem>>, vector<2x8xf32>
    tpu.vector_store %arg16[%c0_19, %c0_20], %56 {strides = array<i32>} : memref<4x32xf32, #tpu.memory_space<vmem>>, vector<2x8xf32>,
    %58 = vector.extract_strided_slice %38 {offsets = [0, 8], sizes = [2, 8], strides = [1, 1]} : vector<2x32xf32> to vector<2x8xf32>
    %59 = vector.extract_strided_slice %39 {offsets = [0, 8], sizes = [2, 8], strides = [1, 1]} : vector<2x32xf32> to vector<2x8xf32>
    %60 = vector.extract_strided_slice %40 {offsets = [0, 8], sizes = [2, 8], strides = [1, 1]} : vector<2x32xf32> to vector<2x8xf32>
    %61 = tpu.transpose %59, [1, 0] : vector<2x8xf32> -> vector<8x2xf32>
    %cst_21 = arith.constant dense<0.000000e+00> : vector<2x2xf32>
    %62 = tpu.matmul %58, %61, %cst_21 {dimension_numbers = #tpu.dot_dimension_numbers<[1], [0], [0], [1], [0, 0, 1, 1], [], []>} : vector<2x8xf32>, vector<8x2xf32>, vector<2x2xf32> -> vector<2x2xf32>
    %cst_22 = arith.constant dense<0xFF800000> : vector<2xf32>
    %63 = vector.multi_reduction <maximumf>, %62, %cst_22 [1] : vector<2x2xf32> to vector<2xf32>
    %64 = vector.shape_cast %63 : vector<2xf32> to vector<2x1xf32>
    %65 = vector.broadcast %64 : vector<2x1xf32> to vector<2x2xf32>
    %66 = arith.subf %62, %65 : vector<2x2xf32>
    %67 = math.exp %66 : vector<2x2xf32>
    %cst_23 = arith.constant dense<0.000000e+00> : vector<2xf32>
    %68 = vector.multi_reduction <add>, %67, %cst_23 [1] : vector<2x2xf32> to vector<2xf32>
    %69 = vector.shape_cast %68 : vector<2xf32> to vector<2x1xf32>
    %cst_24 = arith.constant dense<0.000000e+00> : vector<2x8xf32>
    %70 = tpu.matmul %67, %60, %cst_24 {dimension_numbers = #tpu.dot_dimension_numbers<[1], [0], [0], [1], [0, 0, 1, 1], [], []>} : vector<2x2xf32>, vector<2x8xf32>, vector<2x8xf32> -> vector<2x8xf32>
    %71 = tpu.reciprocal %69 {approx = true} : vector<2x1xf32> -> vector<2x1xf32>
    %72 = vector.broadcast %71 : vector<2x1xf32> to vector<2x8xf32>
    %73 = arith.mulf %70, %72 : vector<2x8xf32>
    %c0_25 = arith.constant 0 : index
    %c8 = arith.constant 8 : index
    %74 = vector.load %arg16[%c0_25, %c8] : memref<4x32xf32, #tpu.memory_space<vmem>>, vector<2x8xf32>
    tpu.vector_store %arg16[%c0_25, %c8], %73 {strides = array<i32>} : memref<4x32xf32, #tpu.memory_space<vmem>>, vector<2x8xf32>,
    %75 = vector.extract_strided_slice %38 {offsets = [0, 16], sizes = [2, 8], strides = [1, 1]} : vector<2x32xf32> to vector<2x8xf32>
    %76 = vector.extract_strided_slice %39 {offsets = [0, 16], sizes = [2, 8], strides = [1, 1]} : vector<2x32xf32> to vector<2x8xf32>
    %77 = vector.extract_strided_slice %40 {offsets = [0, 16], sizes = [2, 8], strides = [1, 1]} : vector<2x32xf32> to vector<2x8xf32>
    %78 = tpu.transpose %76, [1, 0] : vector<2x8xf32> -> vector<8x2xf32>
    %cst_26 = arith.constant dense<0.000000e+00> : vector<2x2xf32>
    %79 = tpu.matmul %75, %78, %cst_26 {dimension_numbers = #tpu.dot_dimension_numbers<[1], [0], [0], [1], [0, 0, 1, 1], [], []>} : vector<2x8xf32>, vector<8x2xf32>, vector<2x2xf32> -> vector<2x2xf32>
    %cst_27 = arith.constant dense<0xFF800000> : vector<2xf32>
    %80 = vector.multi_reduction <maximumf>, %79, %cst_27 [1] : vector<2x2xf32> to vector<2xf32>
    %81 = vector.shape_cast %80 : vector<2xf32> to vector<2x1xf32>
    %82 = vector.broadcast %81 : vector<2x1xf32> to vector<2x2xf32>
    %83 = arith.subf %79, %82 : vector<2x2xf32>
    %84 = math.exp %83 : vector<2x2xf32>
    %cst_28 = arith.constant dense<0.000000e+00> : vector<2xf32>
    %85 = vector.multi_reduction <add>, %84, %cst_28 [1] : vector<2x2xf32> to vector<2xf32>
    %86 = vector.shape_cast %85 : vector<2xf32> to vector<2x1xf32>
    %cst_29 = arith.constant dense<0.000000e+00> : vector<2x8xf32>
    %87 = tpu.matmul %84, %77, %cst_29 {dimension_numbers = #tpu.dot_dimension_numbers<[1], [0], [0], [1], [0, 0, 1, 1], [], []>} : vector<2x2xf32>, vector<2x8xf32>, vector<2x8xf32> -> vector<2x8xf32>
    %88 = tpu.reciprocal %86 {approx = true} : vector<2x1xf32> -> vector<2x1xf32>
    %89 = vector.broadcast %88 : vector<2x1xf32> to vector<2x8xf32>
    %90 = arith.mulf %87, %89 : vector<2x8xf32>
    %c0_30 = arith.constant 0 : index
    %c16 = arith.constant 16 : index
    %91 = vector.load %arg16[%c0_30, %c16] : memref<4x32xf32, #tpu.memory_space<vmem>>, vector<2x8xf32>
    tpu.vector_store %arg16[%c0_30, %c16], %90 {strides = array<i32>} : memref<4x32xf32, #tpu.memory_space<vmem>>, vector<2x8xf32>,
    %92 = vector.extract_strided_slice %38 {offsets = [0, 24], sizes = [2, 8], strides = [1, 1]} : vector<2x32xf32> to vector<2x8xf32>
    %93 = vector.extract_strided_slice %39 {offsets = [0, 24], sizes = [2, 8], strides = [1, 1]} : vector<2x32xf32> to vector<2x8xf32>
    %94 = vector.extract_strided_slice %40 {offsets = [0, 24], sizes = [2, 8], strides = [1, 1]} : vector<2x32xf32> to vector<2x8xf32>
    %95 = tpu.transpose %93, [1, 0] : vector<2x8xf32> -> vector<8x2xf32>
    %cst_31 = arith.constant dense<0.000000e+00> : vector<2x2xf32>
    %96 = tpu.matmul %92, %95, %cst_31 {dimension_numbers = #tpu.dot_dimension_numbers<[1], [0], [0], [1], [0, 0, 1, 1], [], []>} : vector<2x8xf32>, vector<8x2xf32>, vector<2x2xf32> -> vector<2x2xf32>
    %cst_32 = arith.constant dense<0xFF800000> : vector<2xf32>
    %97 = vector.multi_reduction <maximumf>, %96, %cst_32 [1] : vector<2x2xf32> to vector<2xf32>
    %98 = vector.shape_cast %97 : vector<2xf32> to vector<2x1xf32>
    %99 = vector.broadcast %98 : vector<2x1xf32> to vector<2x2xf32>
    %100 = arith.subf %96, %99 : vector<2x2xf32>
    %101 = math.exp %100 : vector<2x2xf32>
    %cst_33 = arith.constant dense<0.000000e+00> : vector<2xf32>
    %102 = vector.multi_reduction <add>, %101, %cst_33 [1] : vector<2x2xf32> to vector<2xf32>
    %103 = vector.shape_cast %102 : vector<2xf32> to vector<2x1xf32>
    %cst_34 = arith.constant dense<0.000000e+00> : vector<2x8xf32>
    %104 = tpu.matmul %101, %94, %cst_34 {dimension_numbers = #tpu.dot_dimension_numbers<[1], [0], [0], [1], [0, 0, 1, 1], [], []>} : vector<2x2xf32>, vector<2x8xf32>, vector<2x8xf32> -> vector<2x8xf32>
    %105 = tpu.reciprocal %103 {approx = true} : vector<2x1xf32> -> vector<2x1xf32>
    %106 = vector.broadcast %105 : vector<2x1xf32> to vector<2x8xf32>
    %107 = arith.mulf %104, %106 : vector<2x8xf32>
    %c0_35 = arith.constant 0 : index
    %c24 = arith.constant 24 : index
    %108 = vector.load %arg16[%c0_35, %c24] : memref<4x32xf32, #tpu.memory_space<vmem>>, vector<2x8xf32>
    tpu.vector_store %arg16[%c0_35, %c24], %107 {strides = array<i32>} : memref<4x32xf32, #tpu.memory_space<vmem>>, vector<2x8xf32>,
    %109 = vector.extract_strided_slice %35 {offsets = [2, 0], sizes = [2, 32], strides = [1, 1]} : vector<4x32xf32> to vector<2x32xf32>
    %110 = vector.extract_strided_slice %36 {offsets = [2, 0], sizes = [2, 32], strides = [1, 1]} : vector<4x32xf32> to vector<2x32xf32>
    %111 = vector.extract_strided_slice %37 {offsets = [2, 0], sizes = [2, 32], strides = [1, 1]} : vector<4x32xf32> to vector<2x32xf32>
    %112 = vector.extract_strided_slice %109 {offsets = [0, 0], sizes = [2, 8], strides = [1, 1]} : vector<2x32xf32> to vector<2x8xf32>
    %113 = vector.extract_strided_slice %110 {offsets = [0, 0], sizes = [2, 8], strides = [1, 1]} : vector<2x32xf32> to vector<2x8xf32>
    %114 = vector.extract_strided_slice %111 {offsets = [0, 0], sizes = [2, 8], strides = [1, 1]} : vector<2x32xf32> to vector<2x8xf32>
    %115 = tpu.transpose %113, [1, 0] : vector<2x8xf32> -> vector<8x2xf32>
    %cst_36 = arith.constant dense<0.000000e+00> : vector<2x2xf32>
    %116 = tpu.matmul %112, %115, %cst_36 {dimension_numbers = #tpu.dot_dimension_numbers<[1], [0], [0], [1], [0, 0, 1, 1], [], []>} : vector<2x8xf32>, vector<8x2xf32>, vector<2x2xf32> -> vector<2x2xf32>
    %cst_37 = arith.constant dense<0xFF800000> : vector<2xf32>
    %117 = vector.multi_reduction <maximumf>, %116, %cst_37 [1] : vector<2x2xf32> to vector<2xf32>
    %118 = vector.shape_cast %117 : vector<2xf32> to vector<2x1xf32>
    %119 = vector.broadcast %118 : vector<2x1xf32> to vector<2x2xf32>
    %120 = arith.subf %116, %119 : vector<2x2xf32>
    %121 = math.exp %120 : vector<2x2xf32>
    %cst_38 = arith.constant dense<0.000000e+00> : vector<2xf32>
    %122 = vector.multi_reduction <add>, %121, %cst_38 [1] : vector<2x2xf32> to vector<2xf32>
    %123 = vector.shape_cast %122 : vector<2xf32> to vector<2x1xf32>
    %cst_39 = arith.constant dense<0.000000e+00> : vector<2x8xf32>
    %124 = tpu.matmul %121, %114, %cst_39 {dimension_numbers = #tpu.dot_dimension_numbers<[1], [0], [0], [1], [0, 0, 1, 1], [], []>} : vector<2x2xf32>, vector<2x8xf32>, vector<2x8xf32> -> vector<2x8xf32>
    %125 = tpu.reciprocal %123 {approx = true} : vector<2x1xf32> -> vector<2x1xf32>
    %126 = vector.broadcast %125 : vector<2x1xf32> to vector<2x8xf32>
    %127 = arith.mulf %124, %126 : vector<2x8xf32>
    %c2 = arith.constant 2 : index
    %c0_40 = arith.constant 0 : index
    %128 = vector.load %arg16[%c2, %c0_40] : memref<4x32xf32, #tpu.memory_space<vmem>>, vector<2x8xf32>
    tpu.vector_store %arg16[%c2, %c0_40], %127 {strides = array<i32>} : memref<4x32xf32, #tpu.memory_space<vmem>>, vector<2x8xf32>,
    %129 = vector.extract_strided_slice %109 {offsets = [0, 8], sizes = [2, 8], strides = [1, 1]} : vector<2x32xf32> to vector<2x8xf32>
    %130 = vector.extract_strided_slice %110 {offsets = [0, 8], sizes = [2, 8], strides = [1, 1]} : vector<2x32xf32> to vector<2x8xf32>
    %131 = vector.extract_strided_slice %111 {offsets = [0, 8], sizes = [2, 8], strides = [1, 1]} : vector<2x32xf32> to vector<2x8xf32>
    %132 = tpu.transpose %130, [1, 0] : vector<2x8xf32> -> vector<8x2xf32>
    %cst_41 = arith.constant dense<0.000000e+00> : vector<2x2xf32>
    %133 = tpu.matmul %129, %132, %cst_41 {dimension_numbers = #tpu.dot_dimension_numbers<[1], [0], [0], [1], [0, 0, 1, 1], [], []>} : vector<2x8xf32>, vector<8x2xf32>, vector<2x2xf32> -> vector<2x2xf32>
    %cst_42 = arith.constant dense<0xFF800000> : vector<2xf32>
    %134 = vector.multi_reduction <maximumf>, %133, %cst_42 [1] : vector<2x2xf32> to vector<2xf32>
    %135 = vector.shape_cast %134 : vector<2xf32> to vector<2x1xf32>
    %136 = vector.broadcast %135 : vector<2x1xf32> to vector<2x2xf32>
    %137 = arith.subf %133, %136 : vector<2x2xf32>
    %138 = math.exp %137 : vector<2x2xf32>
    %cst_43 = arith.constant dense<0.000000e+00> : vector<2xf32>
    %139 = vector.multi_reduction <add>, %138, %cst_43 [1] : vector<2x2xf32> to vector<2xf32>
    %140 = vector.shape_cast %139 : vector<2xf32> to vector<2x1xf32>
    %cst_44 = arith.constant dense<0.000000e+00> : vector<2x8xf32>
    %141 = tpu.matmul %138, %131, %cst_44 {dimension_numbers = #tpu.dot_dimension_numbers<[1], [0], [0], [1], [0, 0, 1, 1], [], []>} : vector<2x2xf32>, vector<2x8xf32>, vector<2x8xf32> -> vector<2x8xf32>
    %142 = tpu.reciprocal %140 {approx = true} : vector<2x1xf32> -> vector<2x1xf32>
    %143 = vector.broadcast %142 : vector<2x1xf32> to vector<2x8xf32>
    %144 = arith.mulf %141, %143 : vector<2x8xf32>
    %c2_45 = arith.constant 2 : index
    %c8_46 = arith.constant 8 : index
    %145 = vector.load %arg16[%c2_45, %c8_46] : memref<4x32xf32, #tpu.memory_space<vmem>>, vector<2x8xf32>
    tpu.vector_store %arg16[%c2_45, %c8_46], %144 {strides = array<i32>} : memref<4x32xf32, #tpu.memory_space<vmem>>, vector<2x8xf32>,
    %146 = vector.extract_strided_slice %109 {offsets = [0, 16], sizes = [2, 8], strides = [1, 1]} : vector<2x32xf32> to vector<2x8xf32>
    %147 = vector.extract_strided_slice %110 {offsets = [0, 16], sizes = [2, 8], strides = [1, 1]} : vector<2x32xf32> to vector<2x8xf32>
    %148 = vector.extract_strided_slice %111 {offsets = [0, 16], sizes = [2, 8], strides = [1, 1]} : vector<2x32xf32> to vector<2x8xf32>
    %149 = tpu.transpose %147, [1, 0] : vector<2x8xf32> -> vector<8x2xf32>
    %cst_47 = arith.constant dense<0.000000e+00> : vector<2x2xf32>
    %150 = tpu.matmul %146, %149, %cst_47 {dimension_numbers = #tpu.dot_dimension_numbers<[1], [0], [0], [1], [0, 0, 1, 1], [], []>} : vector<2x8xf32>, vector<8x2xf32>, vector<2x2xf32> -> vector<2x2xf32>
    %cst_48 = arith.constant dense<0xFF800000> : vector<2xf32>
    %151 = vector.multi_reduction <maximumf>, %150, %cst_48 [1] : vector<2x2xf32> to vector<2xf32>
    %152 = vector.shape_cast %151 : vector<2xf32> to vector<2x1xf32>
    %153 = vector.broadcast %152 : vector<2x1xf32> to vector<2x2xf32>
    %154 = arith.subf %150, %153 : vector<2x2xf32>
    %155 = math.exp %154 : vector<2x2xf32>
    %cst_49 = arith.constant dense<0.000000e+00> : vector<2xf32>
    %156 = vector.multi_reduction <add>, %155, %cst_49 [1] : vector<2x2xf32> to vector<2xf32>
    %157 = vector.shape_cast %156 : vector<2xf32> to vector<2x1xf32>
    %cst_50 = arith.constant dense<0.000000e+00> : vector<2x8xf32>
    %158 = tpu.matmul %155, %148, %cst_50 {dimension_numbers = #tpu.dot_dimension_numbers<[1], [0], [0], [1], [0, 0, 1, 1], [], []>} : vector<2x2xf32>, vector<2x8xf32>, vector<2x8xf32> -> vector<2x8xf32>
    %159 = tpu.reciprocal %157 {approx = true} : vector<2x1xf32> -> vector<2x1xf32>
    %160 = vector.broadcast %159 : vector<2x1xf32> to vector<2x8xf32>
    %161 = arith.mulf %158, %160 : vector<2x8xf32>
    %c2_51 = arith.constant 2 : index
    %c16_52 = arith.constant 16 : index
    %162 = vector.load %arg16[%c2_51, %c16_52] : memref<4x32xf32, #tpu.memory_space<vmem>>, vector<2x8xf32>
    tpu.vector_store %arg16[%c2_51, %c16_52], %161 {strides = array<i32>} : memref<4x32xf32, #tpu.memory_space<vmem>>, vector<2x8xf32>,
    %163 = vector.extract_strided_slice %109 {offsets = [0, 24], sizes = [2, 8], strides = [1, 1]} : vector<2x32xf32> to vector<2x8xf32>
    %164 = vector.extract_strided_slice %110 {offsets = [0, 24], sizes = [2, 8], strides = [1, 1]} : vector<2x32xf32> to vector<2x8xf32>
    %165 = vector.extract_strided_slice %111 {offsets = [0, 24], sizes = [2, 8], strides = [1, 1]} : vector<2x32xf32> to vector<2x8xf32>
    %166 = tpu.transpose %164, [1, 0] : vector<2x8xf32> -> vector<8x2xf32>
    %cst_53 = arith.constant dense<0.000000e+00> : vector<2x2xf32>
    %167 = tpu.matmul %163, %166, %cst_53 {dimension_numbers = #tpu.dot_dimension_numbers<[1], [0], [0], [1], [0, 0, 1, 1], [], []>} : vector<2x8xf32>, vector<8x2xf32>, vector<2x2xf32> -> vector<2x2xf32>
    %cst_54 = arith.constant dense<0xFF800000> : vector<2xf32>
    %168 = vector.multi_reduction <maximumf>, %167, %cst_54 [1] : vector<2x2xf32> to vector<2xf32>
    %169 = vector.shape_cast %168 : vector<2xf32> to vector<2x1xf32>
    %170 = vector.broadcast %169 : vector<2x1xf32> to vector<2x2xf32>
    %171 = arith.subf %167, %170 : vector<2x2xf32>
    %172 = math.exp %171 : vector<2x2xf32>
    %cst_55 = arith.constant dense<0.000000e+00> : vector<2xf32>
    %173 = vector.multi_reduction <add>, %172, %cst_55 [1] : vector<2x2xf32> to vector<2xf32>
    %174 = vector.shape_cast %173 : vector<2xf32> to vector<2x1xf32>
    %cst_56 = arith.constant dense<0.000000e+00> : vector<2x8xf32>
    %175 = tpu.matmul %172, %165, %cst_56 {dimension_numbers = #tpu.dot_dimension_numbers<[1], [0], [0], [1], [0, 0, 1, 1], [], []>} : vector<2x2xf32>, vector<2x8xf32>, vector<2x8xf32> -> vector<2x8xf32>
    %176 = tpu.reciprocal %174 {approx = true} : vector<2x1xf32> -> vector<2x1xf32>
    %177 = vector.broadcast %176 : vector<2x1xf32> to vector<2x8xf32>
    %178 = arith.mulf %175, %177 : vector<2x8xf32>
    %c2_57 = arith.constant 2 : index
    %c24_58 = arith.constant 24 : index
    %179 = vector.load %arg16[%c2_57, %c24_58] : memref<4x32xf32, #tpu.memory_space<vmem>>, vector<2x8xf32>
    tpu.vector_store %arg16[%c2_57, %c24_58], %178 {strides = array<i32>} : memref<4x32xf32, #tpu.memory_space<vmem>>, vector<2x8xf32>,
    %c0_59 = arith.constant 0 : index
    %c0_60 = arith.constant 0 : index
    %180 = vector.load %arg16[%c0_59, %c0_60] : memref<4x32xf32, #tpu.memory_space<vmem>>, vector<4x32xf32>
    %181 = arith.truncf %180 : vector<4x32xf32> to vector<4x32xbf16>
    %c0_61 = arith.constant 0 : index
    %c0_62 = arith.constant 0 : index
    %182 = vector.load %arg6[%c0_61, %c0_62] : memref<32x32xbf16, #tpu.memory_space<vmem>>, vector<32x32xbf16>
    %cst_63 = arith.constant dense<0.000000e+00> : vector<4x32xf32>
    %183 = tpu.matmul %181, %182, %cst_63 {dimension_numbers = #tpu.dot_dimension_numbers<[1], [0], [0], [1], [0, 0, 1, 1], [], []>} : vector<4x32xbf16>, vector<32x32xbf16>, vector<4x32xf32> -> vector<4x32xf32>
    %c0_64 = arith.constant 0 : index
    %c0_65 = arith.constant 0 : index
    %184 = vector.load %arg7[%c0_64, %c0_65] : memref<1x32xf32, #tpu.memory_space<vmem>>, vector<1x32xf32>
    %185 = vector.broadcast %184 : vector<1x32xf32> to vector<4x32xf32>
    %186 = arith.addf %183, %185 : vector<4x32xf32>
    %c0_66 = arith.constant 0 : index
    %c0_67 = arith.constant 0 : index
    %187 = vector.load %arg14[%c0_66, %c0_67] : memref<2x32xf32, #tpu.memory_space<vmem>>, vector<2x32xf32>
    %cst_68 = arith.constant 0.000000e+00 : f32
    %188 = vector.broadcast %cst_68 : f32 to vector<2x32xf32>
    %189 = arith.subf %188, %187 : vector<2x32xf32>
    %190 = math.exp %189 : vector<2x32xf32>
    %cst_69 = arith.constant 1.000000e+00 : f32
    %191 = vector.broadcast %cst_69 : f32 to vector<2x32xf32>
    %192 = arith.addf %191, %190 : vector<2x32xf32>
    %cst_70 = arith.constant 1.000000e+00 : f32
    %193 = vector.broadcast %cst_70 : f32 to vector<2x32xf32>
    %194 = arith.divf %193, %192 : vector<2x32xf32>
    %195 = vector.extract_strided_slice %194 {offsets = [0, 0], sizes = [1, 32], strides = [1, 1]} : vector<2x32xf32> to vector<1x32xf32>
    %196 = vector.broadcast %195 : vector<1x32xf32> to vector<4x32xf32>
    %197 = arith.mulf %196, %186 : vector<4x32xf32>
    %198 = arith.addf %0, %197 : vector<4x32xf32>
    %cst_71 = arith.constant dense<0.000000e+00> : vector<4xf32>
    %199 = vector.multi_reduction <add>, %198, %cst_71 [1] : vector<4x32xf32> to vector<4xf32>
    %200 = vector.shape_cast %199 : vector<4xf32> to vector<4x1xf32>
    %cst_72 = arith.constant 3.200000e+01 : f32
    %201 = vector.broadcast %cst_72 : f32 to vector<4x1xf32>
    %202 = arith.divf %200, %201 : vector<4x1xf32>
    %203 = vector.broadcast %202 : vector<4x1xf32> to vector<4x32xf32>
    %204 = arith.subf %198, %203 : vector<4x32xf32>
    %205 = vector.broadcast %202 : vector<4x1xf32> to vector<4x32xf32>
    %206 = arith.subf %198, %205 : vector<4x32xf32>
    %207 = arith.mulf %204, %206 : vector<4x32xf32>
    %cst_73 = arith.constant dense<0.000000e+00> : vector<4xf32>
    %208 = vector.multi_reduction <add>, %207, %cst_73 [1] : vector<4x32xf32> to vector<4xf32>
    %209 = vector.shape_cast %208 : vector<4xf32> to vector<4x1xf32>
    %cst_74 = arith.constant 3.200000e+01 : f32
    %210 = vector.broadcast %cst_74 : f32 to vector<4x1xf32>
    %211 = arith.divf %209, %210 : vector<4x1xf32>
    %212 = vector.broadcast %202 : vector<4x1xf32> to vector<4x32xf32>
    %213 = arith.subf %198, %212 : vector<4x32xf32>
    %cst_75 = arith.constant 9.99999974E-6 : f32
    %214 = vector.broadcast %cst_75 : f32 to vector<4x1xf32>
    %215 = arith.addf %211, %214 : vector<4x1xf32>
    %216 = math.rsqrt %215 : vector<4x1xf32>
    %217 = vector.broadcast %216 : vector<4x1xf32> to vector<4x32xf32>
    %218 = arith.mulf %213, %217 : vector<4x32xf32>
    %c0_76 = arith.constant 0 : index
    %c0_77 = arith.constant 0 : index
    %219 = vector.load %arg8[%c0_76, %c0_77] : memref<1x32xf32, #tpu.memory_space<vmem>>, vector<1x32xf32>
    %220 = vector.broadcast %219 : vector<1x32xf32> to vector<4x32xf32>
    %221 = arith.mulf %218, %220 : vector<4x32xf32>
    %c0_78 = arith.constant 0 : index
    %c0_79 = arith.constant 0 : index
    %222 = vector.load %arg9[%c0_78, %c0_79] : memref<1x32xf32, #tpu.memory_space<vmem>>, vector<1x32xf32>
    %223 = vector.broadcast %222 : vector<1x32xf32> to vector<4x32xf32>
    %224 = arith.addf %221, %223 : vector<4x32xf32>
    %225 = arith.truncf %224 : vector<4x32xf32> to vector<4x32xbf16>
    %c0_80 = arith.constant 0 : index
    %c0_81 = arith.constant 0 : index
    %226 = vector.load %arg10[%c0_80, %c0_81] : memref<32x32xbf16, #tpu.memory_space<vmem>>, vector<32x32xbf16>
    %cst_82 = arith.constant dense<0.000000e+00> : vector<4x32xf32>
    %227 = tpu.matmul %225, %226, %cst_82 {dimension_numbers = #tpu.dot_dimension_numbers<[1], [0], [0], [1], [0, 0, 1, 1], [], []>} : vector<4x32xbf16>, vector<32x32xbf16>, vector<4x32xf32> -> vector<4x32xf32>
    %c0_83 = arith.constant 0 : index
    %c0_84 = arith.constant 0 : index
    %228 = vector.load %arg11[%c0_83, %c0_84] : memref<1x32xf32, #tpu.memory_space<vmem>>, vector<1x32xf32>
    %229 = vector.broadcast %228 : vector<1x32xf32> to vector<4x32xf32>
    %230 = arith.addf %227, %229 : vector<4x32xf32>
    %cst_85 = arith.constant 0.000000e+00 : f32
    %231 = vector.broadcast %cst_85 : f32 to vector<4x32xf32>
    %232 = arith.maximumf %230, %231 : vector<4x32xf32>
    %233 = arith.truncf %232 : vector<4x32xf32> to vector<4x32xbf16>
    %c0_86 = arith.constant 0 : index
    %c0_87 = arith.constant 0 : index
    %234 = vector.load %arg12[%c0_86, %c0_87] : memref<32x32xbf16, #tpu.memory_space<vmem>>, vector<32x32xbf16>
    %cst_88 = arith.constant dense<0.000000e+00> : vector<4x32xf32>
    %235 = tpu.matmul %233, %234, %cst_88 {dimension_numbers = #tpu.dot_dimension_numbers<[1], [0], [0], [1], [0, 0, 1, 1], [], []>} : vector<4x32xbf16>, vector<32x32xbf16>, vector<4x32xf32> -> vector<4x32xf32>
    %c0_89 = arith.constant 0 : index
    %c0_90 = arith.constant 0 : index
    %236 = vector.load %arg13[%c0_89, %c0_90] : memref<1x32xf32, #tpu.memory_space<vmem>>, vector<1x32xf32>
    %237 = vector.broadcast %236 : vector<1x32xf32> to vector<4x32xf32>
    %238 = arith.addf %235, %237 : vector<4x32xf32>
    %239 = vector.extract_strided_slice %194 {offsets = [1, 0], sizes = [1, 32], strides = [1, 1]} : vector<2x32xf32> to vector<1x32xf32>
    %240 = vector.broadcast %239 : vector<1x32xf32> to vector<4x32xf32>
    %241 = arith.mulf %240, %238 : vector<4x32xf32>
    %242 = arith.addf %198, %241 : vector<4x32xf32>
    %c0_91 = arith.constant 0 : index
    %c0_92 = arith.constant 0 : index
    %243 = vector.load %arg15[%c0_91, %c0_92] : memref<4x32xf32, #tpu.memory_space<vmem>>, vector<4x32xf32>
    tpu.vector_store %arg15[%c0_91, %c0_92], %242 {strides = array<i32>} : memref<4x32xf32, #tpu.memory_space<vmem>>, vector<4x32xf32>,
    return
  }
  func.func @transform_0(%arg0: i32) -> (i32, i32) {
    %c0_i32 = arith.constant 0 : i32
    %c0_i32_0 = arith.constant 0 : i32
    %c0_i32_1 = arith.constant 0 : i32
    return %c0_i32, %c0_i32_0 : i32, i32
  }
  func.func @transform_1(%arg0: i32) -> (i32, i32) {
    %c0_i32 = arith.constant 0 : i32
    %c0_i32_0 = arith.constant 0 : i32
    %c0_i32_1 = arith.constant 0 : i32
    return %c0_i32, %c0_i32_0 : i32, i32
  }
  func.func @transform_2(%arg0: i32) -> (i32, i32) {
    %c0_i32 = arith.constant 0 : i32
    %c0_i32_0 = arith.constant 0 : i32
    %c0_i32_1 = arith.constant 0 : i32
    return %c0_i32, %c0_i32_0 : i32, i32
  }
  func.func @transform_3(%arg0: i32) -> (i32, i32) {
    %c0_i32 = arith.constant 0 : i32
    %c0_i32_0 = arith.constant 0 : i32
    %c0_i32_1 = arith.constant 0 : i32
    return %c0_i32, %c0_i32_0 : i32, i32
  }
  func.func @transform_4(%arg0: i32) -> (i32, i32) {
    %c0_i32 = arith.constant 0 : i32
    %c0_i32_0 = arith.constant 0 : i32
    %c0_i32_1 = arith.constant 0 : i32
    return %c0_i32, %c0_i32_0 : i32, i32
  }
  func.func @transform_5(%arg0: i32) -> (i32, i32) {
    %c0_i32 = arith.constant 0 : i32
    %c0_i32_0 = arith.constant 0 : i32
    %c0_i32_1 = arith.constant 0 : i32
    return %c0_i32, %c0_i32_0 : i32, i32
  }
  func.func @transform_6(%arg0: i32) -> (i32, i32) {
    %c0_i32 = arith.constant 0 : i32
    %c0_i32_0 = arith.constant 0 : i32
    %c0_i32_1 = arith.constant 0 : i32
    return %c0_i32, %c0_i32_0 : i32, i32
  }
  func.func @transform_7(%arg0: i32) -> (i32, i32) {
    %c0_i32 = arith.constant 0 : i32
    %c0_i32_0 = arith.constant 0 : i32
    %c0_i32_1 = arith.constant 0 : i32
    return %c0_i32, %c0_i32_0 : i32, i32
  }
  func.func @transform_8(%arg0: i32) -> (i32, i32) {
    %c0_i32 = arith.constant 0 : i32
    %c0_i32_0 = arith.constant 0 : i32
    %c0_i32_1 = arith.constant 0 : i32
    return %c0_i32, %c0_i32_0 : i32, i32
  }
  func.func @transform_9(%arg0: i32) -> (i32, i32) {
    %c0_i32 = arith.constant 0 : i32
    %c0_i32_0 = arith.constant 0 : i32
    %c0_i32_1 = arith.constant 0 : i32
    return %c0_i32, %c0_i32_0 : i32, i32
  }
  func.func @transform_10(%arg0: i32) -> (i32, i32) {
    %c0_i32 = arith.constant 0 : i32
    %c0_i32_0 = arith.constant 0 : i32
    %c0_i32_1 = arith.constant 0 : i32
    return %c0_i32, %c0_i32_0 : i32, i32
  }
  func.func @transform_11(%arg0: i32) -> (i32, i32) {
    %c0_i32 = arith.constant 0 : i32
    %c0_i32_0 = arith.constant 0 : i32
    %c0_i32_1 = arith.constant 0 : i32
    return %c0_i32, %c0_i32_0 : i32, i32
  }
  func.func @transform_12(%arg0: i32) -> (i32, i32) {
    %c0_i32 = arith.constant 0 : i32
    %c0_i32_0 = arith.constant 0 : i32
    %c0_i32_1 = arith.constant 0 : i32
    return %c0_i32, %c0_i32_0 : i32, i32
  }
  func.func @transform_13(%arg0: i32) -> (i32, i32) {
    %c0_i32 = arith.constant 0 : i32
    %c0_i32_0 = arith.constant 0 : i32
    %c0_i32_1 = arith.constant 0 : i32
    return %c0_i32, %c0_i32_0 : i32, i32
  }
  func.func @transform_14(%arg0: i32) -> (i32, i32) {
    %c0_i32 = arith.constant 0 : i32
    %c0_i32_0 = arith.constant 0 : i32
    %c0_i32_1 = arith.constant 0 : i32
    return %c0_i32, %c0_i32_0 : i32, i32
  }
}

</mosaic_0001>

<bundles_post_ra>
// kernel: gtrxl_policy_forward.7
= control target key start
LH: loop header
LB: loop body
LE: loop exit
PB: predicated region body
PF: predicated region fallthrough
CT: control target
= control target key end

     0   :  { %v625_v0 = vmov 0.0   ;;  %vm626_vm0 = vmmov 0   ;;  %vm116_vm1 = vcmask 523264   ;;  %vm421_vm2 = vcmask 261120   ;;  %s1062_s1 = inlined_call_operand.vmem [shape: bf16[64,32], index: 1, kind: input, shape index: {}]   ;;  %s1063_s0 = inlined_call_operand.vmem [shape: f32[324,64], index: 0, kind: input, shape index: {}]   ;;  %s1064_s2 = inlined_call_operand.vmem [shape: f32[1,32], index: 2, kind: input, shape index: {}]   ;;  %s1065_s3 = inlined_call_operand.vmem [shape: f32[324,32], index: 3, kind: output, shape index: {}]  }
   0x1   :  { %519 = vmatprep.subr.bf16.mxu0 %v625_v0  ;;  %v621_v1 = vld [vmem:[%s1062_s1 + $0x18] sm:$0xff]   ;;  %611 = vmatprep.subr.bf16.mxu1 %v625_v0  ;;  %v622_v2 = vld [vmem:[%s1062_s1 + $0x10] sm:$0xff]   ;;  %v623_v3 = vld [vmem:[%s1062_s1 + $0x8] sm:$0xff]   ;;  %vm462_vm3 = vcmask 257024  }
   0x2   :  { %527 = vmatprep.mubr.msk.bf16.mxu0 %vm626_vm0, %v625_v0  ;;  %571 = vmatprep.mubr.msk.bf16.mxu1 %vm626_vm0, %v625_v0  ;;  %v624_v4 = vld [vmem:[%s1062_s1] sm:$0xff]   ;;  %v16_v6 = vld [vmem:[%s1063_s0 + $0x8] sm:$0xff]  ;;  %v37_v7 = vld [vmem:[%s1063_s0 + $0xb0] sm:$0xff] }
   0x3   :  { %520 = vmatpush3.bf16.msra.mxu0 %v621_v1  ;;  %615 = vmatpush3.bf16.msra.mxu1 %v621_v1  ;;  %v15_v5 = vld [vmem:[%s1063_s0] sm:$0xff]  ;;  %v38_v8 = vld [vmem:[%s1063_s0 + $0xb8] sm:$0xff]  ;;  %v17_v11 = vld [vmem:[%s1063_s0 + $0x10] sm:$0xff] }
   0x4   :  { %521 = vmatprep.subr.bf16.mxu0 %v625_v0  ;;  %612 = vmatprep.subr.bf16.mxu1 %v625_v0  ;;  %v56_v9 = vpack.c.bf16 %v16_v6, %v15_v5  ;;  %v67_v10 = vpack.c.bf16 %v38_v8, %v37_v7  ;;  %v18_v12 = vld [vmem:[%s1063_s0 + $0x18] sm:$0xff]  ;;  %v39_v13 = vld [vmem:[%s1063_s0 + $0xc0] sm:$0xff]  ;;  %v40_v14 = vld [vmem:[%s1063_s0 + $0xc8] sm:$0xff] }
   0x5   :  { %v57_v15 = vpack.c.bf16 %v18_v12, %v17_v11  ;;  %v68_v16 = vpack.c.bf16 %v40_v14, %v39_v13  ;;  %v19_v17 = vld [vmem:[%s1063_s0 + $0x20] sm:$0xff]  ;;  %v20_v18 = vld [vmem:[%s1063_s0 + $0x28] sm:$0xff]  ;;  %v41_v19 = vld [vmem:[%s1063_s0 + $0xd0] sm:$0xff] }
   0x6   :  { %v42_v20 = vld [vmem:[%s1063_s0 + $0xd8] sm:$0xff]  ;;  %v58_v21 = vpack.c.bf16 %v20_v18, %v19_v17  ;;  %v21_v23 = vld [vmem:[%s1063_s0 + $0x30] sm:$0xff]  ;;  %v43_v25 = vld [vmem:[%s1063_s0 + $0xe0] sm:$0xff] }
   0x7   :  { %522 = vmatpush3.bf16.msra.mxu0 %v622_v2  ;;  %616 = vmatpush3.bf16.msra.mxu1 %v622_v2  ;;  %v69_v22 = vpack.c.bf16 %v42_v20, %v41_v19  ;;  %v22_v24 = vld [vmem:[%s1063_s0 + $0x38] sm:$0xff]  ;;  %v44_v26 = vld [vmem:[%s1063_s0 + $0xe8] sm:$0xff]  ;;  %v23_v29 = vld [vmem:[%s1063_s0 + $0x40] sm:$0xff] }
   0x8   :  { %523 = vmatprep.subr.bf16.mxu0 %v625_v0  ;;  %613 = vmatprep.subr.bf16.mxu1 %v625_v0  ;;  %v59_v27 = vpack.c.bf16 %v22_v24, %v21_v23  ;;  %v70_v28 = vpack.c.bf16 %v44_v26, %v43_v25  ;;  %v24_v30 = vld [vmem:[%s1063_s0 + $0x48] sm:$0xff]  ;;  %v45_v31 = vld [vmem:[%s1063_s0 + $0xf0] sm:$0xff]  ;;  %v46_v32 = vld [vmem:[%s1063_s0 + $0xf8] sm:$0xff] }
   0x9   :  { %v60_v33 = vpack.c.bf16 %v24_v30, %v23_v29  ;;  %v71_v34 = vpack.c.bf16 %v46_v32, %v45_v31  ;;  %v25_v35 = vld [vmem:[%s1063_s0 + $0x50] sm:$0xff]  ;;  %v26_v36 = vld [vmem:[%s1063_s0 + $0x58] sm:$0xff]  ;;  %v47_v37 = vld [vmem:[%s1063_s0 + $0x100] sm:$0xff] }
   0xa   :  { %v48_v38 = vld [vmem:[%s1063_s0 + $0x108] sm:$0xff]  ;;  %v61_v39 = vpack.c.bf16 %v26_v36, %v25_v35  ;;  %v27_v41 = vld [vmem:[%s1063_s0 + $0x60] sm:$0xff]  ;;  %v49_v43 = vld [vmem:[%s1063_s0 + $0x110] sm:$0xff] }
   0xb   :  { %524 = vmatpush3.bf16.msra.mxu0 %v623_v3  ;;  %617 = vmatpush3.bf16.msra.mxu1 %v623_v3  ;;  %v72_v40 = vpack.c.bf16 %v48_v38, %v47_v37  ;;  %v28_v42 = vld [vmem:[%s1063_s0 + $0x68] sm:$0xff]  ;;  %v50_v44 = vld [vmem:[%s1063_s0 + $0x118] sm:$0xff]  ;;  %v29_v47 = vld [vmem:[%s1063_s0 + $0x70] sm:$0xff] }
   0xc   :  { %525 = vmatprep.subr.bf16.mxu0 %v625_v0  ;;  %614 = vmatprep.subr.bf16.mxu1 %v625_v0  ;;  %v62_v45 = vpack.c.bf16 %v28_v42, %v27_v41  ;;  %v73_v46 = vpack.c.bf16 %v50_v44, %v49_v43  ;;  %v30_v48 = vld [vmem:[%s1063_s0 + $0x78] sm:$0xff]  ;;  %v51_v49 = vld [vmem:[%s1063_s0 + $0x120] sm:$0xff]  ;;  %v52_v50 = vld [vmem:[%s1063_s0 + $0x128] sm:$0xff] }
   0xd   :  { %v63_v51 = vpack.c.bf16 %v30_v48, %v29_v47  ;;  %v74_v52 = vpack.c.bf16 %v52_v50, %v51_v49  ;;  %v31_v53 = vld [vmem:[%s1063_s0 + $0x80] sm:$0xff]  ;;  %v32_v54 = vld [vmem:[%s1063_s0 + $0x88] sm:$0xff]  ;;  %v53_v55 = vld [vmem:[%s1063_s0 + $0x130] sm:$0xff] }
   0xe   :  { %v54_v56 = vld [vmem:[%s1063_s0 + $0x138] sm:$0xff]  ;;  %v64_v57 = vpack.c.bf16 %v32_v54, %v31_v53  ;;  %v33_v59 = vld [vmem:[%s1063_s0 + $0x90] sm:$0xff]  ;;  %v55_v61 = vld [vmem:[%s1063_s0 + $0x140] sm:$0xf] }
   0xf   :  { %526 = vmatpush3.bf16.msra.mxu0 %v624_v4  ;;  %618 = vmatpush3.bf16.msra.mxu1 %v624_v4  ;;  %v75_v58 = vpack.c.bf16 %v54_v56, %v53_v55  ;;  %v34_v60 = vld [vmem:[%s1063_s0 + $0x98] sm:$0xff]  ;;  %v76_v63 = vpack.c.bf16 %v55_v61, %v55_v61  ;;  %v35_v1 = vld [vmem:[%s1063_s0 + $0xa0] sm:$0xff]  ;;  %v36_v2 = vld [vmem:[%s1063_s0 + $0xa8] sm:$0xff] }
  0x10   :  { %v65_v62 = vpack.c.bf16 %v34_v60, %v33_v59  ;;  %v66_v3 = vpack.c.bf16 %v36_v2, %v35_v1  ;;  %v856_v4 = vld [vmem:[%s1064_s2] ss:$0 sm:$0xff] }
  0x12   :  { %528 = vmatmul.mubr.msk.bf16.vlgmr.msra.gmra.mxu0 %vm116_vm1, %v56_v9  ;;  %572 = vmatmul.mubr.msk.bf16.vlgmr.msra.gmra.mxu1 %vm116_vm1, %v67_v10 }
  0x13   :  { %531 = vmatprep.mubr.msk.bf16.mxu0 %vm626_vm0, %v625_v0  ;;  %575 = vmatprep.mubr.msk.bf16.mxu1 %vm626_vm0, %v625_v0 }
  0x1a   :  { %532 = vmatmul.mubr.msk.bf16.gmra.mxu0 %vm116_vm1, %v57_v15  ;;  %576 = vmatmul.mubr.msk.bf16.gmra.mxu1 %vm116_vm1, %v68_v16 }
  0x1b   :  { %535 = vmatprep.mubr.msk.bf16.mxu0 %vm626_vm0, %v625_v0  ;;  %579 = vmatprep.mubr.msk.bf16.mxu1 %vm626_vm0, %v625_v0 }
  0x22   :  { %536 = vmatmul.mubr.msk.bf16.gmra.mxu0 %vm116_vm1, %v58_v21  ;;  %580 = vmatmul.mubr.msk.bf16.gmra.mxu1 %vm116_vm1, %v69_v22 }
  0x23   :  { %539 = vmatprep.mubr.msk.bf16.mxu0 %vm626_vm0, %v625_v0  ;;  %583 = vmatprep.mubr.msk.bf16.mxu1 %vm626_vm0, %v625_v0 }
  0x2a   :  { %540 = vmatmul.mubr.msk.bf16.gmra.mxu0 %vm116_vm1, %v59_v27  ;;  %584 = vmatmul.mubr.msk.bf16.gmra.mxu1 %vm116_vm1, %v70_v28 }
  0x2b   :  { %543 = vmatprep.mubr.msk.bf16.mxu0 %vm626_vm0, %v625_v0  ;;  %587 = vmatprep.mubr.msk.bf16.mxu1 %vm626_vm0, %v625_v0 }
  0x32   :  { %544 = vmatmul.mubr.msk.bf16.gmra.mxu0 %vm116_vm1, %v60_v33  ;;  %588 = vmatmul.mubr.msk.bf16.gmra.mxu1 %vm116_vm1, %v71_v34 }
  0x33   :  { %547 = vmatprep.mubr.msk.bf16.mxu0 %vm626_vm0, %v625_v0  ;;  %591 = vmatprep.mubr.msk.bf16.mxu1 %vm626_vm0, %v625_v0 }
  0x3a   :  { %548 = vmatmul.mubr.msk.bf16.gmra.mxu0 %vm116_vm1, %v61_v39  ;;  %592 = vmatmul.mubr.msk.bf16.gmra.mxu1 %vm116_vm1, %v72_v40 }
  0x3b   :  { %551 = vmatprep.mubr.msk.bf16.mxu0 %vm626_vm0, %v625_v0  ;;  %595 = vmatprep.mubr.msk.bf16.mxu1 %vm626_vm0, %v625_v0 }
  0x42   :  { %552 = vmatmul.mubr.msk.bf16.gmra.mxu0 %vm116_vm1, %v62_v45  ;;  %596 = vmatmul.mubr.msk.bf16.gmra.mxu1 %vm116_vm1, %v73_v46 }
  0x43   :  { %555 = vmatprep.mubr.msk.bf16.mxu0 %vm626_vm0, %v625_v0  ;;  %599 = vmatprep.mubr.msk.bf16.mxu1 %vm626_vm0, %v625_v0 }
  0x4a   :  { %556 = vmatmul.mubr.msk.bf16.gmra.mxu0 %vm116_vm1, %v63_v51  ;;  %600 = vmatmul.mubr.msk.bf16.gmra.mxu1 %vm116_vm1, %v74_v52 }
  0x4b   :  { %559 = vmatprep.mubr.msk.bf16.mxu0 %vm626_vm0, %v625_v0  ;;  %603 = vmatprep.mubr.msk.bf16.mxu1 %vm626_vm0, %v625_v0 }
  0x52   :  { %560 = vmatmul.mubr.msk.bf16.gmra.mxu0 %vm116_vm1, %v64_v57  ;;  %604 = vmatmul.mubr.msk.bf16.gmra.mxu1 %vm116_vm1, %v75_v58 }
  0x53   :  { %563 = vmatprep.mubr.msk.bf16.mxu0 %vm626_vm0, %v625_v0  ;;  %607 = vmatprep.mubr.msk.bf16.mxu1 %vm626_vm0, %v625_v0 }
  0x5a   :  { %564 = vmatmul.mubr.msk.bf16.gmra.mxu0 %vm116_vm1, %v65_v62  ;;  %608 = vmatmul.mubr.msk.bf16.gmra.mxu1 %vm116_vm1, %v76_v63 }
  0x5b   :  { %567 = vmatprep.mubr.msk.bf16.mxu0 %vm626_vm0, %v625_v0 }
  0x62   :  { %568 = vmatmul.mubr.msk.bf16.gmra.mxu0 %vm116_vm1, %v66_v3 }
  0xd2   :  { %v214_v5 = vpop.f32.mrf.mxu0  ;;  %v302_v6 = vpop.f32.mrf.mxu1 }
  0xd3   :  { %v215_v0 = vadd.f32 %v856_v4, %v214_v5  ;;  %v303_v7 = vadd.f32 %v856_v4, %v302_v6 }
  0xd4   :  { %v529_v8 = vpop.f32.mrf.mxu0  ;;  %v573_v9 = vpop.f32.mrf.mxu1 }
  0xd5   :  { %v380_v10 = vmax.f32 %v215_v0, 0.0  ;;  %v402_v11 = vmax.f32 %v303_v7, 0.0 }
  0xd6   :  { %v217_v12 = vpop.f32.mrf.mxu0  ;;  %v305_v13 = vpop.f32.mrf.mxu1 }
  0xd7   :  { %422 = vst.msk [vmem:[%s1065_s3] sm:$0xff] %vm421_vm2, %v380_v10  ;;  %v218_v14 = vadd.f32 %v856_v4, %v217_v12  ;;  %444 = vst.msk [vmem:[%s1065_s3 + $0xb0] sm:$0xff] %vm421_vm2, %v402_v11  ;;  %v306_v15 = vadd.f32 %v856_v4, %v305_v13 }
  0xd8   :  { %v530_v16 = vpop.f32.mrf.mxu0  ;;  %v574_v17 = vpop.f32.mrf.mxu1 }
  0xd9   :  { %v381_v18 = vmax.f32 %v218_v14, 0.0  ;;  %v403_v19 = vmax.f32 %v306_v15, 0.0 }
  0xda   :  { %v222_v20 = vpop.f32.mrf.mxu0  ;;  %v310_v21 = vpop.f32.mrf.mxu1 }
  0xdb   :  { %423 = vst.msk [vmem:[%s1065_s3 + $0x8] sm:$0xff] %vm421_vm2, %v381_v18  ;;  %v223_v22 = vadd.f32 %v856_v4, %v222_v20  ;;  %445 = vst.msk [vmem:[%s1065_s3 + $0xb8] sm:$0xff] %vm421_vm2, %v403_v19  ;;  %v311_v23 = vadd.f32 %v856_v4, %v310_v21 }
  0xdc   :  { %v533_v24 = vpop.f32.mrf.mxu0  ;;  %v577_v25 = vpop.f32.mrf.mxu1 }
  0xdd   :  { %v382_v26 = vmax.f32 %v223_v22, 0.0  ;;  %v404_v27 = vmax.f32 %v311_v23, 0.0 }
  0xde   :  { %v225_v28 = vpop.f32.mrf.mxu0  ;;  %v313_v29 = vpop.f32.mrf.mxu1 }
  0xdf   :  { %424 = vst.msk [vmem:[%s1065_s3 + $0x10] sm:$0xff] %vm421_vm2, %v382_v26  ;;  %v226_v30 = vadd.f32 %v856_v4, %v225_v28  ;;  %446 = vst.msk [vmem:[%s1065_s3 + $0xc0] sm:$0xff] %vm421_vm2, %v404_v27  ;;  %v314_v31 = vadd.f32 %v856_v4, %v313_v29 }
  0xe0   :  { %v534_v32 = vpop.f32.mrf.mxu0  ;;  %v578_v33 = vpop.f32.mrf.mxu1 }
  0xe1   :  { %v383_v34 = vmax.f32 %v226_v30, 0.0  ;;  %v405_v35 = vmax.f32 %v314_v31, 0.0 }
  0xe2   :  { %v230_v36 = vpop.f32.mrf.mxu0  ;;  %v318_v37 = vpop.f32.mrf.mxu1 }
  0xe3   :  { %425 = vst.msk [vmem:[%s1065_s3 + $0x18] sm:$0xff] %vm421_vm2, %v383_v34  ;;  %v231_v38 = vadd.f32 %v856_v4, %v230_v36  ;;  %447 = vst.msk [vmem:[%s1065_s3 + $0xc8] sm:$0xff] %vm421_vm2, %v405_v35  ;;  %v319_v39 = vadd.f32 %v856_v4, %v318_v37 }
  0xe4   :  { %v537_v40 = vpop.f32.mrf.mxu0  ;;  %v581_v41 = vpop.f32.mrf.mxu1 }
  0xe5   :  { %v384_v42 = vmax.f32 %v231_v38, 0.0  ;;  %v406_v43 = vmax.f32 %v319_v39, 0.0 }
  0xe6   :  { %v233_v44 = vpop.f32.mrf.mxu0  ;;  %v321_v45 = vpop.f32.mrf.mxu1 }
  0xe7   :  { %426 = vst.msk [vmem:[%s1065_s3 + $0x20] sm:$0xff] %vm421_vm2, %v384_v42  ;;  %v234_v46 = vadd.f32 %v856_v4, %v233_v44  ;;  %448 = vst.msk [vmem:[%s1065_s3 + $0xd0] sm:$0xff] %vm421_vm2, %v406_v43  ;;  %v322_v47 = vadd.f32 %v856_v4, %v321_v45 }
  0xe8   :  { %v538_v48 = vpop.f32.mrf.mxu0  ;;  %v582_v49 = vpop.f32.mrf.mxu1 }
  0xe9   :  { %v385_v50 = vmax.f32 %v234_v46, 0.0  ;;  %v407_v51 = vmax.f32 %v322_v47, 0.0 }
  0xea   :  { %v238_v52 = vpop.f32.mrf.mxu0  ;;  %v326_v53 = vpop.f32.mrf.mxu1 }
  0xeb   :  { %427 = vst.msk [vmem:[%s1065_s3 + $0x28] sm:$0xff] %vm421_vm2, %v385_v50  ;;  %v239_v54 = vadd.f32 %v856_v4, %v238_v52  ;;  %449 = vst.msk [vmem:[%s1065_s3 + $0xd8] sm:$0xff] %vm421_vm2, %v407_v51  ;;  %v327_v55 = vadd.f32 %v856_v4, %v326_v53 }
  0xec   :  { %v541_v56 = vpop.f32.mrf.mxu0  ;;  %v585_v57 = vpop.f32.mrf.mxu1 }
  0xed   :  { %v386_v58 = vmax.f32 %v239_v54, 0.0  ;;  %v408_v59 = vmax.f32 %v327_v55, 0.0 }
  0xee   :  { %v241_v60 = vpop.f32.mrf.mxu0  ;;  %v329_v61 = vpop.f32.mrf.mxu1 }
  0xef   :  { %428 = vst.msk [vmem:[%s1065_s3 + $0x30] sm:$0xff] %vm421_vm2, %v386_v58  ;;  %v242_v62 = vadd.f32 %v856_v4, %v241_v60  ;;  %450 = vst.msk [vmem:[%s1065_s3 + $0xe0] sm:$0xff] %vm421_vm2, %v408_v59  ;;  %v330_v63 = vadd.f32 %v856_v4, %v329_v61 }
  0xf0   :  { %v542_v1 = vpop.f32.mrf.mxu0  ;;  %v586_v2 = vpop.f32.mrf.mxu1 }
  0xf1   :  { %v387_v3 = vmax.f32 %v242_v62, 0.0  ;;  %v409_v5 = vmax.f32 %v330_v63, 0.0 }
  0xf2   :  { %v246_v6 = vpop.f32.mrf.mxu0  ;;  %v334_v0 = vpop.f32.mrf.mxu1 }
  0xf3   :  { %429 = vst.msk [vmem:[%s1065_s3 + $0x38] sm:$0xff] %vm421_vm2, %v387_v3  ;;  %v247_v7 = vadd.f32 %v856_v4, %v246_v6  ;;  %451 = vst.msk [vmem:[%s1065_s3 + $0xe8] sm:$0xff] %vm421_vm2, %v409_v5  ;;  %v335_v8 = vadd.f32 %v856_v4, %v334_v0 }
  0xf4   :  { %v545_v9 = vpop.f32.mrf.mxu0  ;;  %v589_v10 = vpop.f32.mrf.mxu1 }
  0xf5   :  { %v388_v11 = vmax.f32 %v247_v7, 0.0  ;;  %v410_v12 = vmax.f32 %v335_v8, 0.0 }
  0xf6   :  { %v249_v13 = vpop.f32.mrf.mxu0  ;;  %v337_v14 = vpop.f32.mrf.mxu1 }
  0xf7   :  { %430 = vst.msk [vmem:[%s1065_s3 + $0x40] sm:$0xff] %vm421_vm2, %v388_v11  ;;  %v250_v15 = vadd.f32 %v856_v4, %v249_v13  ;;  %452 = vst.msk [vmem:[%s1065_s3 + $0xf0] sm:$0xff] %vm421_vm2, %v410_v12  ;;  %v338_v16 = vadd.f32 %v856_v4, %v337_v14 }
  0xf8   :  { %v546_v17 = vpop.f32.mrf.mxu0  ;;  %v590_v18 = vpop.f32.mrf.mxu1 }
  0xf9   :  { %v389_v19 = vmax.f32 %v250_v15, 0.0  ;;  %v411_v20 = vmax.f32 %v338_v16, 0.0 }
  0xfa   :  { %v254_v21 = vpop.f32.mrf.mxu0  ;;  %v342_v22 = vpop.f32.mrf.mxu1 }
  0xfb   :  { %431 = vst.msk [vmem:[%s1065_s3 + $0x48] sm:$0xff] %vm421_vm2, %v389_v19  ;;  %v255_v23 = vadd.f32 %v856_v4, %v254_v21  ;;  %453 = vst.msk [vmem:[%s1065_s3 + $0xf8] sm:$0xff] %vm421_vm2, %v411_v20  ;;  %v343_v24 = vadd.f32 %v856_v4, %v342_v22 }
  0xfc   :  { %v549_v25 = vpop.f32.mrf.mxu0  ;;  %v593_v26 = vpop.f32.mrf.mxu1 }
  0xfd   :  { %v390_v27 = vmax.f32 %v255_v23, 0.0  ;;  %v412_v28 = vmax.f32 %v343_v24, 0.0 }
  0xfe   :  { %v257_v29 = vpop.f32.mrf.mxu0  ;;  %v345_v30 = vpop.f32.mrf.mxu1 }
  0xff   :  { %432 = vst.msk [vmem:[%s1065_s3 + $0x50] sm:$0xff] %vm421_vm2, %v390_v27  ;;  %v258_v31 = vadd.f32 %v856_v4, %v257_v29  ;;  %454 = vst.msk [vmem:[%s1065_s3 + $0x100] sm:$0xff] %vm421_vm2, %v412_v28  ;;  %v346_v32 = vadd.f32 %v856_v4, %v345_v30 }
 0x100   :  { %v550_v33 = vpop.f32.mrf.mxu0  ;;  %v594_v34 = vpop.f32.mrf.mxu1 }
 0x101   :  { %v391_v35 = vmax.f32 %v258_v31, 0.0  ;;  %v413_v36 = vmax.f32 %v346_v32, 0.0 }
 0x102   :  { %v262_v37 = vpop.f32.mrf.mxu0  ;;  %v350_v38 = vpop.f32.mrf.mxu1 }
 0x103   :  { %433 = vst.msk [vmem:[%s1065_s3 + $0x58] sm:$0xff] %vm421_vm2, %v391_v35  ;;  %v263_v39 = vadd.f32 %v856_v4, %v262_v37  ;;  %455 = vst.msk [vmem:[%s1065_s3 + $0x108] sm:$0xff] %vm421_vm2, %v413_v36  ;;  %v351_v40 = vadd.f32 %v856_v4, %v350_v38 }
 0x104   :  { %v553_v41 = vpop.f32.mrf.mxu0  ;;  %v597_v42 = vpop.f32.mrf.mxu1 }
 0x105   :  { %v392_v43 = vmax.f32 %v263_v39, 0.0  ;;  %v414_v44 = vmax.f32 %v351_v40, 0.0 }
 0x106   :  { %v265_v45 = vpop.f32.mrf.mxu0  ;;  %v353_v46 = vpop.f32.mrf.mxu1 }
 0x107   :  { %434 = vst.msk [vmem:[%s1065_s3 + $0x60] sm:$0xff] %vm421_vm2, %v392_v43  ;;  %v266_v47 = vadd.f32 %v856_v4, %v265_v45  ;;  %456 = vst.msk [vmem:[%s1065_s3 + $0x110] sm:$0xff] %vm421_vm2, %v414_v44  ;;  %v354_v48 = vadd.f32 %v856_v4, %v353_v46 }
 0x108   :  { %v554_v49 = vpop.f32.mrf.mxu0  ;;  %v598_v50 = vpop.f32.mrf.mxu1 }
 0x109   :  { %v393_v51 = vmax.f32 %v266_v47, 0.0  ;;  %v415_v52 = vmax.f32 %v354_v48, 0.0 }
 0x10a   :  { %v270_v53 = vpop.f32.mrf.mxu0  ;;  %v358_v54 = vpop.f32.mrf.mxu1 }
 0x10b   :  { %435 = vst.msk [vmem:[%s1065_s3 + $0x68] sm:$0xff] %vm421_vm2, %v393_v51  ;;  %v271_v55 = vadd.f32 %v856_v4, %v270_v53  ;;  %457 = vst.msk [vmem:[%s1065_s3 + $0x118] sm:$0xff] %vm421_vm2, %v415_v52  ;;  %v359_v56 = vadd.f32 %v856_v4, %v358_v54 }
 0x10c   :  { %v557_v57 = vpop.f32.mrf.mxu0  ;;  %v601_v58 = vpop.f32.mrf.mxu1 }
 0x10d   :  { %v394_v59 = vmax.f32 %v271_v55, 0.0  ;;  %v416_v60 = vmax.f32 %v359_v56, 0.0 }
 0x10e   :  { %v273_v61 = vpop.f32.mrf.mxu0  ;;  %v361_v62 = vpop.f32.mrf.mxu1 }
 0x10f   :  { %436 = vst.msk [vmem:[%s1065_s3 + $0x70] sm:$0xff] %vm421_vm2, %v394_v59  ;;  %v274_v63 = vadd.f32 %v856_v4, %v273_v61  ;;  %458 = vst.msk [vmem:[%s1065_s3 + $0x120] sm:$0xff] %vm421_vm2, %v416_v60  ;;  %v362_v1 = vadd.f32 %v856_v4, %v361_v62 }
 0x110   :  { %v558_v2 = vpop.f32.mrf.mxu0  ;;  %v602_v3 = vpop.f32.mrf.mxu1 }
 0x111   :  { %v395_v5 = vmax.f32 %v274_v63, 0.0  ;;  %v417_v6 = vmax.f32 %v362_v1, 0.0 }
 0x112   :  { %v278_v0 = vpop.f32.mrf.mxu0  ;;  %v366_v7 = vpop.f32.mrf.mxu1 }
 0x113   :  { %437 = vst.msk [vmem:[%s1065_s3 + $0x78] sm:$0xff] %vm421_vm2, %v395_v5  ;;  %v279_v8 = vadd.f32 %v856_v4, %v278_v0  ;;  %459 = vst.msk [vmem:[%s1065_s3 + $0x128] sm:$0xff] %vm421_vm2, %v417_v6  ;;  %v367_v9 = vadd.f32 %v856_v4, %v366_v7 }
 0x114   :  { %v561_v10 = vpop.f32.mrf.mxu0  ;;  %v605_v11 = vpop.f32.mrf.mxu1 }
 0x115   :  { %v396_v12 = vmax.f32 %v279_v8, 0.0  ;;  %v418_v13 = vmax.f32 %v367_v9, 0.0 }
 0x116   :  { %v281_v14 = vpop.f32.mrf.mxu0  ;;  %v369_v15 = vpop.f32.mrf.mxu1 }
 0x117   :  { %438 = vst.msk [vmem:[%s1065_s3 + $0x80] sm:$0xff] %vm421_vm2, %v396_v12  ;;  %v282_v16 = vadd.f32 %v856_v4, %v281_v14  ;;  %460 = vst.msk [vmem:[%s1065_s3 + $0x130] sm:$0xff] %vm421_vm2, %v418_v13  ;;  %v370_v17 = vadd.f32 %v856_v4, %v369_v15 }
 0x118   :  { %v562_v18 = vpop.f32.mrf.mxu0  ;;  %v606_v19 = vpop.f32.mrf.mxu1 }
 0x119   :  { %v397_v20 = vmax.f32 %v282_v16, 0.0  ;;  %v419_v21 = vmax.f32 %v370_v17, 0.0 }
 0x11a   :  { %v286_v22 = vpop.f32.mrf.mxu0  ;;  %v374_v23 = vpop.f32.mrf.mxu1 }
 0x11b   :  { %439 = vst.msk [vmem:[%s1065_s3 + $0x88] sm:$0xff] %vm421_vm2, %v397_v20  ;;  %v287_v24 = vadd.f32 %v856_v4, %v286_v22  ;;  %461 = vst.msk [vmem:[%s1065_s3 + $0x138] sm:$0xff] %vm421_vm2, %v419_v21  ;;  %v375_v25 = vadd.f32 %v856_v4, %v374_v23 }
 0x11c   :  { %v565_v26 = vpop.f32.mrf.mxu0  ;;  %v609_v27 = vpop.f32.mrf.mxu1 }
 0x11d   :  { %v398_v28 = vmax.f32 %v287_v24, 0.0  ;;  %v420_v29 = vmax.f32 %v375_v25, 0.0 }
 0x11e   :  { %v289_v30 = vpop.f32.mrf.mxu0  ;;  %v377_v31 = vpop.f32.mrf.mxu1 }
 0x11f   :  { %440 = vst.msk [vmem:[%s1065_s3 + $0x90] sm:$0xff] %vm421_vm2, %v398_v28  ;;  %v290_v32 = vadd.f32 %v856_v4, %v289_v30 }
 0x120   :  { %463 = vst.msk [vmem:[%s1065_s3 + $0x140] sm:$0xf] %vm462_vm3, %v420_v29  ;;  %v566_v33 = vpop.f32.mrf.mxu0  ;;  %v610_v34 = vpop.f32.mrf.mxu1 }
 0x121   :  { %v399_v35 = vmax.f32 %v290_v32, 0.0 }
 0x122   :  { %v294_v36 = vpop.f32.mrf.mxu0 }
 0x123   :  { %441 = vst.msk [vmem:[%s1065_s3 + $0x98] sm:$0xff] %vm421_vm2, %v399_v35  ;;  %v295_v37 = vadd.f32 %v856_v4, %v294_v36 }
 0x124   :  { %v569_v38 = vpop.f32.mrf.mxu0 }
 0x125   :  { %v400_v39 = vmax.f32 %v295_v37, 0.0 }
 0x126   :  { %v297_v40 = vpop.f32.mrf.mxu0 }
 0x127   :  { %442 = vst.msk [vmem:[%s1065_s3 + $0xa0] sm:$0xff] %vm421_vm2, %v400_v39  ;;  %v298_v41 = vadd.f32 %v856_v4, %v297_v40 }
 0x128   :  { %v570_v42 = vpop.f32.mrf.mxu0 }
 0x129   :  { %v401_v43 = vmax.f32 %v298_v41, 0.0 }
 0x12b   :  { %443 = vst.msk [vmem:[%s1065_s3 + $0xa8] sm:$0xff] %vm421_vm2, %v401_v43 }

// kernel: gtrxl_policy_forward.8
= control target key start
LH: loop header
LB: loop body
LE: loop exit
PB: predicated region body
PF: predicated region fallthrough
CT: control target
= control target key end

     0   :  { %vm464_vm0 = vcmask 523264   ;;  %s879_s1 = inlined_call_operand.vmem [shape: bf16[512,64], index: 1, kind: input, shape index: {}]   ;;  %s880_s0 = inlined_call_operand.vmem [shape: f32[64,512], index: 0, kind: input, shape index: {}]   ;;  %s881_s2 = inlined_call_operand.vmem [shape: f32[1,64], index: 2, kind: input, shape index: {}]   ;;  %s882_s3 = inlined_call_operand.vmem [shape: f32[64,64], index: 3, kind: output, shape index: {}]  }
   0x1   :  { %v590_v0 = vld [vmem:[%s879_s1 + $0x78] sm:$0xff]   ;;  %v594_v4 = vld [vmem:[%s879_s1 + $0x70] sm:$0xff]   ;;  %v598_v8 = vld [vmem:[%s879_s1 + $0x68] sm:$0xff]  }
   0x2   :  { %v591_v1 = vld [vmem:[%s879_s1 + $0xf8] sm:$0xff]   ;;  %510 = vmatprep.subr.bf16.mxu0 %v590_v0  ;;  %v595_v5 = vld [vmem:[%s879_s1 + $0xf0] sm:$0xff]   ;;  %v599_v9 = vld [vmem:[%s879_s1 + $0xe8] sm:$0xff]  }
   0x3   :  { %v592_v2 = vld [vmem:[%s879_s1 + $0x38] sm:$0xff]   ;;  %550 = vmatprep.subr.bf16.mxu1 %v591_v1  ;;  %v596_v6 = vld [vmem:[%s879_s1 + $0x30] sm:$0xff]   ;;  %v600_v10 = vld [vmem:[%s879_s1 + $0x28] sm:$0xff]  }
   0x4   :  { %v593_v3 = vld [vmem:[%s879_s1 + $0xb8] sm:$0xff]   ;;  %511 = vmatpush3.bf16.msra.mxu0 %v592_v2  ;;  %v597_v7 = vld [vmem:[%s879_s1 + $0xb0] sm:$0xff]   ;;  %v601_v11 = vld [vmem:[%s879_s1 + $0xa8] sm:$0xff]  }
   0x5   :  { %551 = vmatpush3.bf16.msra.mxu1 %v593_v3  ;;  %512 = vmatprep.subr.bf16.mxu0 %v594_v4  ;;  %v602_v12 = vld [vmem:[%s879_s1 + $0x60] sm:$0xff]   ;;  %v606_v16 = vld [vmem:[%s879_s1 + $0x58] sm:$0xff]   ;;  %v610_v20 = vld [vmem:[%s879_s1 + $0x50] sm:$0xff]  }
   0x6   :  { %552 = vmatprep.subr.bf16.mxu1 %v595_v5  ;;  %v603_v13 = vld [vmem:[%s879_s1 + $0xe0] sm:$0xff]   ;;  %v607_v17 = vld [vmem:[%s879_s1 + $0xd8] sm:$0xff]   ;;  %v611_v21 = vld [vmem:[%s879_s1 + $0xd0] sm:$0xff]  }
   0x7   :  { %v604_v14 = vld [vmem:[%s879_s1 + $0x20] sm:$0xff]   ;;  %v608_v18 = vld [vmem:[%s879_s1 + $0x18] sm:$0xff]   ;;  %v612_v22 = vld [vmem:[%s879_s1 + $0x10] sm:$0xff]  }
   0x8   :  { %513 = vmatpush3.bf16.msra.mxu0 %v596_v6  ;;  %v605_v15 = vld [vmem:[%s879_s1 + $0xa0] sm:$0xff]   ;;  %v609_v19 = vld [vmem:[%s879_s1 + $0x98] sm:$0xff]   ;;  %v613_v23 = vld [vmem:[%s879_s1 + $0x90] sm:$0xff]  }
   0x9   :  { %553 = vmatpush3.bf16.msra.mxu1 %v597_v7  ;;  %514 = vmatprep.subr.bf16.mxu0 %v598_v8  ;;  %v614_v24 = vld [vmem:[%s879_s1 + $0x48] sm:$0xff]   ;;  %v618_v28 = vld [vmem:[%s879_s1 + $0x40] sm:$0xff]   ;;  %v18_v34 = vld [vmem:[%s880_s0 + $0x18] sm:$0xff] }
   0xa   :  { %554 = vmatprep.subr.bf16.mxu1 %v599_v9  ;;  %v615_v25 = vld [vmem:[%s879_s1 + $0xc8] sm:$0xff]   ;;  %v619_v29 = vld [vmem:[%s879_s1 + $0xc0] sm:$0xff]   ;;  %v22_v36 = vld [vmem:[%s880_s0 + $0x38] sm:$0xff] }
   0xb   :  { %v616_v26 = vld [vmem:[%s879_s1 + $0x8] sm:$0xff]   ;;  %v620_v30 = vld [vmem:[%s879_s1] sm:$0xff]   ;;  %v50_v39 = vpack.c.bf16 %v22_v36, %v18_v34  ;;  %v17_v41 = vld [vmem:[%s880_s0 + $0x10] sm:$0xff] }
   0xc   :  { %515 = vmatpush3.bf16.msra.mxu0 %v600_v10  ;;  %v617_v27 = vld [vmem:[%s879_s1 + $0x88] sm:$0xff]   ;;  %v621_v31 = vld [vmem:[%s879_s1 + $0x80] sm:$0xff]   ;;  %v21_v42 = vld [vmem:[%s880_s0 + $0x30] sm:$0xff] }
   0xd   :  { %555 = vmatpush3.bf16.msra.mxu1 %v601_v11  ;;  %516 = vmatprep.subr.bf16.mxu0 %v602_v12  ;;  %v16_v32 = vld [vmem:[%s880_s0 + $0x8] sm:$0xff]  ;;  %v15_v37 = vld [vmem:[%s880_s0] sm:$0xff]  ;;  %v49_v44 = vpack.c.bf16 %v21_v42, %v17_v41  ;;  %v26_v46 = vld [vmem:[%s880_s0 + $0x58] sm:$0xff] }
   0xe   :  { %556 = vmatprep.subr.bf16.mxu1 %v603_v13  ;;  %v20_v33 = vld [vmem:[%s880_s0 + $0x28] sm:$0xff]  ;;  %v19_v38 = vld [vmem:[%s880_s0 + $0x20] sm:$0xff]  ;;  %v30_v47 = vld [vmem:[%s880_s0 + $0x78] sm:$0xff]  ;;  %423 = vmatprep.mubr.bf16.mxu1 %v50_v39 }
   0xf   :  { %v48_v35 = vpack.c.bf16 %v20_v33, %v16_v32  ;;  %v47_v40 = vpack.c.bf16 %v19_v38, %v15_v37  ;;  %v24_v43 = vld [vmem:[%s880_s0 + $0x48] sm:$0xff]  ;;  %v54_v49 = vpack.c.bf16 %v30_v47, %v26_v46  ;;  %v23_v50 = vld [vmem:[%s880_s0 + $0x40] sm:$0xff]  ;;  %v25_v52 = vld [vmem:[%s880_s0 + $0x50] sm:$0xff] }
  0x10   :  { %517 = vmatpush3.bf16.msra.mxu0 %v604_v14  ;;  %v28_v45 = vld [vmem:[%s880_s0 + $0x68] sm:$0xff]  ;;  %v27_v51 = vld [vmem:[%s880_s0 + $0x60] sm:$0xff]  ;;  %v29_v53 = vld [vmem:[%s880_s0 + $0x70] sm:$0xff] }
  0x11   :  { %557 = vmatpush3.bf16.msra.mxu1 %v605_v15  ;;  %518 = vmatprep.subr.bf16.mxu0 %v606_v16  ;;  %v52_v48 = vpack.c.bf16 %v28_v45, %v24_v43  ;;  %v32_v54 = vld [vmem:[%s880_s0 + $0x88] sm:$0xff]  ;;  %v34_v56 = vld [vmem:[%s880_s0 + $0x98] sm:$0xff]  ;;  %v51_v58 = vpack.c.bf16 %v27_v51, %v23_v50  ;;  %v53_v59 = vpack.c.bf16 %v29_v53, %v25_v52  ;;  %v31_v62 = vld [vmem:[%s880_s0 + $0x80] sm:$0xff] }
  0x12   :  { %558 = vmatprep.subr.bf16.mxu1 %v607_v17  ;;  %358 = vmatprep.mubr.bf16.mxu0 %v48_v35  ;;  %v36_v55 = vld [vmem:[%s880_s0 + $0xa8] sm:$0xff]  ;;  %v38_v57 = vld [vmem:[%s880_s0 + $0xb8] sm:$0xff]  ;;  %v35_v63 = vld [vmem:[%s880_s0 + $0xa0] sm:$0xff] }
  0x13   :  { %v56_v60 = vpack.c.bf16 %v36_v55, %v32_v54  ;;  %v58_v61 = vpack.c.bf16 %v38_v57, %v34_v56  ;;  %v33_v0 = vld [vmem:[%s880_s0 + $0x90] sm:$0xff]  ;;  %v40_v2 = vld [vmem:[%s880_s0 + $0xc8] sm:$0xff]  ;;  %v42_v4 = vld [vmem:[%s880_s0 + $0xd8] sm:$0xff]  ;;  %v55_v6 = vpack.c.bf16 %v35_v63, %v31_v62 }
  0x14   :  { %519 = vmatpush3.bf16.msra.mxu0 %v608_v18  ;;  %v37_v1 = vld [vmem:[%s880_s0 + $0xb0] sm:$0xff]  ;;  %v44_v3 = vld [vmem:[%s880_s0 + $0xe8] sm:$0xff]  ;;  %v46_v5 = vld [vmem:[%s880_s0 + $0xf8] sm:$0xff] }
  0x15   :  { %559 = vmatpush3.bf16.msra.mxu1 %v609_v19  ;;  %520 = vmatprep.subr.bf16.mxu0 %v610_v20  ;;  %v57_v7 = vpack.c.bf16 %v37_v1, %v33_v0  ;;  %v60_v8 = vpack.c.bf16 %v44_v3, %v40_v2  ;;  %v62_v9 = vpack.c.bf16 %v46_v5, %v42_v4  ;;  %v39_v10 = vld [vmem:[%s880_s0 + $0xc0] sm:$0xff]  ;;  %v41_v12 = vld [vmem:[%s880_s0 + $0xd0] sm:$0xff] }
  0x16   :  { %560 = vmatprep.subr.bf16.mxu1 %v611_v21  ;;  %v43_v11 = vld [vmem:[%s880_s0 + $0xe0] sm:$0xff]  ;;  %v45_v13 = vld [vmem:[%s880_s0 + $0xf0] sm:$0xff] }
  0x17   :  { %v59_v14 = vpack.c.bf16 %v43_v11, %v39_v10  ;;  %v61_v15 = vpack.c.bf16 %v45_v13, %v41_v12  ;;  %v837_v18 = vld [vmem:[%s881_s2] ss:$0 sm:$0xff] }
  0x18   :  { %521 = vmatpush3.bf16.msra.mxu0 %v612_v22 }
  0x19   :  { %561 = vmatpush3.bf16.msra.mxu1 %v613_v23  ;;  %522 = vmatprep.subr.bf16.mxu0 %v614_v24 }
  0x1a   :  { %562 = vmatprep.subr.bf16.mxu1 %v615_v25 }
  0x1c   :  { %523 = vmatpush3.bf16.msra.mxu0 %v616_v26 }
  0x1d   :  { %563 = vmatpush3.bf16.msra.mxu1 %v617_v27  ;;  %524 = vmatprep.subr.bf16.mxu0 %v618_v28 }
  0x1e   :  { %564 = vmatprep.subr.bf16.mxu1 %v619_v29 }
  0x20   :  { %525 = vmatpush3.bf16.msra.mxu0 %v620_v30 }
  0x21   :  { %565 = vmatpush3.bf16.msra.mxu1 %v621_v31 }
  0x23   :  { %359 = vmatmul.mubr.bf16.vlgmr.msra.gmra.mxu0 %v47_v40 }
  0x24   :  { %424 = vmatmul.mubr.bf16.vlgmr.msra.gmra.mxu1 %v49_v44  ;;  %366 = vmatprep.mubr.bf16.mxu0 %v52_v48 }
  0x25   :  { %431 = vmatprep.mubr.bf16.mxu1 %v54_v49 }
  0x2b   :  { %367 = vmatmul.mubr.bf16.gmra.mxu0 %v51_v58 }
  0x2c   :  { %432 = vmatmul.mubr.bf16.gmra.mxu1 %v53_v59  ;;  %374 = vmatprep.mubr.bf16.mxu0 %v56_v60 }
  0x2d   :  { %439 = vmatprep.mubr.bf16.mxu1 %v58_v61 }
  0x33   :  { %375 = vmatmul.mubr.bf16.gmra.mxu0 %v55_v6 }
  0x34   :  { %440 = vmatmul.mubr.bf16.gmra.mxu1 %v57_v7  ;;  %382 = vmatprep.mubr.bf16.mxu0 %v60_v8 }
  0x35   :  { %447 = vmatprep.mubr.bf16.mxu1 %v62_v9 }
  0x3b   :  { %383 = vmatmul.mubr.bf16.gmra.mxu0 %v59_v14 }
  0x3c   :  { %448 = vmatmul.mubr.bf16.gmra.mxu1 %v61_v15 }
  0xe3   :  { %v526_v16 = vpop.f32.mrf.mxu0 }
  0xe4   :  { %v566_v17 = vpop.f32.mrf.mxu1 }
  0xe5   :  { %v527_v19 = vpop.f32.mrf.mxu0 }
  0xe6   :  { %v528_v20 = vadd.f32 %v527_v19, %v526_v16  ;;  %v567_v21 = vpop.f32.mrf.mxu1 }
  0xe7   :  { %v529_v22 = vpop.f32.mrf.mxu0  ;;  %v568_v24 = vadd.f32 %v567_v21, %v566_v17 }
  0xe8   :  { %v361_v23 = vadd.f32 %v528_v20, %v837_v18  ;;  %v569_v25 = vpop.f32.mrf.mxu1 }
  0xe9   :  { %v530_v26 = vpop.f32.mrf.mxu0 }
  0xea   :  { %v426_v27 = vadd.f32 %v568_v24, %v361_v23  ;;  %v531_v28 = vadd.f32 %v530_v26, %v529_v22  ;;  %v570_v29 = vpop.f32.mrf.mxu1 }
  0xeb   :  { %v532_v30 = vpop.f32.mrf.mxu0  ;;  %v571_v33 = vadd.f32 %v570_v29, %v569_v25 }
  0xec   :  { %v456_v31 = vmax.f32 %v426_v27, 0.0  ;;  %v364_v32 = vadd.f32 %v531_v28, %v837_v18  ;;  %v572_v34 = vpop.f32.mrf.mxu1 }
  0xed   :  { %v533_v35 = vpop.f32.mrf.mxu0 }
  0xee   :  { %465 = vst.msk [vmem:[%s882_s3] sm:$0xff] %vm464_vm0, %v456_v31  ;;  %v429_v36 = vadd.f32 %v571_v33, %v364_v32  ;;  %v534_v37 = vadd.f32 %v533_v35, %v532_v30  ;;  %v573_v38 = vpop.f32.mrf.mxu1 }
  0xef   :  { %v535_v39 = vpop.f32.mrf.mxu0  ;;  %v574_v42 = vadd.f32 %v573_v38, %v572_v34 }
  0xf0   :  { %v457_v40 = vmax.f32 %v429_v36, 0.0  ;;  %v369_v41 = vadd.f32 %v534_v37, %v837_v18  ;;  %v575_v43 = vpop.f32.mrf.mxu1 }
  0xf1   :  { %v536_v44 = vpop.f32.mrf.mxu0 }
  0xf2   :  { %466 = vst.msk [vmem:[%s882_s3 + $0x8] sm:$0xff] %vm464_vm0, %v457_v40  ;;  %v434_v45 = vadd.f32 %v574_v42, %v369_v41  ;;  %v537_v46 = vadd.f32 %v536_v44, %v535_v39  ;;  %v576_v47 = vpop.f32.mrf.mxu1 }
  0xf3   :  { %v538_v48 = vpop.f32.mrf.mxu0  ;;  %v577_v51 = vadd.f32 %v576_v47, %v575_v43 }
  0xf4   :  { %v458_v49 = vmax.f32 %v434_v45, 0.0  ;;  %v372_v50 = vadd.f32 %v537_v46, %v837_v18  ;;  %v578_v52 = vpop.f32.mrf.mxu1 }
  0xf5   :  { %v539_v53 = vpop.f32.mrf.mxu0 }
  0xf6   :  { %467 = vst.msk [vmem:[%s882_s3 + $0x10] sm:$0xff] %vm464_vm0, %v458_v49  ;;  %v437_v54 = vadd.f32 %v577_v51, %v372_v50  ;;  %v540_v55 = vadd.f32 %v539_v53, %v538_v48  ;;  %v579_v56 = vpop.f32.mrf.mxu1 }
  0xf7   :  { %v541_v57 = vpop.f32.mrf.mxu0  ;;  %v580_v60 = vadd.f32 %v579_v56, %v578_v52 }
  0xf8   :  { %v459_v58 = vmax.f32 %v437_v54, 0.0  ;;  %v377_v59 = vadd.f32 %v540_v55, %v837_v18  ;;  %v581_v61 = vpop.f32.mrf.mxu1 }
  0xf9   :  { %v542_v62 = vpop.f32.mrf.mxu0 }
  0xfa   :  { %468 = vst.msk [vmem:[%s882_s3 + $0x18] sm:$0xff] %vm464_vm0, %v459_v58  ;;  %v442_v63 = vadd.f32 %v580_v60, %v377_v59  ;;  %v543_v0 = vadd.f32 %v542_v62, %v541_v57  ;;  %v582_v1 = vpop.f32.mrf.mxu1 }
  0xfb   :  { %v544_v2 = vpop.f32.mrf.mxu0  ;;  %v583_v5 = vadd.f32 %v582_v1, %v581_v61 }
  0xfc   :  { %v460_v3 = vmax.f32 %v442_v63, 0.0  ;;  %v380_v4 = vadd.f32 %v543_v0, %v837_v18  ;;  %v584_v6 = vpop.f32.mrf.mxu1 }
  0xfd   :  { %v545_v7 = vpop.f32.mrf.mxu0 }
  0xfe   :  { %469 = vst.msk [vmem:[%s882_s3 + $0x20] sm:$0xff] %vm464_vm0, %v460_v3  ;;  %v445_v8 = vadd.f32 %v583_v5, %v380_v4  ;;  %v546_v9 = vadd.f32 %v545_v7, %v544_v2  ;;  %v585_v10 = vpop.f32.mrf.mxu1 }
  0xff   :  { %v547_v11 = vpop.f32.mrf.mxu0  ;;  %v586_v14 = vadd.f32 %v585_v10, %v584_v6 }
 0x100   :  { %v461_v12 = vmax.f32 %v445_v8, 0.0  ;;  %v385_v13 = vadd.f32 %v546_v9, %v837_v18  ;;  %v587_v15 = vpop.f32.mrf.mxu1 }
 0x101   :  { %v548_v16 = vpop.f32.mrf.mxu0 }
 0x102   :  { %470 = vst.msk [vmem:[%s882_s3 + $0x28] sm:$0xff] %vm464_vm0, %v461_v12  ;;  %v450_v17 = vadd.f32 %v586_v14, %v385_v13  ;;  %v549_v19 = vadd.f32 %v548_v16, %v547_v11  ;;  %v588_v20 = vpop.f32.mrf.mxu1 }
 0x103   :  { %v589_v23 = vadd.f32 %v588_v20, %v587_v15 }
 0x104   :  { %v462_v21 = vmax.f32 %v450_v17, 0.0  ;;  %v388_v22 = vadd.f32 %v549_v19, %v837_v18 }
 0x106   :  { %471 = vst.msk [vmem:[%s882_s3 + $0x30] sm:$0xff] %vm464_vm0, %v462_v21  ;;  %v453_v24 = vadd.f32 %v589_v23, %v388_v22 }
 0x108   :  { %v463_v25 = vmax.f32 %v453_v24, 0.0 }
 0x10a   :  { %472 = vst.msk [vmem:[%s882_s3 + $0x38] sm:$0xff] %vm464_vm0, %v463_v25 }

// kernel: gtrxl_policy_forward.9
= control target key start
LH: loop header
LB: loop body
LE: loop exit
PB: predicated region body
PF: predicated region fallthrough
CT: control target
= control target key end

     0   :  { %vm370_vm0 = vcmask 523264   ;;  %s1074_s1 = inlined_call_operand.vmem [shape: bf16[576,64], index: 1, kind: input, shape index: {}]   ;;  %s1075_s0 = inlined_call_operand.vmem [shape: f32[64,576], index: 0, kind: input, shape index: {}]   ;;  %s1076_s2 = inlined_call_operand.vmem [shape: f32[1,64], index: 2, kind: input, shape index: {}]   ;;  %s1077_s3 = inlined_call_operand.vmem [shape: f32[64,64], index: 3, kind: output, shape index: {}]  }
   0x1   :  { %v751_v0 = vld [vmem:[%s1074_s1 + $0x78] sm:$0xff]   ;;  %v755_v4 = vld [vmem:[%s1074_s1 + $0x70] sm:$0xff]   ;;  %v759_v8 = vld [vmem:[%s1074_s1 + $0x68] sm:$0xff]  }
   0x2   :  { %v752_v1 = vld [vmem:[%s1074_s1 + $0xf8] sm:$0xff]   ;;  %639 = vmatprep.subr.bf16.mxu0 %v751_v0  ;;  %v756_v5 = vld [vmem:[%s1074_s1 + $0xf0] sm:$0xff]   ;;  %v760_v9 = vld [vmem:[%s1074_s1 + $0xe8] sm:$0xff]  }
   0x3   :  { %v753_v2 = vld [vmem:[%s1074_s1 + $0x38] sm:$0xff]   ;;  %679 = vmatprep.subr.bf16.mxu1 %v752_v1  ;;  %v757_v6 = vld [vmem:[%s1074_s1 + $0x30] sm:$0xff]   ;;  %v761_v10 = vld [vmem:[%s1074_s1 + $0x28] sm:$0xff]  }
   0x4   :  { %v754_v3 = vld [vmem:[%s1074_s1 + $0xb8] sm:$0xff]   ;;  %640 = vmatpush3.bf16.msra.mxu0 %v753_v2  ;;  %v758_v7 = vld [vmem:[%s1074_s1 + $0xb0] sm:$0xff]   ;;  %v762_v11 = vld [vmem:[%s1074_s1 + $0xa8] sm:$0xff]  }
   0x5   :  { %680 = vmatpush3.bf16.msra.mxu1 %v754_v3  ;;  %641 = vmatprep.subr.bf16.mxu0 %v755_v4  ;;  %v763_v12 = vld [vmem:[%s1074_s1 + $0x60] sm:$0xff]   ;;  %v767_v16 = vld [vmem:[%s1074_s1 + $0x58] sm:$0xff]   ;;  %v771_v20 = vld [vmem:[%s1074_s1 + $0x50] sm:$0xff]  }
   0x6   :  { %681 = vmatprep.subr.bf16.mxu1 %v756_v5  ;;  %v764_v13 = vld [vmem:[%s1074_s1 + $0xe0] sm:$0xff]   ;;  %v768_v17 = vld [vmem:[%s1074_s1 + $0xd8] sm:$0xff]   ;;  %v772_v21 = vld [vmem:[%s1074_s1 + $0xd0] sm:$0xff]  }
   0x7   :  { %v765_v14 = vld [vmem:[%s1074_s1 + $0x20] sm:$0xff]   ;;  %v769_v18 = vld [vmem:[%s1074_s1 + $0x18] sm:$0xff]   ;;  %v773_v22 = vld [vmem:[%s1074_s1 + $0x10] sm:$0xff]  }
   0x8   :  { %642 = vmatpush3.bf16.msra.mxu0 %v757_v6  ;;  %v766_v15 = vld [vmem:[%s1074_s1 + $0xa0] sm:$0xff]   ;;  %v770_v19 = vld [vmem:[%s1074_s1 + $0x98] sm:$0xff]   ;;  %v774_v23 = vld [vmem:[%s1074_s1 + $0x90] sm:$0xff]  }
   0x9   :  { %682 = vmatpush3.bf16.msra.mxu1 %v758_v7  ;;  %643 = vmatprep.subr.bf16.mxu0 %v759_v8  ;;  %v775_v24 = vld [vmem:[%s1074_s1 + $0x48] sm:$0xff]   ;;  %v779_v28 = vld [vmem:[%s1074_s1 + $0x40] sm:$0xff]   ;;  %v21_v33 = vld [vmem:[%s1075_s0 + $0x30] sm:$0xff] }
   0xa   :  { %683 = vmatprep.subr.bf16.mxu1 %v760_v9  ;;  %v776_v25 = vld [vmem:[%s1074_s1 + $0xc8] sm:$0xff]   ;;  %v780_v29 = vld [vmem:[%s1074_s1 + $0xc0] sm:$0xff]   ;;  %v18_v34 = vld [vmem:[%s1075_s0 + $0x18] sm:$0xff] }
   0xb   :  { %v777_v26 = vld [vmem:[%s1074_s1 + $0x8] sm:$0xff]   ;;  %v781_v30 = vld [vmem:[%s1074_s1] sm:$0xff]   ;;  %v17_v41 = vld [vmem:[%s1075_s0 + $0x10] sm:$0xff] }
   0xc   :  { %644 = vmatpush3.bf16.msra.mxu0 %v761_v10  ;;  %v778_v27 = vld [vmem:[%s1074_s1 + $0x88] sm:$0xff]   ;;  %v782_v31 = vld [vmem:[%s1074_s1 + $0x80] sm:$0xff]   ;;  %v22_v42 = vld [vmem:[%s1075_s0 + $0x38] sm:$0xff] }
   0xd   :  { %684 = vmatpush3.bf16.msra.mxu1 %v762_v11  ;;  %645 = vmatprep.subr.bf16.mxu0 %v763_v12  ;;  %v16_v32 = vld [vmem:[%s1075_s0 + $0x8] sm:$0xff]  ;;  %v23_v36 = vld [vmem:[%s1075_s0 + $0x40] sm:$0xff]  ;;  %v57_v43 = vpack.c.bf16 %v22_v42, %v17_v41  ;;  %v783_v44 = vld [vmem:[%s1074_s1 + $0x118] sm:$0xff]  }
   0xe   :  { %685 = vmatprep.subr.bf16.mxu1 %v764_v13  ;;  %v56_v35 = vpack.c.bf16 %v21_v33, %v16_v32  ;;  %v15_v37 = vld [vmem:[%s1075_s0] sm:$0xff]  ;;  %v20_v38 = vld [vmem:[%s1075_s0 + $0x28] sm:$0xff]  ;;  %v58_v39 = vpack.c.bf16 %v23_v36, %v18_v34  ;;  %v26_v45 = vld [vmem:[%s1075_s0 + $0x58] sm:$0xff] }
   0xf   :  { %v55_v40 = vpack.c.bf16 %v20_v38, %v15_v37  ;;  %v31_v46 = vld [vmem:[%s1075_s0 + $0x80] sm:$0xff]  ;;  %v28_v47 = vld [vmem:[%s1075_s0 + $0x68] sm:$0xff]  ;;  %v33_v48 = vld [vmem:[%s1075_s0 + $0x90] sm:$0xff] }
  0x10   :  { %646 = vmatpush3.bf16.msra.mxu0 %v765_v14  ;;  %415 = vmatprep.mubr.bf16.mxu0 %v56_v35  ;;  %v61_v49 = vpack.c.bf16 %v31_v46, %v26_v45  ;;  %v63_v50 = vpack.c.bf16 %v33_v48, %v28_v47  ;;  %v25_v51 = vld [vmem:[%s1075_s0 + $0x50] sm:$0xff]  ;;  %v30_v52 = vld [vmem:[%s1075_s0 + $0x78] sm:$0xff]  ;;  %v27_v53 = vld [vmem:[%s1075_s0 + $0x60] sm:$0xff] }
  0x11   :  { %686 = vmatpush3.bf16.msra.mxu1 %v766_v15  ;;  %647 = vmatprep.subr.bf16.mxu0 %v767_v16  ;;  %v32_v54 = vld [vmem:[%s1075_s0 + $0x88] sm:$0xff]  ;;  %v784_v55 = vld [vmem:[%s1074_s1 + $0x110] sm:$0xff]   ;;  %v60_v58 = vpack.c.bf16 %v30_v52, %v25_v51  ;;  %v38_v59 = vld [vmem:[%s1075_s0 + $0xb8] sm:$0xff] }
  0x12   :  { %687 = vmatprep.subr.bf16.mxu1 %v768_v17  ;;  %480 = vmatprep.mubr.bf16.mxu1 %v58_v39  ;;  %v36_v56 = vld [vmem:[%s1075_s0 + $0xa8] sm:$0xff]  ;;  %v41_v57 = vld [vmem:[%s1075_s0 + $0xd0] sm:$0xff]  ;;  %v43_v60 = vld [vmem:[%s1075_s0 + $0xe0] sm:$0xff]  ;;  %v62_v61 = vpack.c.bf16 %v32_v54, %v27_v53 }
  0x13   :  { %v66_v62 = vpack.c.bf16 %v41_v57, %v36_v56  ;;  %v68_v63 = vpack.c.bf16 %v43_v60, %v38_v59  ;;  %v785_v0 = vld [vmem:[%s1074_s1 + $0x108] sm:$0xff]   ;;  %v35_v1 = vld [vmem:[%s1075_s0 + $0xa0] sm:$0xff]  ;;  %v37_v3 = vld [vmem:[%s1075_s0 + $0xb0] sm:$0xff] }
  0x14   :  { %648 = vmatpush3.bf16.msra.mxu0 %v769_v18  ;;  %v40_v2 = vld [vmem:[%s1075_s0 + $0xc8] sm:$0xff]  ;;  %v42_v4 = vld [vmem:[%s1075_s0 + $0xd8] sm:$0xff]  ;;  %v51_v6 = vld [vmem:[%s1075_s0 + $0x120] sm:$0xff] }
  0x15   :  { %688 = vmatpush3.bf16.msra.mxu1 %v770_v19  ;;  %649 = vmatprep.subr.bf16.mxu0 %v771_v20  ;;  %v46_v5 = vld [vmem:[%s1075_s0 + $0xf8] sm:$0xff]  ;;  %v786_v7 = vld [vmem:[%s1074_s1 + $0x100] sm:$0xff]   ;;  %v48_v8 = vld [vmem:[%s1075_s0 + $0x108] sm:$0xff]  ;;  %v65_v10 = vpack.c.bf16 %v40_v2, %v35_v1  ;;  %v67_v11 = vpack.c.bf16 %v42_v4, %v37_v3 }
  0x16   :  { %689 = vmatprep.subr.bf16.mxu1 %v772_v21  ;;  %v53_v9 = vld [vmem:[%s1075_s0 + $0x130] sm:$0xff]  ;;  %v71_v12 = vpack.c.bf16 %v51_v6, %v46_v5  ;;  %v50_v15 = vld [vmem:[%s1075_s0 + $0x118] sm:$0xff]  ;;  %v47_v16 = vld [vmem:[%s1075_s0 + $0x100] sm:$0xff] }
  0x17   :  { %v73_v13 = vpack.c.bf16 %v53_v9, %v48_v8  ;;  %v45_v14 = vld [vmem:[%s1075_s0 + $0xf0] sm:$0xff]  ;;  %v52_v17 = vld [vmem:[%s1075_s0 + $0x128] sm:$0xff]  ;;  %v19_v18 = vld [vmem:[%s1075_s0 + $0x20] sm:$0xff] }
  0x18   :  { %650 = vmatpush3.bf16.msra.mxu0 %v773_v22  ;;  %v24_v19 = vld [vmem:[%s1075_s0 + $0x48] sm:$0xff]  ;;  %v39_v20 = vld [vmem:[%s1075_s0 + $0xc0] sm:$0xff]  ;;  %v70_v22 = vpack.c.bf16 %v50_v15, %v45_v14 }
  0x19   :  { %690 = vmatpush3.bf16.msra.mxu1 %v774_v23  ;;  %651 = vmatprep.subr.bf16.mxu0 %v775_v24  ;;  %v44_v21 = vld [vmem:[%s1075_s0 + $0xe8] sm:$0xff]  ;;  %v72_v23 = vpack.c.bf16 %v52_v17, %v47_v16  ;;  %v59_v24 = vpack.c.bf16 %v24_v19, %v19_v18  ;;  %v598_v59 = vld [vmem:[%s1076_s2] ss:$0 sm:$0xff] }
  0x1a   :  { %691 = vmatprep.subr.bf16.mxu1 %v776_v25  ;;  %v69_v25 = vpack.c.bf16 %v44_v21, %v39_v20 }
  0x1c   :  { %652 = vmatpush3.bf16.msra.mxu0 %v777_v26  ;;  %v29_v26 = vld [vmem:[%s1075_s0 + $0x70] sm:$0xff] }
  0x1d   :  { %692 = vmatpush3.bf16.msra.mxu1 %v778_v27  ;;  %653 = vmatprep.subr.bf16.mxu0 %v779_v28  ;;  %v34_v27 = vld [vmem:[%s1075_s0 + $0x98] sm:$0xff]  ;;  %v49_v28 = vld [vmem:[%s1075_s0 + $0x110] sm:$0xff] }
  0x1e   :  { %693 = vmatprep.subr.bf16.mxu1 %v780_v29  ;;  %v54_v29 = vld [vmem:[%s1075_s0 + $0x138] sm:$0xff] }
  0x20   :  { %654 = vmatpush3.bf16.msra.mxu0 %v781_v30  ;;  %v64_v30 = vpack.c.bf16 %v34_v27, %v29_v26 }
  0x21   :  { %694 = vmatpush3.bf16.msra.mxu1 %v782_v31  ;;  %727 = vmatprep.subr.bf16.mxu0 %v783_v44  ;;  %v74_v31 = vpack.c.bf16 %v54_v29, %v49_v28 }
  0x22   :  { %743 = vmatprep.subr.bf16.mxu1 %v783_v44 }
  0x23   :  { %416 = vmatmul.mubr.bf16.vlgmr.msra.gmra.mxu0 %v55_v40 }
  0x24   :  { %481 = vmatmul.mubr.bf16.vlgmr.msra.gmra.mxu1 %v57_v43  ;;  %728 = vmatpush3.bf16.msra.mxu0 %v783_v44 }
  0x25   :  { %747 = vmatpush3.bf16.msra.mxu1 %v783_v44  ;;  %423 = vmatprep.mubr.bf16.mxu0 %v61_v49 }
  0x26   :  { %488 = vmatprep.mubr.bf16.mxu1 %v63_v50  ;;  %729 = vmatprep.subr.bf16.mxu0 %v784_v55 }
  0x27   :  { %744 = vmatprep.subr.bf16.mxu1 %v784_v55 }
  0x28   :  { %730 = vmatpush3.bf16.msra.mxu0 %v784_v55 }
  0x29   :  { %748 = vmatpush3.bf16.msra.mxu1 %v784_v55  ;;  %731 = vmatprep.subr.bf16.mxu0 %v785_v0 }
  0x2a   :  { %745 = vmatprep.subr.bf16.mxu1 %v785_v0 }
  0x2b   :  { %424 = vmatmul.mubr.bf16.gmra.mxu0 %v60_v58 }
  0x2c   :  { %489 = vmatmul.mubr.bf16.gmra.mxu1 %v62_v61  ;;  %431 = vmatprep.mubr.bf16.mxu0 %v66_v62 }
  0x2d   :  { %496 = vmatprep.mubr.bf16.mxu1 %v68_v63  ;;  %732 = vmatpush3.bf16.msra.mxu0 %v785_v0 }
  0x2e   :  { %749 = vmatpush3.bf16.msra.mxu1 %v785_v0  ;;  %733 = vmatprep.subr.bf16.mxu0 %v786_v7 }
  0x2f   :  { %746 = vmatprep.subr.bf16.mxu1 %v786_v7 }
  0x31   :  { %734 = vmatpush3.bf16.msra.mxu0 %v786_v7 }
  0x32   :  { %750 = vmatpush3.bf16.msra.mxu1 %v786_v7 }
  0x33   :  { %432 = vmatmul.mubr.bf16.gmra.mxu0 %v65_v10 }
  0x34   :  { %497 = vmatmul.mubr.bf16.gmra.mxu1 %v67_v11  ;;  %439 = vmatprep.mubr.bf16.mxu0 %v71_v12 }
  0x35   :  { %504 = vmatprep.mubr.bf16.mxu1 %v73_v13 }
  0x3b   :  { %440 = vmatmul.mubr.bf16.gmra.mxu0 %v70_v22 }
  0x3c   :  { %505 = vmatmul.mubr.bf16.gmra.mxu1 %v72_v23  ;;  %735 = vmatprep.mubr.msk.bf16.mxu0 %vm370_vm0, %v59_v24 }
  0x3d   :  { %739 = vmatprep.mubr.msk.bf16.mxu1 %vm370_vm0, %v69_v25 }
  0x43   :  { %736 = vmatmul.mubr.msk.bf16.vlgmr.msra.gmra.mxu0 %vm370_vm0, %v64_v30 }
  0x44   :  { %740 = vmatmul.mubr.msk.bf16.vlgmr.msra.gmra.mxu1 %vm370_vm0, %v74_v31 }
  0xe3   :  { %v655_v32 = vpop.f32.mrf.mxu0 }
  0xe4   :  { %v695_v33 = vpop.f32.mrf.mxu1 }
  0xe5   :  { %v656_v34 = vpop.f32.mrf.mxu0 }
  0xe6   :  { %v696_v35 = vpop.f32.mrf.mxu1  ;;  %v657_v57 = vadd.f32 %v656_v34, %v655_v32 }
  0xe7   :  { %v658_v36 = vpop.f32.mrf.mxu0  ;;  %v697_v10 = vadd.f32 %v696_v35, %v695_v33 }
  0xe8   :  { %v698_v37 = vpop.f32.mrf.mxu1  ;;  %v418_v3 = vadd.f32 %v657_v57, %v598_v59 }
  0xe9   :  { %v659_v38 = vpop.f32.mrf.mxu0 }
  0xea   :  { %v699_v39 = vpop.f32.mrf.mxu1  ;;  %v660_v4 = vadd.f32 %v659_v38, %v658_v36  ;;  %v483_v22 = vadd.f32 %v697_v10, %v418_v3 }
  0xeb   :  { %v661_v40 = vpop.f32.mrf.mxu0  ;;  %v700_v28 = vadd.f32 %v699_v39, %v698_v37 }
  0xec   :  { %v701_v41 = vpop.f32.mrf.mxu1  ;;  %v421_v19 = vadd.f32 %v660_v4, %v598_v59 }
  0xed   :  { %v662_v42 = vpop.f32.mrf.mxu0 }
  0xee   :  { %v702_v43 = vpop.f32.mrf.mxu1  ;;  %v663_v55 = vadd.f32 %v662_v42, %v661_v40 }
  0xef   :  { %v664_v44 = vpop.f32.mrf.mxu0  ;;  %v703_v6 = vadd.f32 %v702_v43, %v701_v41 }
  0xf0   :  { %v704_v45 = vpop.f32.mrf.mxu1  ;;  %v426_v63 = vadd.f32 %v663_v55, %v598_v59 }
  0xf1   :  { %v665_v46 = vpop.f32.mrf.mxu0 }
  0xf2   :  { %v705_v47 = vpop.f32.mrf.mxu1  ;;  %v666_v0 = vadd.f32 %v665_v46, %v664_v44  ;;  %v491_v17 = vadd.f32 %v703_v6, %v426_v63 }
  0xf3   :  { %v667_v48 = vpop.f32.mrf.mxu0  ;;  %v706_v23 = vadd.f32 %v705_v47, %v704_v45  ;;  %v486_v45 = vadd.f32 %v700_v28, %v421_v19 }
  0xf4   :  { %v707_v49 = vpop.f32.mrf.mxu1  ;;  %v429_v14 = vadd.f32 %v666_v0, %v598_v59 }
  0xf5   :  { %v668_v50 = vpop.f32.mrf.mxu0 }
  0xf6   :  { %v708_v51 = vpop.f32.mrf.mxu1  ;;  %v669_v61 = vadd.f32 %v668_v50, %v667_v48  ;;  %v494_v36 = vadd.f32 %v706_v23, %v429_v14 }
  0xf7   :  { %v670_v52 = vpop.f32.mrf.mxu0  ;;  %v709_v20 = vadd.f32 %v708_v51, %v707_v49 }
  0xf8   :  { %v710_v53 = vpop.f32.mrf.mxu1  ;;  %v434_v11 = vadd.f32 %v669_v61, %v598_v59 }
  0xf9   :  { %v671_v54 = vpop.f32.mrf.mxu0 }
  0xfa   :  { %v711_v56 = vpop.f32.mrf.mxu1  ;;  %v672_v12 = vadd.f32 %v671_v54, %v670_v52  ;;  %v499_v32 = vadd.f32 %v709_v20, %v434_v11 }
  0xfb   :  { %v673_v58 = vpop.f32.mrf.mxu0  ;;  %v712_v40 = vadd.f32 %v711_v56, %v710_v53 }
  0xfc   :  { %v713_v60 = vpop.f32.mrf.mxu1  ;;  %v437_v29 = vadd.f32 %v672_v12, %v598_v59 }
  0xfd   :  { %v674_v62 = vpop.f32.mrf.mxu0 }
  0xfe   :  { %v675_v1 = vadd.f32 %v674_v62, %v673_v58  ;;  %v714_v2 = vpop.f32.mrf.mxu1  ;;  %v502_v49 = vadd.f32 %v712_v40, %v437_v29 }
  0xff   :  { %v676_v5 = vpop.f32.mrf.mxu0  ;;  %v715_v8 = vadd.f32 %v714_v2, %v713_v60 }
 0x100   :  { %v442_v7 = vadd.f32 %v675_v1, %v598_v59  ;;  %v716_v9 = vpop.f32.mrf.mxu1 }
 0x101   :  { %v677_v13 = vpop.f32.mrf.mxu0 }
 0x102   :  { %v678_v15 = vadd.f32 %v677_v13, %v676_v5  ;;  %v717_v16 = vpop.f32.mrf.mxu1  ;;  %v507_v18 = vadd.f32 %v715_v8, %v442_v7 }
 0x103   :  { %v737_v21 = vpop.f32.mrf.mxu0  ;;  %v718_v25 = vadd.f32 %v717_v16, %v716_v9 }
 0x104   :  { %v445_v24 = vadd.f32 %v678_v15, %v598_v59  ;;  %v556_v26 = vadd.f32 %v737_v21, %v491_v17  ;;  %v741_v27 = vpop.f32.mrf.mxu1 }
 0x105   :  { %v572_v30 = vadd.f32 %v741_v27, %v507_v18  ;;  %v547_v31 = vpop.f32.mrf.mxu0 }
 0x106   :  { %v580_v33 = vmax.f32 %v556_v26, 0.0  ;;  %v548_v34 = vadd.f32 %v547_v31, %v483_v22  ;;  %v563_v35 = vpop.f32.mrf.mxu1  ;;  %v510_v38 = vadd.f32 %v718_v25, %v445_v24 }
 0x107   :  { %v584_v41 = vmax.f32 %v572_v30, 0.0  ;;  %v564_v42 = vadd.f32 %v563_v35, %v499_v32  ;;  %v738_v43 = vpop.f32.mrf.mxu0 }
 0x108   :  { %588 = vst.msk [vmem:[%s1077_s3 + $0x10] sm:$0xff] %vm370_vm0, %v580_v33  ;;  %v578_v44 = vmax.f32 %v548_v34, 0.0  ;;  %v559_v37 = vadd.f32 %v738_v43, %v494_v36  ;;  %v742_v39 = vpop.f32.mrf.mxu1 }
 0x109   :  { %592 = vst.msk [vmem:[%s1077_s3 + $0x30] sm:$0xff] %vm370_vm0, %v584_v41  ;;  %v582_v46 = vmax.f32 %v564_v42, 0.0  ;;  %v575_v47 = vadd.f32 %v742_v39, %v510_v38  ;;  %v550_v48 = vpop.f32.mrf.mxu0 }
 0x10a   :  { %586 = vst.msk [vmem:[%s1077_s3] sm:$0xff] %vm370_vm0, %v578_v44  ;;  %v581_v50 = vmax.f32 %v559_v37, 0.0  ;;  %v551_v51 = vadd.f32 %v550_v48, %v486_v45  ;;  %v566_v52 = vpop.f32.mrf.mxu1 }
 0x10b   :  { %590 = vst.msk [vmem:[%s1077_s3 + $0x20] sm:$0xff] %vm370_vm0, %v582_v46  ;;  %v585_v53 = vmax.f32 %v575_v47, 0.0  ;;  %v567_v54 = vadd.f32 %v566_v52, %v502_v49 }
 0x10c   :  { %589 = vst.msk [vmem:[%s1077_s3 + $0x18] sm:$0xff] %vm370_vm0, %v581_v50  ;;  %v579_v55 = vmax.f32 %v551_v51, 0.0 }
 0x10d   :  { %593 = vst.msk [vmem:[%s1077_s3 + $0x38] sm:$0xff] %vm370_vm0, %v585_v53  ;;  %v583_v56 = vmax.f32 %v567_v54, 0.0 }
 0x10e   :  { %587 = vst.msk [vmem:[%s1077_s3 + $0x8] sm:$0xff] %vm370_vm0, %v579_v55 }
 0x10f   :  { %591 = vst.msk [vmem:[%s1077_s3 + $0x28] sm:$0xff] %vm370_vm0, %v583_v56 }

// kernel: gtrxl_policy_forward.10
= control target key start
LH: loop header
LB: loop body
LE: loop exit
PB: predicated region body
PF: predicated region fallthrough
CT: control target
= control target key end

     0   :  { %vm1045_vm0 = vmmov 0   ;;  %vm752_vm1 = vcmask 261120   ;;  %vm798_vm2 = vcmask 257024   ;;  %s1303_s1 = inlined_call_operand.vmem [shape: bf16[1024,32], index: 1, kind: input, shape index: {}]   ;;  %s1304_s0 = inlined_call_operand.vmem [shape: f32[4,1024], index: 0, kind: input, shape index: {}]   ;;  %s1305_s3 = inlined_call_operand.vmem [shape: bf16[32,32], index: 3, kind: input, shape index: {}]   ;;  %s1306_s2 = inlined_call_operand.vmem [shape: f32[1,32], index: 2, kind: input, shape index: {}]   ;;  %s1307_s4 = inlined_call_operand.vmem [shape: f32[1,32], index: 4, kind: input, shape index: {}]   ;;  %s1308_s5 = inlined_call_operand.vmem [shape: f32[4,32], index: 5, kind: input, shape index: {}]   ;;  %s1309_s6 = inlined_call_operand.vmem [shape: f32[4,32], index: 6, kind: output, shape index: {}]  }
   0x1   :  { %v974_v0 = vld [vmem:[%s1303_s1 + $0x78] sm:$0xff]   ;;  %v978_v4 = vld [vmem:[%s1303_s1 + $0x70] sm:$0xff]   ;;  %v982_v8 = vld [vmem:[%s1303_s1 + $0x68] sm:$0xff]  }
   0x2   :  { %v975_v1 = vld [vmem:[%s1303_s1 + $0xf8] sm:$0xff]   ;;  %873 = vmatprep.subr.bf16.mxu0 %v974_v0  ;;  %v979_v5 = vld [vmem:[%s1303_s1 + $0xf0] sm:$0xff]   ;;  %v983_v9 = vld [vmem:[%s1303_s1 + $0xe8] sm:$0xff]  }
   0x3   :  { %v976_v2 = vld [vmem:[%s1303_s1 + $0x38] sm:$0xff]   ;;  %895 = vmatprep.subr.bf16.mxu1 %v975_v1  ;;  %v980_v6 = vld [vmem:[%s1303_s1 + $0x30] sm:$0xff]   ;;  %v984_v10 = vld [vmem:[%s1303_s1 + $0x28] sm:$0xff]  }
   0x4   :  { %v977_v3 = vld [vmem:[%s1303_s1 + $0xb8] sm:$0xff]   ;;  %874 = vmatpush3.bf16.msra.mxu0 %v976_v2  ;;  %v981_v7 = vld [vmem:[%s1303_s1 + $0xb0] sm:$0xff]   ;;  %v985_v11 = vld [vmem:[%s1303_s1 + $0xa8] sm:$0xff]  }
   0x5   :  { %896 = vmatpush3.bf16.msra.mxu1 %v977_v3  ;;  %875 = vmatprep.subr.bf16.mxu0 %v978_v4  ;;  %v986_v12 = vld [vmem:[%s1303_s1 + $0x60] sm:$0xff]   ;;  %v990_v16 = vld [vmem:[%s1303_s1 + $0x58] sm:$0xff]   ;;  %v994_v20 = vld [vmem:[%s1303_s1 + $0x50] sm:$0xff]  }
   0x6   :  { %897 = vmatprep.subr.bf16.mxu1 %v979_v5  ;;  %v987_v13 = vld [vmem:[%s1303_s1 + $0xe0] sm:$0xff]   ;;  %v991_v17 = vld [vmem:[%s1303_s1 + $0xd8] sm:$0xff]   ;;  %v995_v21 = vld [vmem:[%s1303_s1 + $0xd0] sm:$0xff]  }
   0x7   :  { %v988_v14 = vld [vmem:[%s1303_s1 + $0x20] sm:$0xff]   ;;  %v992_v18 = vld [vmem:[%s1303_s1 + $0x18] sm:$0xff]   ;;  %v996_v22 = vld [vmem:[%s1303_s1 + $0x10] sm:$0xff]  }
   0x8   :  { %876 = vmatpush3.bf16.msra.mxu0 %v980_v6  ;;  %v989_v15 = vld [vmem:[%s1303_s1 + $0xa0] sm:$0xff]   ;;  %v993_v19 = vld [vmem:[%s1303_s1 + $0x98] sm:$0xff]   ;;  %v997_v23 = vld [vmem:[%s1303_s1 + $0x90] sm:$0xff]  }
   0x9   :  { %898 = vmatpush3.bf16.msra.mxu1 %v981_v7  ;;  %877 = vmatprep.subr.bf16.mxu0 %v982_v8  ;;  %v998_v24 = vld [vmem:[%s1303_s1 + $0x48] sm:$0xff]   ;;  %v1002_v28 = vld [vmem:[%s1303_s1 + $0x40] sm:$0xff]   ;;  %v1008_v36 = vld [vmem:[%s1303_s1 + $0x178] sm:$0xff]  }
   0xa   :  { %899 = vmatprep.subr.bf16.mxu1 %v983_v9  ;;  %v999_v25 = vld [vmem:[%s1303_s1 + $0xc8] sm:$0xff]   ;;  %v1003_v29 = vld [vmem:[%s1303_s1 + $0xc0] sm:$0xff]   ;;  %v1009_v39 = vld [vmem:[%s1303_s1 + $0x1f8] sm:$0xff]  }
   0xb   :  { %v1000_v26 = vld [vmem:[%s1303_s1 + $0x8] sm:$0xff]   ;;  %v1004_v30 = vld [vmem:[%s1303_s1] sm:$0xff]   ;;  %v1010_v42 = vld [vmem:[%s1303_s1 + $0x138] sm:$0xff]  }
   0xc   :  { %878 = vmatpush3.bf16.msra.mxu0 %v984_v10  ;;  %v1001_v27 = vld [vmem:[%s1303_s1 + $0x88] sm:$0xff]   ;;  %v1005_v31 = vld [vmem:[%s1303_s1 + $0x80] sm:$0xff]   ;;  %v1011_v43 = vld [vmem:[%s1303_s1 + $0x1b8] sm:$0xff]  }
   0xd   :  { %900 = vmatpush3.bf16.msra.mxu1 %v985_v11  ;;  %879 = vmatprep.subr.bf16.mxu0 %v986_v12  ;;  %v24_v32 = vld [vmem:[%s1304_s0] sm:$0xff]  ;;  %v25_v33 = vld [vmem:[%s1304_s0 + $0x8] sm:$0xff]  ;;  %v1012_v44 = vld [vmem:[%s1303_s1 + $0x170] sm:$0xff]  }
   0xe   :  { %901 = vmatprep.subr.bf16.mxu1 %v987_v13  ;;  %v32_v34 = vcombine.high %v24_v32, %v24_v32  ;;  %v33_v35 = vcombine.high %v25_v33, %v25_v33  ;;  %v40_v37 = vpack.c.bf16 %v24_v32, %v24_v32  ;;  %v42_v38 = vpack.c.bf16 %v25_v33, %v25_v33  ;;  %v1013_v45 = vld [vmem:[%s1303_s1 + $0x1f0] sm:$0xff]   ;;  %v1016_v48 = vld [vmem:[%s1303_s1 + $0x168] sm:$0xff]   ;;  %v1020_v52 = vld [vmem:[%s1303_s1 + $0x160] sm:$0xff]  }
   0xf   :  { %v1014_v46 = vld [vmem:[%s1303_s1 + $0x130] sm:$0xff]   ;;  %v1017_v49 = vld [vmem:[%s1303_s1 + $0x1e8] sm:$0xff]   ;;  %v1021_v53 = vld [vmem:[%s1303_s1 + $0x1e0] sm:$0xff]  }
  0x10   :  { %880 = vmatpush3.bf16.msra.mxu0 %v988_v14  ;;  %v41_v40 = vpack.c.bf16 %v32_v34, %v32_v34  ;;  %v43_v41 = vpack.c.bf16 %v33_v35, %v33_v35  ;;  %v1015_v47 = vld [vmem:[%s1303_s1 + $0x1b0] sm:$0xff]   ;;  %v1018_v50 = vld [vmem:[%s1303_s1 + $0x128] sm:$0xff]   ;;  %v1022_v54 = vld [vmem:[%s1303_s1 + $0x120] sm:$0xff]  }
  0x11   :  { %902 = vmatpush3.bf16.msra.mxu1 %v989_v15  ;;  %881 = vmatprep.subr.bf16.mxu0 %v990_v16  ;;  %v1019_v51 = vld [vmem:[%s1303_s1 + $0x1a8] sm:$0xff]   ;;  %v1023_v55 = vld [vmem:[%s1303_s1 + $0x1a0] sm:$0xff]   ;;  %v1024_v56 = vld [vmem:[%s1303_s1 + $0x158] sm:$0xff]  }
  0x12   :  { %903 = vmatprep.subr.bf16.mxu1 %v991_v17  ;;  %599 = vmatprep.mubr.bf16.mxu0 %v41_v40  ;;  %v1025_v57 = vld [vmem:[%s1303_s1 + $0x1d8] sm:$0xff]   ;;  %v1028_v60 = vld [vmem:[%s1303_s1 + $0x150] sm:$0xff]   ;;  %v1032_v0 = vld [vmem:[%s1303_s1 + $0x148] sm:$0xff]   ;;  %v1044_v17 = vmov 0.0  }
  0x13   :  { %639 = vmatprep.mubr.bf16.mxu1 %v43_v41  ;;  %v1026_v58 = vld [vmem:[%s1303_s1 + $0x118] sm:$0xff]   ;;  %v1029_v61 = vld [vmem:[%s1303_s1 + $0x1d0] sm:$0xff]   ;;  %v1033_v1 = vld [vmem:[%s1303_s1 + $0x1c8] sm:$0xff]  }
  0x14   :  { %882 = vmatpush3.bf16.msra.mxu0 %v992_v18  ;;  %v1027_v59 = vld [vmem:[%s1303_s1 + $0x198] sm:$0xff]   ;;  %v1030_v62 = vld [vmem:[%s1303_s1 + $0x110] sm:$0xff]   ;;  %v1034_v2 = vld [vmem:[%s1303_s1 + $0x108] sm:$0xff]  }
  0x15   :  { %904 = vmatpush3.bf16.msra.mxu1 %v993_v19  ;;  %883 = vmatprep.subr.bf16.mxu0 %v994_v20  ;;  %v1031_v63 = vld [vmem:[%s1303_s1 + $0x190] sm:$0xff]   ;;  %v1035_v3 = vld [vmem:[%s1303_s1 + $0x188] sm:$0xff]   ;;  %v1036_v4 = vld [vmem:[%s1303_s1 + $0x140] sm:$0xff]  }
  0x16   :  { %905 = vmatprep.subr.bf16.mxu1 %v995_v21  ;;  %v1037_v5 = vld [vmem:[%s1303_s1 + $0x1c0] sm:$0xff]   ;;  %v26_v8 = vld [vmem:[%s1304_s0 + $0x10] sm:$0xff]  ;;  %v27_v10 = vld [vmem:[%s1304_s0 + $0x18] sm:$0xff] }
  0x17   :  { %v1038_v6 = vld [vmem:[%s1303_s1 + $0x100] sm:$0xff]   ;;  %v34_v9 = vcombine.high %v26_v8, %v26_v8  ;;  %v44_v11 = vpack.c.bf16 %v26_v8, %v26_v8  ;;  %v35_v12 = vcombine.high %v27_v10, %v27_v10  ;;  %v46_v14 = vpack.c.bf16 %v27_v10, %v27_v10  ;;  %v1042_v16 = vld [vmem:[%s1305_s3 + $0x8] sm:$0xff]  }
  0x18   :  { %884 = vmatpush3.bf16.msra.mxu0 %v996_v22  ;;  %v1039_v7 = vld [vmem:[%s1303_s1 + $0x180] sm:$0xff]  }
  0x19   :  { %906 = vmatpush3.bf16.msra.mxu1 %v997_v23  ;;  %885 = vmatprep.subr.bf16.mxu0 %v998_v24  ;;  %v45_v13 = vpack.c.bf16 %v34_v9, %v34_v9  ;;  %v47_v15 = vpack.c.bf16 %v35_v12, %v35_v12  ;;  %v1043_v18 = vld [vmem:[%s1305_s3] sm:$0xff]  }
  0x1a   :  { %907 = vmatprep.subr.bf16.mxu1 %v999_v25 }
  0x1c   :  { %886 = vmatpush3.bf16.msra.mxu0 %v1000_v26 }
  0x1d   :  { %908 = vmatpush3.bf16.msra.mxu1 %v1001_v27  ;;  %887 = vmatprep.subr.bf16.mxu0 %v1002_v28  ;;  %v804_v28 = vld [vmem:[%s1306_s2] ss:$0 sm:$0xff] }
  0x1e   :  { %909 = vmatprep.subr.bf16.mxu1 %v1003_v29 }
  0x20   :  { %888 = vmatpush3.bf16.msra.mxu0 %v1004_v30 }
  0x21   :  { %910 = vmatpush3.bf16.msra.mxu1 %v1005_v31  ;;  %917 = vmatprep.subr.bf16.mxu0 %v1008_v36 }
  0x22   :  { %939 = vmatprep.subr.bf16.mxu1 %v1009_v39 }
  0x23   :  { %600 = vmatmul.mubr.bf16.vlgmr.msra.gmra.mxu0 %v40_v37 }
  0x24   :  { %640 = vmatmul.mubr.bf16.vlgmr.msra.gmra.mxu1 %v42_v38  ;;  %918 = vmatpush3.bf16.msra.mxu0 %v1010_v42 }
  0x25   :  { %940 = vmatpush3.bf16.msra.mxu1 %v1011_v43  ;;  %919 = vmatprep.subr.bf16.mxu0 %v1012_v44 }
  0x26   :  { %941 = vmatprep.subr.bf16.mxu1 %v1013_v45  ;;  %679 = vmatprep.mubr.bf16.mxu0 %v45_v13 }
  0x27   :  { %719 = vmatprep.mubr.bf16.mxu1 %v47_v15 }
  0x28   :  { %920 = vmatpush3.bf16.msra.mxu0 %v1014_v46  ;;  %v869_v46 = vld [vmem:[%s1307_s4] ss:$0 sm:$0xff] }
  0x29   :  { %942 = vmatpush3.bf16.msra.mxu1 %v1015_v47  ;;  %921 = vmatprep.subr.bf16.mxu0 %v1016_v48  ;;  %v796_v48 = vld [vmem:[%s1308_s5] sm:$0xf] }
  0x2a   :  { %943 = vmatprep.subr.bf16.mxu1 %v1017_v49 }
  0x2c   :  { %922 = vmatpush3.bf16.msra.mxu0 %v1018_v50 }
  0x2d   :  { %944 = vmatpush3.bf16.msra.mxu1 %v1019_v51  ;;  %923 = vmatprep.subr.bf16.mxu0 %v1020_v52 }
  0x2e   :  { %945 = vmatprep.subr.bf16.mxu1 %v1021_v53 }
  0x30   :  { %924 = vmatpush3.bf16.msra.mxu0 %v1022_v54 }
  0x31   :  { %946 = vmatpush3.bf16.msra.mxu1 %v1023_v55  ;;  %925 = vmatprep.subr.bf16.mxu0 %v1024_v56 }
  0x32   :  { %947 = vmatprep.subr.bf16.mxu1 %v1025_v57 }
  0x34   :  { %926 = vmatpush3.bf16.msra.mxu0 %v1026_v58 }
  0x35   :  { %948 = vmatpush3.bf16.msra.mxu1 %v1027_v59  ;;  %927 = vmatprep.subr.bf16.mxu0 %v1028_v60 }
  0x36   :  { %949 = vmatprep.subr.bf16.mxu1 %v1029_v61 }
  0x38   :  { %928 = vmatpush3.bf16.msra.mxu0 %v1030_v62 }
  0x39   :  { %950 = vmatpush3.bf16.msra.mxu1 %v1031_v63  ;;  %929 = vmatprep.subr.bf16.mxu0 %v1032_v0 }
  0x3a   :  { %951 = vmatprep.subr.bf16.mxu1 %v1033_v1 }
  0x3c   :  { %930 = vmatpush3.bf16.msra.mxu0 %v1034_v2 }
  0x3d   :  { %952 = vmatpush3.bf16.msra.mxu1 %v1035_v3  ;;  %931 = vmatprep.subr.bf16.mxu0 %v1036_v4 }
  0x3e   :  { %953 = vmatprep.subr.bf16.mxu1 %v1037_v5 }
  0x40   :  { %932 = vmatpush3.bf16.msra.mxu0 %v1038_v6 }
  0x41   :  { %954 = vmatpush3.bf16.msra.mxu1 %v1039_v7  ;;  %964 = vmatprep.subr.bf16.mxu0 %v1044_v17 }
  0x43   :  { %680 = vmatmul.mubr.bf16.vlgmr.msra.gmra.mxu0 %v44_v11 }
  0x44   :  { %720 = vmatmul.mubr.bf16.vlgmr.msra.gmra.mxu1 %v46_v14  ;;  %965 = vmatpush3.bf16.msra.mxu0 %v1042_v16 }
  0x45   :  { %966 = vmatprep.subr.bf16.mxu0 %v1044_v17  ;;  %968 = vmatprep.mubr.msk.bf16.mxu0 %vm1045_vm0, %v1044_v17 }
  0x48   :  { %967 = vmatpush3.bf16.msra.mxu0 %v1043_v18 }
  0xe3   :  { %v889_v19 = vpop.f32.mrf.mxu0 }
  0xe4   :  { %v911_v20 = vpop.f32.mrf.mxu1 }
  0xe5   :  { %v890_v21 = vpop.f32.mrf.mxu0 }
  0xe6   :  { %v912_v22 = vpop.f32.mrf.mxu1  ;;  %v891_v27 = vadd.f32 %v890_v21, %v889_v19 }
  0xe7   :  { %v892_v23 = vpop.f32.mrf.mxu0  ;;  %v913_v30 = vadd.f32 %v912_v22, %v911_v20 }
  0xe8   :  { %v914_v24 = vpop.f32.mrf.mxu1  ;;  %v602_v29 = vadd.f32 %v891_v27, %v804_v28 }
  0xe9   :  { %v893_v25 = vpop.f32.mrf.mxu0 }
  0xea   :  { %v915_v26 = vpop.f32.mrf.mxu1  ;;  %v642_v34 = vadd.f32 %v913_v30, %v602_v29 }
 0x103   :  { %v933_v31 = vpop.f32.mrf.mxu0 }
 0x104   :  { %v955_v32 = vpop.f32.mrf.mxu1 }
 0x105   :  { %v934_v33 = vpop.f32.mrf.mxu0 }
 0x106   :  { %v935_v35 = vadd.f32 %v934_v33, %v933_v31  ;;  %v956_v36 = vpop.f32.mrf.mxu1 }
 0x107   :  { %v936_v37 = vpop.f32.mrf.mxu0  ;;  %v957_v39 = vadd.f32 %v956_v36, %v955_v32 }
 0x108   :  { %v682_v38 = vadd.f32 %v935_v35, %v642_v34  ;;  %v958_v40 = vpop.f32.mrf.mxu1 }
 0x109   :  { %v937_v41 = vpop.f32.mrf.mxu0 }
 0x10a   :  { %v722_v42 = vadd.f32 %v957_v39, %v682_v38  ;;  %v959_v43 = vpop.f32.mrf.mxu1 }
 0x10c   :  { %v727_v44 = vmax.f32 %v722_v42, 0.0 }
 0x10e   :  { %v728_v45 = vpack.c.bf16 %v727_v44, %v727_v44 }
 0x110   :  { %969 = vmatmul.mubr.msk.bf16.vlgmr.msra.gmra.mxu0 %vm752_vm1, %v728_v45 }
 0x1d0   :  { %v790_v47 = vpop.f32.mrf.mxu0 }
 0x1d1   :  { %v791_v49 = vadd.f32 %v869_v46, %v790_v47 }
 0x1d2   :  { %v970_v50 = vpop.f32.mrf.mxu0 }
 0x1d3   :  { %v797_v51 = vadd.f32 %v796_v48, %v791_v49 }
 0x1d4   :  { %v793_v52 = vpop.f32.mrf.mxu0 }
 0x1d5   :  { %799 = vst.msk [vmem:[%s1309_s6] sm:$0xf] %vm798_vm2, %v797_v51 }
 0x1d6   :  { %v971_v53 = vpop.f32.mrf.mxu0 }

// kernel: gtrxl_policy_forward.13
= control target key start
LH: loop header
LB: loop body
LE: loop exit
PB: predicated region body
PF: predicated region fallthrough
CT: control target
= control target key end

     0   :  { %v291_v0 = vmov 0.0   ;;  %vm292_vm0 = vmmov 0   ;;  %vm52_vm1 = vcmask 261120   ;;  %vm232_vm2 = vcmask 25600   ;;  %s369_s1 = inlined_call_operand.vmem [shape: bf16[32,32], index: 1, kind: input, shape index: {}]   ;;  %s370_s0 = inlined_call_operand.vmem [shape: f32[2,32], index: 0, kind: input, shape index: {}]   ;;  %s371_s3 = inlined_call_operand.vmem [shape: bf16[32,32], index: 3, kind: input, shape index: {}]   ;;  %s372_s5 = inlined_call_operand.vmem [shape: bf16[32,4], index: 5, kind: input, shape index: {}]   ;;  %s373_s2 = inlined_call_operand.vmem [shape: f32[1,32], index: 2, kind: input, shape index: {}]   ;;  %s374_s4 = inlined_call_operand.vmem [shape: f32[1,32], index: 4, kind: input, shape index: {}]   ;;  %s375_s6 = inlined_call_operand.vmem [shape: f32[1,4], index: 6, kind: input, shape index: {}]   ;;  %s376_s7 = inlined_call_operand.vmem [shape: f32[2,4], index: 7, kind: output, shape index: {}]  }
   0x1   :  { %259 = vmatprep.subr.bf16.mxu0 %v291_v0  ;;  %v285_v1 = vld [vmem:[%s369_s1 + $0x8] sm:$0xff]   ;;  %263 = vmatprep.mubr.msk.bf16.mxu0 %vm292_vm0, %v291_v0  ;;  %v286_v2 = vld [vmem:[%s369_s1] sm:$0xff]  }
   0x2   :  { %267 = vmatprep.subr.bf16.mxu1 %v291_v0  ;;  %271 = vmatprep.mubr.msk.bf16.mxu1 %vm292_vm0, %v291_v0  ;;  %v27_v3 = vld [vmem:[%s370_s0] sm:$0x3]  ;;  %v287_v5 = vld [vmem:[%s371_s3 + $0x8] sm:$0xff]  }
   0x3   :  { %260 = vmatpush3.bf16.msra.mxu0 %v285_v1  ;;  %v28_v4 = vpack.c.bf16 %v27_v3, %v27_v3  ;;  %268 = vmatpush3.bf16.msra.mxu1 %v287_v5  ;;  %v288_v6 = vld [vmem:[%s371_s3] sm:$0xff]   ;;  %v289_v7 = vld [vmem:[%s372_s5 + $0x8] sm:$0xff]  }
   0x4   :  { %261 = vmatprep.subr.bf16.mxu0 %v291_v0  ;;  %269 = vmatprep.subr.bf16.mxu1 %v291_v0  ;;  %v238_v8 = vld [vmem:[%s373_s2] ss:$0 sm:$0xff] }
   0x5   :  { %v290_v16 = vld [vmem:[%s372_s5] sm:$0xff]  }
   0x6   :  { %v242_v17 = vld [vmem:[%s374_s4] ss:$0 sm:$0xff] }
   0x7   :  { %262 = vmatpush3.bf16.msra.mxu0 %v286_v2  ;;  %270 = vmatpush3.bf16.msra.mxu1 %v288_v6  ;;  %v246_v25 = vld [vmem:[%s375_s6] ss:$0 sm:$0xff] }
   0x8   :  { %275 = vmatprep.subr.bf16.mxu0 %v291_v0 }
   0xa   :  { %264 = vmatmul.mubr.msk.bf16.vlgmr.msra.gmra.mxu0 %vm52_vm1, %v28_v4 }
   0xb   :  { %279 = vmatprep.mubr.msk.bf16.mxu0 %vm292_vm0, %v291_v0  ;;  %276 = vmatpush3.bf16.msra.mxu0 %v289_v7 }
   0xc   :  { %277 = vmatprep.subr.bf16.mxu0 %v291_v0 }
   0xf   :  { %278 = vmatpush3.bf16.msra.mxu0 %v290_v16 }
  0xca   :  { %v90_v9 = vpop.f32.mrf.mxu0 }
  0xcb   :  { %v91_v10 = vadd.f32 %v238_v8, %v90_v9 }
  0xcc   :  { %v265_v11 = vpop.f32.mrf.mxu0 }
  0xcd   :  { %v96_v12 = vmax.f32 %v91_v10, 0.0 }
  0xce   :  { %v93_v13 = vpop.f32.mrf.mxu0 }
  0xcf   :  { %v97_v14 = vpack.c.bf16 %v96_v12, %v96_v12 }
  0xd0   :  { %v266_v15 = vpop.f32.mrf.mxu0 }
  0xd1   :  { %272 = vmatmul.mubr.msk.bf16.vlgmr.msra.gmra.mxu1 %vm52_vm1, %v97_v14 }
 0x191   :  { %v158_v18 = vpop.f32.mrf.mxu1 }
 0x192   :  { %v159_v19 = vadd.f32 %v242_v17, %v158_v18 }
 0x193   :  { %v273_v20 = vpop.f32.mrf.mxu1 }
 0x194   :  { %v164_v21 = vmax.f32 %v159_v19, 0.0 }
 0x195   :  { %v161_v22 = vpop.f32.mrf.mxu1 }
 0x196   :  { %v165_v23 = vpack.c.bf16 %v164_v21, %v164_v21 }
 0x197   :  { %v274_v24 = vpop.f32.mrf.mxu1 }
 0x198   :  { %280 = vmatmul.mubr.msk.bf16.vlgmr.msra.gmra.mxu0 %vm52_vm1, %v165_v23 }
 0x258   :  { %v226_v26 = vpop.f32.mrf.mxu0 }
 0x259   :  { %v227_v27 = vadd.f32 %v246_v25, %v226_v26 }
 0x25a   :  { %v281_v28 = vpop.f32.mrf.mxu0 }
 0x25b   :  { %233 = vst.msk [vmem:[%s376_s7] sm:$0x3] %vm232_vm2, %v227_v27 }
 0x25c   :  { %v229_v29 = vpop.f32.mrf.mxu0 }
 0x25e   :  { %v282_v30 = vpop.f32.mrf.mxu0 }

// kernel: gtrxl_policy_forward.11
= control target key start
LH: loop header
LB: loop body
LE: loop exit
PB: predicated region body
PF: predicated region fallthrough
CT: control target
= control target key end

     0   :  { %vm49_vm0 = vcmask 257024   ;;  %v2045_v7 = vmov 0.0   ;;  %vm2046_vm1 = vmmov 0   ;;  %vm104_vm2 = vcmask 261120   ;;  %s2049_s23 = smov 88   ;;  %s2050_s24 = smov 120   ;;  %s2362_s0 = inlined_call_operand.vmem [shape: f32[4,32], index: 0, kind: input, shape index: {}]   ;;  %s2363_s3 = inlined_call_operand.vmem [shape: bf16[32,96], index: 3, kind: input, shape index: {}]   ;;  %s2364_s1 = inlined_call_operand.vmem [shape: f32[1,32], index: 1, kind: input, shape index: {}]   ;;  %s2365_s2 = inlined_call_operand.vmem [shape: f32[1,32], index: 2, kind: input, shape index: {}]   ;;  %s2366_s4 = inlined_call_operand.vmem [shape: f32[1,96], index: 4, kind: input, shape index: {}]   ;;  %s2367_s5 = inlined_call_operand.vmem [shape: bf16[32,32], index: 5, kind: input, shape index: {}]   ;;  %s2368_s13 = inlined_call_operand.vmem [shape: f32[2,32], index: 13, kind: input, shape index: {}]   ;;  %s2369_s6 = inlined_call_operand.vmem [shape: f32[1,32], index: 6, kind: input, shape index: {}]   ;;  %s2370_s9 = inlined_call_operand.vmem [shape: bf16[32,32], index: 9, kind: input, shape index: {}]   ;;  %s2371_s11 = inlined_call_operand.vmem [shape: bf16[32,32], index: 11, kind: input, shape index: {}]   ;;  %s2372_s7 = inlined_call_operand.vmem [shape: f32[1,32], index: 7, kind: input, shape index: {}]   ;;  %s2373_s8 = inlined_call_operand.vmem [shape: f32[1,32], index: 8, kind: input, shape index: {}]   ;;  %s2374_s10 = inlined_call_operand.vmem [shape: f32[1,32], index: 10, kind: input, shape index: {}]   ;;  %s2375_s12 = inlined_call_operand.vmem [shape: f32[1,32], index: 12, kind: input, shape index: {}]   ;;  %s2376_s14 = inlined_call_operand.vmem [shape: f32[4,32], index: 14, kind: output, shape index: {}]  }
   0x1   :  { %v2139_v0 = vld [vmem:[%s2362_s0] sm:$0xf]  ;;  %1869 = vmatprep.subr.bf16.mxu0 %v2045_v7  ;;  %v1997_v8 = vld [vmem:[%s2363_s3 + $0x8] sm:$0xff]   ;;  %1873 = vmatprep.mubr.msk.bf16.mxu0 %vm2046_vm1, %v2045_v7  ;;  %s2052_s25 = smov 72   ;;  %s2053_s26 = smov 104   ;;  %vm152_vm3 = vcmask 64512  }
   0x2   :  { %v50_v1 = vsel %vm49_vm0, %v2139_v0, 0.0  ;;  %1877 = vmatprep.subr.mxu1 %v2045_v7  ;;  %1879 = vmatprep.mubr.msk.f32.mxu1 %vm2046_vm1, %v2045_v7  ;;  %v1998_v9 = vld [vmem:[%s2363_s3] sm:$0xff]   ;;  %vm244_vm4 = vcmask 1041408   ;;  %vm228_vm5 = vcmask 9216   ;;  %s2054_s27 = smov 112   ;;  %s2055_s28 = smov 56  }
   0x3   :  { %51 = vadd.xlane.f32.xlu0 %v50_v1  ;;  %1870 = vmatpush3.bf16.msra.mxu0 %v1997_v8  ;;  %v1773_v14 = vld [vmem:[%s2364_s1] ss:$0 sm:$0xff]  ;;  %s2047_s1 = smov 64   ;;  %s2056_s29 = smov 40   ;;  %vm240_vm6 = vcmask 15360   ;;  %vm319_vm7 = vcmask 58368  }
   0x4   :  { %1871 = vmatprep.subr.bf16.mxu0 %v2045_v7  ;;  %v1774_v16 = vld [vmem:[%s2365_s2] ss:$0 sm:$0xff]  ;;  %s2048_s2 = smov 96   ;;  %s2057_s30 = smov 48   ;;  %vm491_vm8 = vcmask 123968   ;;  %vm663_vm9 = vcmask 189568  }
   0x5   :  { %v1775_v20 = vld [vmem:[%s2366_s4] ss:$0 sm:$0xff]  ;;  %s2051_s4 = smov 80   ;;  %s2058_s15 = smov 8   ;;  %vm835_vm10 = vcmask 255168  }
   0x6   :  { %s2059_s16 = smov 16   ;;  %s2060_s0 = smov 24  }
   0x7   :  { %1872 = vmatpush3.bf16.msra.mxu0 %v1998_v9 }
   0x8   :  { %1892 = vmatprep.subr.mxu0 %v2045_v7 }
  0x8c   :  { %v52_v2 = vpop.xlane.xlu0 %51 }
  0x8d   :  { %v54_v3 = vmul.f32 0.03125, %v52_v2 }
  0x8f   :  { %v55_v4 = vsub.f32 %v2139_v0, %v54_v3 }
  0x91   :  { %v56_v5 = vmul.f32 %v55_v4, %v55_v4 }
  0x93   :  { %v57_v6 = vsel %vm49_vm0, %v56_v5, 0.0 }
  0x94   :  { %58 = vadd.xlane.f32.xlu0 %v57_v6 }
 0x11d   :  { %v59_v10 = vpop.xlane.xlu0 %58 }
 0x11e   :  { %v60_v11 = vmul.f32 0.03125, %v59_v10 }
 0x120   :  { %v61_v12 = vadd.f32 1e-05, %v60_v11 }
 0x122   :  { %2005 = vrsqrt.f32 %v61_v12 }
 0x12f   :  { %v2006_v13 = vpop.eup %2005 }
 0x130   :  { %v63_v15 = vmul.f32 %v2006_v13, %v55_v4 }
 0x132   :  { %v71_v17 = vmul.f32 %v1773_v14, %v63_v15 }
 0x134   :  { %v79_v18 = vadd.f32 %v1774_v16, %v71_v17 }
 0x136   :  { %v80_v19 = vpack.c.bf16 %v79_v18, %v79_v18 }
 0x138   :  { %1874 = vmatmul.mubr.msk.bf16.vlgmr.msra.gmra.mxu0 %vm104_vm2, %v80_v19 }
 0x139   :  { %1894 = vmatprep.mubr.msk.f32.mxu0 %vm2046_vm1, %v2045_v7 }
 0x1f8   :  { %v142_v21 = vpop.f32.mrf.mxu0 }
 0x1f9   :  { %v2171_v22 = vadd.f32 %v1775_v20, %v142_v21 }
 0x1fa   :  { %v1875_v23 = vpop.f32.mrf.mxu0 }
 0x1fb   :  { %238 = vrot.lane.b32.xlu0 %v2171_v22, %s2047_s1  ;;  %150 = vrot.lane.b32.xlu1 %v2171_v22, %s2048_s2  ;;  %v148_v26 = vmul.f32 0.35355338, %v2171_v22  ;;  %v2182_v27 = vrot.slane %v2171_v22, 2 }
 0x1fc   :  { %v145_v24 = vpop.f32.mrf.mxu0 }
 0x1fd   :  { %v837_v33 = vrot.slane %v148_v26, 2 }
 0x1fe   :  { %v1876_v25 = vpop.f32.mrf.mxu0 }
 0x1ff   :  { %323 = vrot.lane.b32.xlu0 %v2171_v22, %s2049_s23 }
 0x203   :  { %321 = vrot.lane.b32.xlu0 %v148_v26, %s2050_s24 }
 0x207   :  { %495 = vrot.lane.b32.xlu0 %v2171_v22, %s2051_s4 }
 0x20b   :  { %667 = vrot.lane.b32.xlu0 %v2171_v22, %s2052_s25 }
 0x20f   :  { %665 = vrot.lane.b32.xlu0 %v148_v26, %s2053_s26 }
 0x213   :  { %839 = vrot.lane.b32.xlu0 %v2182_v27, %s2048_s2 }
 0x217   :  { %1006 = vrot.lane.b32.xlu0 %v2182_v27, %s2049_s23 }
 0x21b   :  { %1177 = vrot.lane.b32.xlu0 %v2182_v27, %s2051_s4 }
 0x21f   :  { %1348 = vrot.lane.b32.xlu0 %v2182_v27, %s2052_s25 }
 0x26d   :  { %v151_v28 = vpop.permute.xlu1 %150  ;;  %v239_v29 = vpop.permute.xlu0 %238 }
 0x26e   :  { %1878 = vmatpush3.xpose.msk.msra.mxu1 %vm152_vm3, %v151_v28 }
 0x26f   :  { %1882 = vmatprep.subr.mxu1 %v2045_v7 }
 0x271   :  { %1880 = vmatmul.mubr.msk.f32.vlgmr.msra.gmra.mxu1 %vm152_vm3, %v148_v26  ;;  %v324_v34 = vpop.permute.xlu0 %323 }
 0x272   :  { %1883 = vmatpush3.msk.msra.mxu1 %vm244_vm4, %v239_v29  ;;  %1884 = vmatprep.mubr.msk.f32.mxu1 %vm2046_vm1, %v2045_v7 }
 0x273   :  { %1887 = vmatprep.subr.mxu1 %v2045_v7 }
 0x275   :  { %v322_v36 = vpop.permute.xlu0 %321 }
 0x279   :  { %v496_v40 = vpop.permute.xlu0 %495 }
 0x27d   :  { %v668_v43 = vpop.permute.xlu0 %667 }
 0x281   :  { %v666_v46 = vpop.permute.xlu0 %665 }
 0x285   :  { %v840_v48 = vpop.permute.xlu0 %839 }
 0x289   :  { %v1007_v49 = vpop.permute.xlu0 %1006 }
 0x28d   :  { %v1178_v50 = vpop.permute.xlu0 %1177 }
 0x291   :  { %v1349_v51 = vpop.permute.xlu0 %1348 }
 0x331   :  { %v224_v30 = vpop.f32.mrf.mxu1 }
 0x332   :  { %v229_v31 = vsel %vm228_vm5, %v224_v30, -inf }
 0x333   :  { %230 = vmax.xlane.f32.xlu1 %v229_v31  ;;  %v1881_v32 = vpop.f32.mrf.mxu1 }
 0x344   :  { %493 = vrot.lane.b32.xlu1 %v148_v26, %s2054_s27 }
 0x348   :  { %1004 = vrot.lane.b32.xlu1 %v837_v33, %s2050_s24 }
 0x34c   :  { %1175 = vrot.lane.b32.xlu1 %v837_v33, %s2054_s27 }
 0x350   :  { %1346 = vrot.lane.b32.xlu1 %v837_v33, %s2053_s26 }
 0x354   :  { %408 = vrot.lane.b32.xlu1 %v2171_v22, %s2055_s28 }
 0x358   :  { %752 = vrot.lane.b32.xlu1 %v2171_v22, %s2056_s29 }
 0x35c   :  { %924 = vrot.lane.b32.xlu1 %v2182_v27, %s2047_s1 }
 0x3bc   :  { %v231_v35 = vpop.xlane.xlu1 %230 }
 0x3bd   :  { %v232_v37 = vsub.f32 %v224_v30, %v231_v35 }
 0x3bf   :  { %v233_v38 = vmul.f32 1.442695, %v232_v37 }
 0x3c0   :  { %v494_v39 = vpop.permute.xlu1 %493 }
 0x3c1   :  { %2007 = vpow2.f32 %v233_v38 }
 0x3c4   :  { %v1005_v41 = vpop.permute.xlu1 %1004 }
 0x3c8   :  { %v1176_v42 = vpop.permute.xlu1 %1175 }
 0x3cc   :  { %v1347_v44 = vpop.permute.xlu1 %1346 }
 0x3ce   :  { %v2203_v45 = vpop.eup %2007 }
 0x3cf   :  { %1885 = vmatmul.mubr.msk.f32.vlgmr.msra.gmra.mxu1 %vm240_vm6, %v2203_v45 }
 0x3d0   :  { %1888 = vmatpush3.xpose.msk.msra.mxu1 %vm152_vm3, %v324_v34  ;;  %v409_v47 = vpop.permute.xlu1 %408  ;;  %1889 = vmatprep.mubr.msk.f32.mxu1 %vm2046_vm1, %v2045_v7 }
 0x3d1   :  { %1893 = vmatpush3.msk.msra.mxu0 %vm244_vm4, %v409_v47  ;;  %1897 = vmatprep.subr.mxu1 %v2045_v7 }
 0x3d2   :  { %1902 = vmatprep.subr.mxu0 %v2045_v7 }
 0x3d3   :  { %1890 = vmatmul.mubr.msk.f32.vlgmr.msra.gmra.mxu1 %vm152_vm3, %v322_v36 }
 0x3d4   :  { %1898 = vmatpush3.xpose.msk.msra.mxu1 %vm152_vm3, %v496_v40  ;;  %1899 = vmatprep.mubr.msk.f32.mxu1 %vm2046_vm1, %v2045_v7  ;;  %v753_v13 = vpop.permute.xlu1 %752 }
 0x3d5   :  { %1907 = vmatprep.subr.mxu1 %v2045_v7 }
 0x3d7   :  { %1900 = vmatmul.mubr.msk.f32.vlgmr.msra.gmra.mxu1 %vm152_vm3, %v494_v39 }
 0x3d8   :  { %1908 = vmatpush3.xpose.msk.msra.mxu1 %vm152_vm3, %v668_v43  ;;  %1909 = vmatprep.mubr.msk.f32.mxu1 %vm2046_vm1, %v2045_v7  ;;  %v925_v14 = vpop.permute.xlu1 %924 }
 0x3d9   :  { %1917 = vmatprep.subr.mxu1 %v2045_v7 }
 0x3db   :  { %1910 = vmatmul.mubr.msk.f32.vlgmr.msra.gmra.mxu1 %vm152_vm3, %v666_v46 }
 0x3dc   :  { %1918 = vmatpush3.xpose.msk.msra.mxu1 %vm152_vm3, %v840_v48  ;;  %1919 = vmatprep.mubr.msk.f32.mxu1 %vm2046_vm1, %v2045_v7 }
 0x3dd   :  { %1927 = vmatprep.subr.mxu1 %v2045_v7 }
 0x3df   :  { %1920 = vmatmul.mubr.msk.f32.vlgmr.msra.gmra.mxu1 %vm152_vm3, %v837_v33 }
 0x3e0   :  { %1928 = vmatpush3.xpose.msk.msra.mxu1 %vm152_vm3, %v1007_v49  ;;  %1929 = vmatprep.mubr.msk.f32.mxu1 %vm2046_vm1, %v2045_v7 }
 0x3e1   :  { %1937 = vmatprep.subr.mxu1 %v2045_v7 }
 0x3e3   :  { %1930 = vmatmul.mubr.msk.f32.vlgmr.msra.gmra.mxu1 %vm152_vm3, %v1005_v41 }
 0x3e4   :  { %1938 = vmatpush3.xpose.msk.msra.mxu1 %vm152_vm3, %v1178_v50  ;;  %1939 = vmatprep.mubr.msk.f32.mxu1 %vm2046_vm1, %v2045_v7 }
 0x3e5   :  { %1947 = vmatprep.subr.mxu1 %v2045_v7 }
 0x3e7   :  { %1940 = vmatmul.mubr.msk.f32.vlgmr.msra.gmra.mxu1 %vm152_vm3, %v1176_v42 }
 0x3e8   :  { %1948 = vmatpush3.xpose.msk.msra.mxu1 %vm152_vm3, %v1349_v51  ;;  %1949 = vmatprep.mubr.msk.f32.mxu1 %vm2046_vm1, %v2045_v7 }
 0x3e9   :  { %1957 = vmatprep.subr.bf16.mxu1 %v2045_v7 }
 0x3eb   :  { %1950 = vmatmul.mubr.msk.f32.vlgmr.msra.gmra.mxu1 %vm152_vm3, %v1347_v44 }
 0x3ec   :  { %1961 = vmatprep.mubr.msk.bf16.mxu1 %vm2046_vm1, %v2045_v7 }
 0x48f   :  { %v2246_v52 = vpop.f32.mrf.mxu1 }
 0x491   :  { %v1886_v53 = vpop.f32.mrf.mxu1 }
 0x493   :  { %v395_v54 = vpop.f32.mrf.mxu1 }
 0x494   :  { %v399_v55 = vsel %vm228_vm5, %v395_v54, -inf }
 0x495   :  { %400 = vmax.xlane.f32.xlu0 %v399_v55  ;;  %v1891_v56 = vpop.f32.mrf.mxu1  ;;  %v235_v55 = vsel %vm228_vm5, %v2203_v45, 0.0 }
 0x497   :  { %v567_v57 = vpop.f32.mrf.mxu1 }
 0x498   :  { %v571_v58 = vsel %vm228_vm5, %v567_v57, -inf }
 0x499   :  { %572 = vmax.xlane.f32.xlu1 %v571_v58  ;;  %v1901_v59 = vpop.f32.mrf.mxu1 }
 0x49b   :  { %v739_v60 = vpop.f32.mrf.mxu1 }
 0x49c   :  { %v743_v8 = vsel %vm228_vm5, %v739_v60, -inf }
 0x49d   :  { %v1911_v61 = vpop.f32.mrf.mxu1 }
 0x49f   :  { %v911_v62 = vpop.f32.mrf.mxu1 }
 0x4a0   :  { %v915_v9 = vsel %vm228_vm5, %v911_v62, -inf }
 0x4a1   :  { %v1921_v63 = vpop.f32.mrf.mxu1 }
 0x4a3   :  { %v1078_v1 = vpop.f32.mrf.mxu1 }
 0x4a4   :  { %v1082_v11 = vsel %vm228_vm5, %v1078_v1, -inf }
 0x4a5   :  { %v1931_v2 = vpop.f32.mrf.mxu1 }
 0x4a7   :  { %v1249_v3 = vpop.f32.mrf.mxu1 }
 0x4a8   :  { %v1253_v10 = vsel %vm228_vm5, %v1249_v3, -inf }
 0x4a9   :  { %v1941_v4 = vpop.f32.mrf.mxu1 }
 0x4aa   :  { %1091 = vrot.lane.b32.xlu1 %v2182_v27, %s2055_s28 }
 0x4ab   :  { %580 = vrot.lane.b32.xlu0 %v2171_v22, %s2057_s30  ;;  %v1420_v5 = vpop.f32.mrf.mxu1 }
 0x4ac   :  { %v1424_v12 = vsel %vm228_vm5, %v1420_v5, -inf }
 0x4ad   :  { %v1951_v6 = vpop.f32.mrf.mxu1 }
 0x4ca   :  { %744 = vmax.xlane.f32.xlu0 %v743_v8 }
 0x4ce   :  { %916 = vmax.xlane.f32.xlu0 %v915_v9  ;;  %1254 = vmax.xlane.f32.xlu1 %v1253_v10 }
 0x4d2   :  { %1083 = vmax.xlane.f32.xlu0 %v1082_v11 }
 0x4d6   :  { %1425 = vmax.xlane.f32.xlu0 %v1424_v12 }
 0x4df   :  { %1433 = vrot.lane.b32.xlu1 %v2182_v27, %s2056_s29 }
 0x4ec   :  { %1262 = vrot.lane.b32.xlu0 %v2182_v27, %s2057_s30 }
 0x51e   :  { %v401_v15 = vpop.xlane.xlu0 %400 }
 0x51f   :  { %v402_v16 = vsub.f32 %v395_v54, %v401_v15 }
 0x521   :  { %v403_v17 = vmul.f32 1.442695, %v402_v16 }
 0x522   :  { %v573_v18 = vpop.xlane.xlu1 %572  ;;  %v581_v22 = vpop.permute.xlu0 %580 }
 0x523   :  { %2009 = vpow2.f32 %v403_v17  ;;  %v574_v19 = vsub.f32 %v567_v57, %v573_v18 }
 0x525   :  { %v575_v20 = vmul.f32 1.442695, %v574_v19  ;;  %v1999_v19 = vld [vmem:[%s2367_s5 + $0x8] sm:$0xff]  }
 0x526   :  { %v1092_v26 = vpop.permute.xlu1 %1091  ;;  %1958 = vmatpush3.bf16.msra.mxu1 %v1999_v19 }
 0x527   :  { %2011 = vpow2.f32 %v575_v20  ;;  %1959 = vmatprep.subr.bf16.mxu1 %v2045_v7 }
 0x530   :  { %v2010_v21 = vpop.eup %2009 }
 0x531   :  { %1895 = vmatmul.mubr.msk.f32.vlgmr.msra.gmra.mxu0 %vm240_vm6, %v2010_v21  ;;  %v405_v23 = vsel %vm228_vm5, %v2010_v21, 0.0 }
 0x532   :  { %1903 = vmatpush3.msk.msra.mxu0 %vm244_vm4, %v581_v22  ;;  %406 = vadd.xlane.f32.xlu0 %v405_v23  ;;  %v2000_v23 = vld [vmem:[%s2367_s5] sm:$0xff]  }
 0x533   :  { %1904 = vmatprep.mubr.msk.f32.mxu0 %vm2046_vm1, %v2045_v7  ;;  %1912 = vmatprep.subr.mxu0 %v2045_v7 }
 0x534   :  { %v2012_v24 = vpop.eup %2011  ;;  %1960 = vmatpush3.bf16.msra.mxu1 %v2000_v23 }
 0x535   :  { %1905 = vmatmul.mubr.msk.f32.vlgmr.msra.gmra.mxu0 %vm240_vm6, %v2012_v24  ;;  %v577_v25 = vsel %vm228_vm5, %v2012_v24, 0.0  ;;  %1973 = vmatprep.subr.bf16.mxu1 %v2045_v7 }
 0x536   :  { %1913 = vmatpush3.msk.msra.mxu0 %vm244_vm4, %v753_v13  ;;  %578 = vadd.xlane.f32.xlu0 %v577_v25 }
 0x537   :  { %1914 = vmatprep.mubr.msk.f32.mxu0 %vm2046_vm1, %v2045_v7  ;;  %1922 = vmatprep.subr.mxu0 %v2045_v7 }
 0x553   :  { %v745_v27 = vpop.xlane.xlu0 %744 }
 0x554   :  { %v746_v28 = vsub.f32 %v739_v60, %v745_v27 }
 0x556   :  { %v747_v29 = vmul.f32 1.442695, %v746_v28 }
 0x557   :  { %v917_v30 = vpop.xlane.xlu0 %916  ;;  %v1255_v31 = vpop.xlane.xlu1 %1254 }
 0x558   :  { %2013 = vpow2.f32 %v747_v29  ;;  %v918_v32 = vsub.f32 %v911_v62, %v917_v30  ;;  %v1256_v33 = vsub.f32 %v1249_v3, %v1255_v31 }
 0x55a   :  { %v919_v34 = vmul.f32 1.442695, %v918_v32  ;;  %v1257_v35 = vmul.f32 1.442695, %v1256_v33 }
 0x55b   :  { %v1084_v36 = vpop.xlane.xlu0 %1083  ;;  %v1434_v53 = vpop.permute.xlu1 %1433 }
 0x55c   :  { %2015 = vpow2.f32 %v919_v34  ;;  %v1085_v37 = vsub.f32 %v1078_v1, %v1084_v36 }
 0x55d   :  { %2017 = vpow2.f32 %v1257_v35 }
 0x55e   :  { %v1086_v38 = vmul.f32 1.442695, %v1085_v37 }
 0x55f   :  { %v1426_v39 = vpop.xlane.xlu0 %1425 }
 0x560   :  { %2019 = vpow2.f32 %v1086_v38  ;;  %v1427_v40 = vsub.f32 %v1420_v5, %v1426_v39 }
 0x562   :  { %v1428_v41 = vmul.f32 1.442695, %v1427_v40 }
 0x563   :  { %v1263_v48 = vpop.permute.xlu0 %1262 }
 0x564   :  { %2021 = vpow2.f32 %v1428_v41  ;;  %v1585_v41 = vld [vmem:[%s2368_s13] sm:$0x3] }
 0x565   :  { %v2014_v42 = vpop.eup %2013 }
 0x566   :  { %1915 = vmatmul.mubr.msk.f32.vlgmr.msra.gmra.mxu0 %vm240_vm6, %v2014_v42  ;;  %v749_v50 = vsel %vm228_vm5, %v2014_v42, 0.0  ;;  %v1586_v42 = vsub.f32 0.0, %v1585_v41 }
 0x567   :  { %1923 = vmatpush3.msk.msra.mxu0 %vm244_vm4, %v925_v14  ;;  %1924 = vmatprep.mubr.msk.f32.mxu0 %vm2046_vm1, %v2045_v7 }
 0x568   :  { %1932 = vmatprep.subr.mxu0 %v2045_v7 }
 0x569   :  { %v2016_v43 = vpop.eup %2015 }
 0x56a   :  { %v2018_v44 = vpop.eup %2017  ;;  %1925 = vmatmul.mubr.msk.f32.vlgmr.msra.gmra.mxu0 %vm240_vm6, %v2016_v43  ;;  %v921_v56 = vsel %vm228_vm5, %v2016_v43, 0.0  ;;  %v1587_v43 = vmul.f32 1.442695, %v1586_v42 }
 0x56b   :  { %1933 = vmatpush3.msk.msra.mxu0 %vm244_vm4, %v1092_v26  ;;  %v1259_v46 = vsel %vm228_vm5, %v2018_v44, 0.0  ;;  %1934 = vmatprep.mubr.msk.f32.mxu0 %vm2046_vm1, %v2045_v7 }
 0x56c   :  { %1260 = vadd.xlane.f32.xlu0 %v1259_v46  ;;  %1942 = vmatprep.subr.mxu0 %v2045_v7 }
 0x56d   :  { %v2020_v47 = vpop.eup %2019 }
 0x56e   :  { %1935 = vmatmul.mubr.msk.f32.vlgmr.msra.gmra.mxu0 %vm240_vm6, %v2020_v47  ;;  %v1088_v49 = vsel %vm228_vm5, %v2020_v47, 0.0  ;;  %v1592_v47 = vlaneseq }
 0x56f   :  { %1943 = vmatpush3.msk.msra.mxu0 %vm244_vm4, %v1263_v48  ;;  %1089 = vadd.xlane.f32.xlu1 %v1088_v49 }
 0x570   :  { %750 = vadd.xlane.f32.xlu0 %v749_v50  ;;  %1944 = vmatprep.mubr.msk.f32.mxu0 %vm2046_vm1, %v2045_v7  ;;  %v1593_v48 = vshrl.u32 %v1592_v47, 7 }
 0x571   :  { %v2022_v51 = vpop.eup %2021  ;;  %1952 = vmatprep.subr.mxu0 %v2045_v7 }
 0x572   :  { %1945 = vmatmul.mubr.msk.f32.vlgmr.msra.gmra.mxu0 %vm240_vm6, %v2018_v44  ;;  %v1430_v54 = vsel %vm228_vm5, %v2022_v51, 0.0  ;;  %v1594_v49 = vsub.s32 0, %v1593_v48  ;;  %v1764_v23 = vsub.s32 1, %v1593_v48 }
 0x573   :  { %1953 = vmatpush3.msk.msra.mxu0 %vm244_vm4, %v1434_v53  ;;  %1431 = vadd.xlane.f32.xlu1 %v1430_v54 }
 0x574   :  { %236 = vadd.xlane.f32.xlu0 %v235_v55  ;;  %1954 = vmatprep.mubr.msk.f32.mxu0 %vm2046_vm1, %v2045_v7 }
 0x575   :  { %1965 = vmatprep.subr.bf16.mxu0 %v2045_v7 }
 0x576   :  { %1955 = vmatmul.mubr.msk.f32.vlgmr.msra.gmra.mxu0 %vm240_vm6, %v2022_v51  ;;  %v1811_v51 = vld [vmem:[%s2369_s6] ss:$0 sm:$0xff] }
 0x577   :  { %922 = vadd.xlane.f32.xlu1 %v921_v56  ;;  %1969 = vmatprep.mubr.msk.bf16.mxu0 %vm2046_vm1, %v2045_v7 }
 0x5bb   :  { %v407_v57 = vpop.xlane.xlu0 %406 }
 0x5bc   :  { %2023 = vrcp.f32 %v407_v57 }
 0x5bf   :  { %v579_v58 = vpop.xlane.xlu0 %578 }
 0x5c0   :  { %2025 = vrcp.f32 %v579_v58 }
 0x5c9   :  { %v2024_v45 = vpop.eup %2023 }
 0x5cd   :  { %v2026_v62 = vpop.eup %2025 }
 0x5f1   :  { %v481_v59 = vpop.f32.mrf.mxu0 }
 0x5f2   :  { %v486_v60 = vmul.f32 %v2024_v45, %v481_v59 }
 0x5f3   :  { %v1896_v61 = vpop.f32.mrf.mxu0 }
 0x5f4   :  { %488 = vrot.lane.b32.xlu0 %v486_v60, %s2058_s15 }
 0x5f5   :  { %v1261_v63 = vpop.xlane.xlu0 %1260  ;;  %v653_v1 = vpop.f32.mrf.mxu0 }
 0x5f6   :  { %v658_v2 = vmul.f32 %v2026_v62, %v653_v1 }
 0x5f7   :  { %v1906_v3 = vpop.f32.mrf.mxu0 }
 0x5f8   :  { %660 = vrot.lane.b32.xlu1 %v658_v2, %s2059_s16  ;;  %v1090_v9 = vpop.xlane.xlu1 %1089  ;;  %v2001_v3 = vld [vmem:[%s2370_s9 + $0x8] sm:$0xff]  }
 0x5f9   :  { %v751_v4 = vpop.xlane.xlu0 %750  ;;  %1966 = vmatpush3.bf16.msra.mxu0 %v2001_v3 }
 0x5fa   :  { %1967 = vmatprep.subr.bf16.mxu0 %v2045_v7 }
 0x5fc   :  { %v1432_v10 = vpop.xlane.xlu1 %1431 }
 0x5fd   :  { %v237_v5 = vpop.xlane.xlu0 %236 }
 0x5fe   :  { %2027 = vrcp.f32 %v237_v5 }
 0x5ff   :  { %2029 = vrcp.f32 %v751_v4  ;;  %v2003_v4 = vld [vmem:[%s2371_s11 + $0x8] sm:$0xff]  }
 0x600   :  { %v923_v11 = vpop.xlane.xlu1 %922 }
 0x601   :  { %2031 = vrcp.f32 %v923_v11 }
 0x602   :  { %2033 = vrcp.f32 %v1090_v9 }
 0x603   :  { %2035 = vrcp.f32 %v1261_v63 }
 0x604   :  { %2037 = vrcp.f32 %v1432_v10  ;;  %v1815_v10 = vld [vmem:[%s2372_s7] ss:$0 sm:$0xff] }
 0x605   :  { %2039 = vpow2.f32 %v1587_v43 }
 0x60b   :  { %v2028_v6 = vpop.eup %2027 }
 0x60c   :  { %v318_v8 = vmul.f32 %v2028_v6, %v2246_v52  ;;  %v2030_v12 = vpop.eup %2029 }
 0x60e   :  { %320 = vst.msk [vmem:[#allocation2] sm:$0x3] %vm319_vm7, %v318_v8  ;;  %v2032_v16 = vpop.eup %2031 }
 0x60f   :  { %v2034_v20 = vpop.eup %2033 }
 0x610   :  { %v2036_v25 = vpop.eup %2035 }
 0x611   :  { %v2038_v29 = vpop.eup %2037 }
 0x612   :  { %v2040_v44 = vpop.eup %2039 }
 0x613   :  { %v1589_v46 = vadd.f32 1.0, %v2040_v44 }
 0x615   :  { %2041 = vrcp.f32 %v1589_v46 }
 0x622   :  { %v2042_v50 = vpop.eup %2041 }
 0x623   :  { %v1595_v53 = vrot.slane %v2042_v50, %v1594_v49 }
 0x626   :  { %v825_v13 = vpop.f32.mrf.mxu0 }
 0x627   :  { %v830_v14 = vmul.f32 %v2030_v12, %v825_v13  ;;  %v1816_v12 = vld [vmem:[%s2373_s8] ss:$0 sm:$0xff] }
 0x628   :  { %v1916_v15 = vpop.f32.mrf.mxu0 }
 0x629   :  { %832 = vrot.lane.b32.xlu0 %v830_v14, %s2060_s0 }
 0x62a   :  { %v997_v17 = vpop.f32.mrf.mxu0 }
 0x62b   :  { %v1002_v18 = vmul.f32 %v2032_v16, %v997_v17  ;;  %v1817_v16 = vld [vmem:[%s2374_s10] ss:$0 sm:$0xff] }
 0x62c   :  { %v1926_v52 = vpop.f32.mrf.mxu0 }
 0x62d   :  { %1003 = vst.msk [vmem:[#allocation2 + $0x2] sm:$0x3] %vm319_vm7, %v1002_v18 }
 0x62e   :  { %v1164_v21 = vpop.f32.mrf.mxu0 }
 0x62f   :  { %v1169_v22 = vmul.f32 %v2034_v20, %v1164_v21 }
 0x630   :  { %v1936_v24 = vpop.f32.mrf.mxu0 }
 0x631   :  { %1171 = vrot.lane.b32.xlu1 %v1169_v22, %s2058_s15  ;;  %v1821_v24 = vld [vmem:[%s2375_s12] ss:$0 sm:$0xff] }
 0x632   :  { %v1335_v26 = vpop.f32.mrf.mxu0 }
 0x633   :  { %v1340_v27 = vmul.f32 %v2036_v25, %v1335_v26  ;;  %v1765_v25 = vrot.slane %v2042_v50, %v1764_v23 }
 0x634   :  { %v1946_v28 = vpop.f32.mrf.mxu0 }
 0x635   :  { %1342 = vrot.lane.b32.xlu1 %v1340_v27, %s2059_s16 }
 0x636   :  { %v1506_v30 = vpop.f32.mrf.mxu0 }
 0x637   :  { %v1511_v31 = vmul.f32 %v2038_v29, %v1506_v30 }
 0x638   :  { %v1956_v32 = vpop.f32.mrf.mxu0 }
 0x639   :  { %1513 = vrot.lane.b32.xlu1 %v1511_v31, %s2060_s0 }
 0x666   :  { %v489_v33 = vpop.permute.xlu0 %488 }
 0x667   :  { %492 = vst.msk [vmem:[#allocation2] sm:$0x3] %vm491_vm8, %v489_v33 }
 0x66a   :  { %v661_v34 = vpop.permute.xlu1 %660 }
 0x66b   :  { %664 = vst.msk [vmem:[#allocation2] sm:$0x3] %vm663_vm9, %v661_v34 }
 0x69b   :  { %v833_v35 = vpop.permute.xlu0 %832 }
 0x69c   :  { %836 = vst.msk [vmem:[#allocation2] sm:$0x3] %vm835_vm10, %v833_v35 }
 0x6a3   :  { %v1172_v36 = vpop.permute.xlu1 %1171 }
 0x6a4   :  { %1174 = vst.msk [vmem:[#allocation2 + $0x2] sm:$0x3] %vm491_vm8, %v1172_v36 }
 0x6a7   :  { %v1343_v37 = vpop.permute.xlu1 %1342 }
 0x6a8   :  { %1345 = vst.msk [vmem:[#allocation2 + $0x2] sm:$0x3] %vm663_vm9, %v1343_v37 }
 0x6ab   :  { %v1514_v38 = vpop.permute.xlu1 %1513 }
 0x6ac   :  { %1516 = vst.msk [vmem:[#allocation2 + $0x2] sm:$0x3] %vm835_vm10, %v1514_v38 }
 0x6b3   :  { %v1517_v39 = vld [vmem:[#allocation2] sm:$0xf] }
 0x6b4   :  { %v1518_v40 = vpack.c.bf16 %v1517_v39, %v1517_v39 }
 0x6b6   :  { %1962 = vmatmul.mubr.msk.bf16.vlgmr.msra.gmra.mxu1 %vm104_vm2, %v1518_v40 }
 0x6b7   :  { %1977 = vmatprep.mubr.msk.bf16.mxu1 %vm2046_vm1, %v2045_v7  ;;  %1974 = vmatpush3.bf16.msra.mxu1 %v2003_v4 }
 0x6b8   :  { %1975 = vmatprep.subr.bf16.mxu1 %v2045_v7  ;;  %v2004_v7 = vld [vmem:[%s2371_s11] sm:$0xff]  }
 0x6bb   :  { %1976 = vmatpush3.bf16.msra.mxu1 %v2004_v7 }
 0x776   :  { %v1579_v54 = vpop.f32.mrf.mxu1 }
 0x777   :  { %v1580_v55 = vadd.f32 %v1811_v51, %v1579_v54 }
 0x778   :  { %v1963_v56 = vpop.f32.mrf.mxu1 }
 0x779   :  { %v1596_v57 = vmul.f32 %v1595_v53, %v1580_v55 }
 0x77a   :  { %v1582_v58 = vpop.f32.mrf.mxu1 }
 0x77b   :  { %v1597_v45 = vadd.f32 %v1596_v57, %v2139_v0  ;;  %v2002_v0 = vld [vmem:[%s2370_s9] sm:$0xff]  }
 0x77c   :  { %v1964_v59 = vpop.f32.mrf.mxu1  ;;  %1968 = vmatpush3.bf16.msra.mxu0 %v2002_v0 }
 0x77d   :  { %v1598_v60 = vsel %vm49_vm0, %v1597_v45, 0.0 }
 0x77e   :  { %1599 = vadd.xlane.f32.xlu0 %v1598_v60 }
 0x807   :  { %v1600_v61 = vpop.xlane.xlu0 %1599 }
 0x808   :  { %v1601_v62 = vmul.f32 0.03125, %v1600_v61 }
 0x80a   :  { %v1602_v63 = vsub.f32 %v1597_v45, %v1601_v62 }
 0x80c   :  { %v1603_v1 = vmul.f32 %v1602_v63, %v1602_v63 }
 0x80e   :  { %v1604_v2 = vsel %vm49_vm0, %v1603_v1, 0.0 }
 0x80f   :  { %1605 = vadd.xlane.f32.xlu1 %v1604_v2 }
 0x898   :  { %v1606_v5 = vpop.xlane.xlu1 %1605 }
 0x899   :  { %v1607_v6 = vmul.f32 0.03125, %v1606_v5 }
 0x89b   :  { %v1608_v8 = vadd.f32 1e-05, %v1607_v6 }
 0x89d   :  { %2043 = vrsqrt.f32 %v1608_v8 }
 0x8aa   :  { %v2044_v9 = vpop.eup %2043 }
 0x8ab   :  { %v1610_v11 = vmul.f32 %v2044_v9, %v1602_v63 }
 0x8ad   :  { %v1618_v13 = vmul.f32 %v1815_v10, %v1610_v11 }
 0x8af   :  { %v1626_v14 = vadd.f32 %v1816_v12, %v1618_v13 }
 0x8b1   :  { %v1627_v15 = vpack.c.bf16 %v1626_v14, %v1626_v14 }
 0x8b3   :  { %1970 = vmatmul.mubr.msk.bf16.vlgmr.msra.gmra.mxu0 %vm104_vm2, %v1627_v15 }
 0x973   :  { %v1688_v17 = vpop.f32.mrf.mxu0 }
 0x974   :  { %v1689_v18 = vadd.f32 %v1817_v16, %v1688_v17 }
 0x975   :  { %v1971_v52 = vpop.f32.mrf.mxu0 }
 0x976   :  { %v1694_v19 = vmax.f32 %v1689_v18, 0.0 }
 0x977   :  { %v1691_v20 = vpop.f32.mrf.mxu0 }
 0x978   :  { %v1695_v21 = vpack.c.bf16 %v1694_v19, %v1694_v19 }
 0x979   :  { %v1972_v22 = vpop.f32.mrf.mxu0 }
 0x97a   :  { %1978 = vmatmul.mubr.msk.bf16.vlgmr.msra.gmra.mxu1 %vm104_vm2, %v1695_v21 }
 0xa3a   :  { %v1756_v26 = vpop.f32.mrf.mxu1 }
 0xa3b   :  { %v1757_v27 = vadd.f32 %v1821_v24, %v1756_v26 }
 0xa3c   :  { %v1979_v28 = vpop.f32.mrf.mxu1 }
 0xa3d   :  { %v1766_v29 = vmul.f32 %v1765_v25, %v1757_v27 }
 0xa3e   :  { %v1759_v30 = vpop.f32.mrf.mxu1 }
 0xa3f   :  { %v1767_v31 = vadd.f32 %v1766_v29, %v1597_v45 }
 0xa40   :  { %v1980_v32 = vpop.f32.mrf.mxu1 }
 0xa41   :  { %1768 = vst.msk [vmem:[%s2376_s14] sm:$0xf] %vm49_vm0, %v1767_v31 }

</bundles_post_ra>
